<compile_context>
chip_gen: v6e
topology: v6e:2x2x1
jax: 0.10.0
libtpu: 0.0.40
codegen_flags: <defaults>
</compile_context>

<pallas_src>
import functools

import jax
import jax.numpy as jnp
from jax import lax
from jax.experimental import pallas as pl
from jax.experimental.pallas import tpu as pltpu

EPS = 1e-5
LANE = 128                      # TPU lane width; channel dims are padded to this.
VMEM_LIMIT = 32 * 1024 * 1024   # scoped VMEM limit (raises v5e's 16MiB default).


def _round_up(x, m):
    return (x + m - 1) // m * m


def _pad_axis(a, axis, size):
    pad = size - a.shape[axis]
    if pad == 0:
        return a
    cfg = [(0, 0)] * a.ndim
    cfg[axis] = (0, pad)
    return jnp.pad(a, cfg)


def _pick_tile_m(m, tile_m):
    return min(tile_m, _round_up(m, 8))


# ----------------------------- Pallas kernels ------------------------------


def _matmul_stats_kernel(x_ref, w_ref, y_ref, stats_ref):
    """y = x @ w (bf16 operands, f32 accum) + per-channel sum / sumsq accumulation."""
    y = jnp.dot(x_ref[...], w_ref[...], preferred_element_type=jnp.float32)
    y_ref[...] = y

    @pl.when(pl.program_id(0) == 0)
    def _():
        stats_ref[...] = jnp.zeros_like(stats_ref)

    stats_ref[0:1, :] = stats_ref[0:1, :] + jnp.sum(y, axis=0, keepdims=True)
    stats_ref[1:2, :] = stats_ref[1:2, :] + jnp.sum(y * y, axis=0, keepdims=True)


def _conv3x3x3_stats_kernel(xp_ref, w_ref, y_ref, stats_ref, acc_ref, *, H, W):
    """3x3x3 conv, one (n, d) output slice.  Grid axis 2 is the depth tap kd;
    the 9 (kh, kw) taps of that plane are accumulated as statically shifted
    matmuls into the VMEM f32 accumulator.  Finalize y + stats at the last kd."""
    n = pl.program_id(0)
    d = pl.program_id(1)
    kd = pl.program_id(2)

    @pl.when(kd == 0)
    def _():
        acc_ref[...] = jnp.zeros_like(acc_ref)

    @pl.when((n == 0) & (d == 0) & (kd == 0))
    def _():
        stats_ref[...] = jnp.zeros_like(stats_ref)

    c = w_ref.shape[-1]
    acc = acc_ref[...]
    for j in range(9):                                  # static unroll: 9 taps
        kh, kw = j // 3, j % 3
        win = xp_ref[kh:kh + H, kw:kw + W, :]           # (H, W, C) bf16, static shift
        acc = acc + jnp.dot(win.reshape(H * W, c), w_ref[j],
                            preferred_element_type=jnp.float32)
    acc_ref[...] = acc

    @pl.when(kd == pl.num_programs(2) - 1)
    def _():
        y = acc_ref[...]
        y_ref[...] = y
        stats_ref[0:1, :] = stats_ref[0:1, :] + jnp.sum(y, axis=0, keepdims=True)
        stats_ref[1:2, :] = stats_ref[1:2, :] + jnp.sum(y * y, axis=0, keepdims=True)


def _bn_scale_shift(stats_ref, g_ref, b_ref, count, eps):
    inv = 1.0 / count
    mean = stats_ref[0:1, :] * inv
    var = jnp.maximum(stats_ref[1:2, :] * inv - mean * mean, 0.0)
    scale = lax.rsqrt(var + eps) * g_ref[...]
    shift = b_ref[...] - mean * scale
    return scale, shift


def _bn_relu_kernel(y_ref, stats_ref, g_ref, b_ref, o_ref, *, count, eps):
    scale, shift = _bn_scale_shift(stats_ref, g_ref, b_ref, count, eps)
    o_ref[...] = jnp.maximum(y_ref[...] * scale + shift, 0.0).astype(o_ref.dtype)


def _bn_relu_res_kernel(y_ref, stats_ref, g_ref, b_ref, r_ref, o_ref, *, count, eps):
    scale, shift = _bn_scale_shift(stats_ref, g_ref, b_ref, count, eps)
    out = y_ref[...] * scale + shift + r_ref[...]
    o_ref[...] = jnp.maximum(out, 0.0).astype(o_ref.dtype)


# ----------------------------- pallas_call wrappers -------------------------


def matmul_stats(x, w, *, tile_m=256):
    """x: (M, K) bf16, w: (K, C) bf16 -> (y (M, C) f32, stats (2, C) f32 [sum, sumsq])."""
    m, k = x.shape
    k2, c = w.shape
    assert k == k2
    tm = _pick_tile_m(m, tile_m)
    mp = _round_up(m, tm)
    if mp != m:
        x = jnp.pad(x, ((0, mp - m), (0, 0)))           # zero rows: no effect on stats
    cost = pl.CostEstimate(
        flops=2 * mp * k * c, transcendentals=0,
        bytes_accessed=mp * k * 2 + k * c * 2 + mp * c * 4 + 2 * c * 4)
    y, stats = pl.pallas_call(
        _matmul_stats_kernel,
        out_shape=(jax.ShapeDtypeStruct((mp, c), jnp.float32),
                   jax.ShapeDtypeStruct((2, c), jnp.float32)),
        grid=(mp // tm,),
        in_specs=[pl.BlockSpec((tm, k), lambda i: (i, 0)),
                  pl.BlockSpec((k, c), lambda i: (0, 0))],
        out_specs=(pl.BlockSpec((tm, c), lambda i: (i, 0)),
                   pl.BlockSpec((2, c), lambda i: (0, 0))),
        compiler_params=pltpu.CompilerParams(
            dimension_semantics=("arbitrary",),          # stats accumulate across M tiles
            vmem_limit_bytes=VMEM_LIMIT),
        cost_estimate=cost,
    )(x, w)
    return y[:m], stats


def conv3x3x3_stats(xp, w_taps):
    """xp: (N, D+2, H+2, W+2, C) bf16 (zero spatial pad); w_taps: (3, 9, C, C) bf16.
    Returns y: (N, D, H*W, C) f32 and stats (2, C) f32."""
    n, dp2, hp2, wp2, c = xp.shape
    d, h, w = dp2 - 2, hp2 - 2, wp2 - 2
    hw = h * w
    kern = functools.partial(_conv3x3x3_stats_kernel, H=h, W=w)
    cost = pl.CostEstimate(
        flops=2 * n * d * 27 * hw * c * c, transcendentals=0,
        bytes_accessed=(n * d * 3 * hp2 * wp2 * c * 2 + n * d * 27 * c * c * 2
                        + n * d * hw * c * 4 + 2 * c * 4))
    y, stats = pl.pallas_call(
        kern,
        out_shape=(jax.ShapeDtypeStruct((n, d, hw, c), jnp.float32),
                   jax.ShapeDtypeStruct((2, c), jnp.float32)),
        grid=(n, d, 3),
        in_specs=[
            # one padded depth slice (d + kd); the H/W halo is handled by the
            # static shifted slices inside the kernel.
            pl.BlockSpec((None, None, hp2, wp2, c),
                         lambda ni, di, kd: (ni, di + kd, 0, 0, 0)),
            # the 9 (kh, kw) tap weight matrices of this kd plane.
            pl.BlockSpec((None, 9, c, c), lambda ni, di, kd: (kd, 0, 0, 0)),
        ],
        out_specs=(pl.BlockSpec((None, None, hw, c),
                                lambda ni, di, kd: (ni, di, 0, 0)),
                   pl.BlockSpec((2, c), lambda ni, di, kd: (0, 0))),
        scratch_shapes=[pltpu.VMEM((hw, c), jnp.float32)],
        compiler_params=pltpu.CompilerParams(
            dimension_semantics=("arbitrary", "arbitrary", "arbitrary"),
            vmem_limit_bytes=VMEM_LIMIT),
        cost_estimate=cost,
    )(xp, w_taps)
    return y, stats


def bn_relu_finalize(y, stats, gamma, beta, *, count, residual=None,
                     out_dtype=jnp.float32, tile_m=256):
    """Normalize (global batch stats) + affine (+residual) + ReLU, tiled over rows."""
    m, c = y.shape
    tm = _pick_tile_m(m, tile_m)
    mp = _round_up(m, tm)
    if mp != m:
        y = jnp.pad(y, ((0, mp - m), (0, 0)))
        if residual is not None:
            residual = jnp.pad(residual, ((0, mp - m), (0, 0)))
    g2 = gamma.reshape(1, c).astype(jnp.float32)
    b2 = beta.reshape(1, c).astype(jnp.float32)

    row_spec = pl.BlockSpec((tm, c), lambda i: (i, 0))
    bcast = lambda i: (0, 0)
    in_specs = [row_spec,
                pl.BlockSpec((2, c), bcast),
                pl.BlockSpec((1, c), bcast),
                pl.BlockSpec((1, c), bcast)]
    if residual is None:
        kern = functools.partial(_bn_relu_kernel, count=float(count), eps=EPS)
        args = (y, stats, g2, b2)
    else:
        kern = functools.partial(_bn_relu_res_kernel, count=float(count), eps=EPS)
        in_specs = in_specs + [row_spec]
        args = (y, stats, g2, b2, residual)

    out_bytes = mp * c * jnp.dtype(out_dtype).itemsize
    res_bytes = mp * c * 4 if residual is not None else 0
    cost = pl.CostEstimate(flops=5 * mp * c, transcendentals=c,
                           bytes_accessed=mp * c * 4 + out_bytes + res_bytes + 4 * c * 4)
    out = pl.pallas_call(
        kern,
        out_shape=jax.ShapeDtypeStruct((mp, c), out_dtype),
        grid=(mp // tm,),
        in_specs=in_specs,
        out_specs=row_spec,
        compiler_params=pltpu.CompilerParams(
            dimension_semantics=("parallel",),           # elementwise over rows
            vmem_limit_bytes=VMEM_LIMIT),
        cost_estimate=cost,
    )(*args)
    return out[:m]


# ------------------------------- forward ------------------------------------


def init_params(key, inplanes, planes):
    """Deterministic synthetic parameters matching Bottleneck.__init__ shapes."""
    k1, k2, k3 = jax.random.split(key, 3)
    w1 = jax.random.normal(k1, (inplanes, planes), jnp.float32) / jnp.sqrt(inplanes)
    w2 = jax.random.normal(k2, (3, 3, 3, planes, planes), jnp.float32) / jnp.sqrt(27 * planes)
    w3 = jax.random.normal(k3, (planes, 4 * planes), jnp.float32) / jnp.sqrt(planes)
    return dict(
        w1=w1, g1=jnp.ones((planes,), jnp.float32), b1=jnp.zeros((planes,), jnp.float32),
        w2=w2, g2=jnp.ones((planes,), jnp.float32), b2=jnp.zeros((planes,), jnp.float32),
        w3=w3, g3=jnp.ones((4 * planes,), jnp.float32), b3=jnp.zeros((4 * planes,), jnp.float32),
    )


def bottleneck_forward(x_ncdhw, p, *, tile_m=256):
    """Bottleneck.forward with module defaults: stride=1, downsample=None,
    training-mode BatchNorm (batch statistics, eps=1e-5)."""
    # TODO(synk): stride>1 / downsample branch not implemented (unused by the
    # module defaults); conv1+bn1 could additionally be fused into the conv2
    # kernel's halo load to save one more HBM round trip.
    n, c_in, d, h, w = x_ncdhw.shape
    planes = p['w1'].shape[1]
    c_out = 4 * planes
    assert c_in == c_out, "identity residual requires inplanes == 4 * planes"

    cp_in = _round_up(c_in, LANE)
    cp_mid = _round_up(planes, LANE)
    cp_out = _round_up(c_out, LANE)
    m = n * d * h * w

    x = jnp.transpose(x_ncdhw, (0, 2, 3, 4, 1)).astype(jnp.float32)   # NDHWC
    x_rows = _pad_axis(x.reshape(m, c_in), 1, cp_in)                  # (M, Cp) f32 residual

    # Channel-padded bf16 weights; f32 BN affine params (zero-padded channels
    # stay identically zero through every stage, so they never pollute results).
    w1 = _pad_axis(_pad_axis(p['w1'], 0, cp_in), 1, cp_mid).astype(jnp.bfloat16)
    w2 = _pad_axis(_pad_axis(p['w2'], 3, cp_mid), 4, cp_mid)
    w2 = w2.reshape(3, 9, cp_mid, cp_mid).astype(jnp.bfloat16)        # (kd, kh*3+kw, Ci, Co)
    w3 = _pad_axis(_pad_axis(p['w3'], 0, cp_mid), 1, cp_out).astype(jnp.bfloat16)
    g1, b1 = _pad_axis(p['g1'], 0, cp_mid), _pad_axis(p['b1'], 0, cp_mid)
    g2, b2 = _pad_axis(p['g2'], 0, cp_mid), _pad_axis(p['b2'], 0, cp_mid)
    g3, b3 = _pad_axis(p['g3'], 0, cp_out), _pad_axis(p['b3'], 0, cp_out)

    # conv1 (1x1x1) + bn1 + relu
    y1, st1 = matmul_stats(x_rows.astype(jnp.bfloat16), w1, tile_m=tile_m)
    a1 = bn_relu_finalize(y1, st1, g1, b1, count=m,
                          out_dtype=jnp.bfloat16, tile_m=tile_m)

    # conv2 (3x3x3, stride=1, pad=1) + bn2 + relu — 27 accumulating tap matmuls in VMEM
    a1p = jnp.pad(a1.reshape(n, d, h, w, cp_mid),
                  ((0, 0), (1, 1), (1, 1), (1, 1), (0, 0)))
    y2, st2 = conv3x3x3_stats(a1p, w2)
    a2 = bn_relu_finalize(y2.reshape(m, cp_mid), st2, g2, b2, count=m,
                          out_dtype=jnp.bfloat16, tile_m=tile_m)

    # conv3 (1x1x1) + bn3 + residual add + relu
    y3, st3 = matmul_stats(a2, w3, tile_m=tile_m)
    out = bn_relu_finalize(y3, st3, g3, b3, count=m, residual=x_rows,
                           out_dtype=jnp.float32, tile_m=tile_m)

    out = out[:, :c_out].reshape(n, d, h, w, c_out)
    return jnp.transpose(out, (0, 4, 1, 2, 3))                        # NCDHW


def reference_forward(x_ncdhw, p):
    """Pure-JAX reference with the same operand precision as the kernels
    (bf16 matmul/conv inputs, f32 accumulation, f32 BN/residual)."""
    x = jnp.transpose(x_ncdhw, (0, 2, 3, 4, 1)).astype(jnp.float32)
    f = lambda a: a.astype(jnp.bfloat16)

    def bn_relu(y, g, b, add=None):
        mean = jnp.mean(y, axis=(0, 1, 2, 3), keepdims=True)
        var = jnp.mean(jnp.square(y - mean), axis=(0, 1, 2, 3), keepdims=True)
        out = (y - mean) * lax.rsqrt(var + EPS) * g + b
        if add is not None:
            out = out + add
        return jnp.maximum(out, 0.0)

    y = jnp.einsum('ndhwc,co->ndhwo', f(x), f(p['w1']),
                   preferred_element_type=jnp.float32)
    y = bn_relu(y, p['g1'], p['b1'])
    y = lax.conv_general_dilated(f(y), f(p['w2']), (1, 1, 1), 'SAME',
                                 dimension_numbers=('NDHWC', 'DHWIO', 'NDHWC'),
                                 preferred_element_type=jnp.float32)
    y = bn_relu(y, p['g2'], p['b2'])
    y = jnp.einsum('ndhwc,co->ndhwo', f(y), f(p['w3']),
                   preferred_element_type=jnp.float32)
    y = bn_relu(y, p['g3'], p['b3'], add=x)
    return jnp.transpose(y, (0, 4, 1, 2, 3))


if __name__ == "__main__":
    key = jax.random.PRNGKey(0)
    kx, kp = jax.random.split(key)

    # Small shapes: inplanes == 4*planes so the identity residual is valid.
    inplanes, planes = 32, 8
    N, D, H, W = 2, 8, 8, 8

    x = jax.random.normal(kx, (N, inplanes, D, H, W), dtype=jnp.float32)
    params = init_params(kp, inplanes, planes)

    fwd = jax.jit(bottleneck_forward)
    out = jax.block_until_ready(fwd(x, params))
    assert out.shape == (N, 4 * planes, D, H, W), out.shape

    ref = jax.block_until_ready(reference_forward(x, params))
    max_err = float(jnp.max(jnp.abs(out - ref)))
    assert max_err < 1e-2, f"max abs err {max_err}"

    print("KERNEL_OK")
</pallas_src>

<mosaic_0001>
module attributes {stable_mosaic.version = 11 : i64} {
  func.func @_matmul_stats_kernel(%arg0: i32, %arg1: memref<256x128xbf16, #tpu.memory_space<vmem>>, %arg2: memref<128x128xbf16, #tpu.memory_space<vmem>>, %arg3: memref<256x128xf32, #tpu.memory_space<vmem>>, %arg4: memref<2x128xf32, #tpu.memory_space<vmem>>) attributes {dimension_semantics = [#tpu.dimension_semantics<arbitrary>], iteration_bounds = array<i64: 4>, scalar_prefetch = 0 : i64, scratch_operands = 0 : i64, tpu.core_type = #tpu.core_type<tc>, window_params = [{transform_indices = @transform_0, window_bounds = array<i64: 256, 128>}, {pipeline_mode = #tpu.pipeline_mode<synchronous>, transform_indices = @transform_1, window_bounds = array<i64: 128, 128>}, {transform_indices = @transform_2, window_bounds = array<i64: 256, 128>}, {pipeline_mode = #tpu.pipeline_mode<synchronous>, transform_indices = @transform_3, window_bounds = array<i64: 2, 128>}]} {
    %c0 = arith.constant 0 : index
    %c0_0 = arith.constant 0 : index
    %0 = vector.load %arg1[%c0, %c0_0] : memref<256x128xbf16, #tpu.memory_space<vmem>>, vector<256x128xbf16>
    %c0_1 = arith.constant 0 : index
    %c0_2 = arith.constant 0 : index
    %1 = vector.load %arg2[%c0_1, %c0_2] : memref<128x128xbf16, #tpu.memory_space<vmem>>, vector<128x128xbf16>
    %cst = arith.constant dense<0.000000e+00> : vector<256x128xf32>
    %2 = tpu.matmul %0, %1, %cst {dimension_numbers = #tpu.dot_dimension_numbers<[1], [0], [0], [1], [0, 0, 1, 1], [], []>} : vector<256x128xbf16>, vector<128x128xbf16>, vector<256x128xf32> -> vector<256x128xf32>
    %c0_3 = arith.constant 0 : index
    %c0_4 = arith.constant 0 : index
    %3 = vector.load %arg3[%c0_3, %c0_4] : memref<256x128xf32, #tpu.memory_space<vmem>>, vector<256x128xf32>
    tpu.vector_store %arg3[%c0_3, %c0_4], %2 {strides = array<i32>} : memref<256x128xf32, #tpu.memory_space<vmem>>, vector<256x128xf32>,
    %c0_i32 = arith.constant 0 : i32
    %4 = arith.cmpi eq, %arg0, %c0_i32 : i32
    %5 = arith.extui %4 : i1 to i32
    %c0_i32_5 = arith.constant 0 : i32
    %6 = arith.cmpi ne, %5, %c0_i32_5 : i32
    scf.if %6 {
      %cst_15 = arith.constant 0.000000e+00 : f32
      %18 = vector.broadcast %cst_15 : f32 to vector<2x128xf32>
      %c0_16 = arith.constant 0 : index
      %c0_17 = arith.constant 0 : index
      %19 = vector.load %arg4[%c0_16, %c0_17] : memref<2x128xf32, #tpu.memory_space<vmem>>, vector<2x128xf32>
      tpu.vector_store %arg4[%c0_16, %c0_17], %18 {strides = array<i32>} : memref<2x128xf32, #tpu.memory_space<vmem>>, vector<2x128xf32>,
    } else {
    }
    %c0_6 = arith.constant 0 : index
    %c0_7 = arith.constant 0 : index
    %7 = vector.load %arg4[%c0_6, %c0_7] : memref<2x128xf32, #tpu.memory_space<vmem>>, vector<1x128xf32>
    %cst_8 = arith.constant dense<0.000000e+00> : vector<128xf32>
    %8 = vector.multi_reduction <add>, %2, %cst_8 [0] : vector<256x128xf32> to vector<128xf32>
    %9 = vector.shape_cast %8 : vector<128xf32> to vector<1x128xf32>
    %10 = arith.addf %7, %9 : vector<1x128xf32>
    %c0_9 = arith.constant 0 : index
    %c0_10 = arith.constant 0 : index
    %11 = vector.load %arg4[%c0_9, %c0_10] : memref<2x128xf32, #tpu.memory_space<vmem>>, vector<1x128xf32>
    tpu.vector_store %arg4[%c0_9, %c0_10], %10 {strides = array<i32>} : memref<2x128xf32, #tpu.memory_space<vmem>>, vector<1x128xf32>,
    %c1 = arith.constant 1 : index
    %c0_11 = arith.constant 0 : index
    %12 = vector.load %arg4[%c1, %c0_11] : memref<2x128xf32, #tpu.memory_space<vmem>>, vector<1x128xf32>
    %13 = arith.mulf %2, %2 : vector<256x128xf32>
    %cst_12 = arith.constant dense<0.000000e+00> : vector<128xf32>
    %14 = vector.multi_reduction <add>, %13, %cst_12 [0] : vector<256x128xf32> to vector<128xf32>
    %15 = vector.shape_cast %14 : vector<128xf32> to vector<1x128xf32>
    %16 = arith.addf %12, %15 : vector<1x128xf32>
    %c1_13 = arith.constant 1 : index
    %c0_14 = arith.constant 0 : index
    %17 = vector.load %arg4[%c1_13, %c0_14] : memref<2x128xf32, #tpu.memory_space<vmem>>, vector<1x128xf32>
    tpu.vector_store %arg4[%c1_13, %c0_14], %16 {strides = array<i32>} : memref<2x128xf32, #tpu.memory_space<vmem>>, vector<1x128xf32>,
    return
  }
  func.func @transform_0(%arg0: i32) -> (i32, i32) {
    %c0_i32 = arith.constant 0 : i32
    %c0_i32_0 = arith.constant 0 : i32
    return %arg0, %c0_i32 : i32, i32
  }
  func.func @transform_1(%arg0: i32) -> (i32, i32) {
    %c0_i32 = arith.constant 0 : i32
    %c0_i32_0 = arith.constant 0 : i32
    %c0_i32_1 = arith.constant 0 : i32
    return %c0_i32, %c0_i32_0 : i32, i32
  }
  func.func @transform_2(%arg0: i32) -> (i32, i32) {
    %c0_i32 = arith.constant 0 : i32
    %c0_i32_0 = arith.constant 0 : i32
    return %arg0, %c0_i32 : i32, i32
  }
  func.func @transform_3(%arg0: i32) -> (i32, i32) {
    %c0_i32 = arith.constant 0 : i32
    %c0_i32_0 = arith.constant 0 : i32
    %c0_i32_1 = arith.constant 0 : i32
    return %c0_i32, %c0_i32_0 : i32, i32
  }
}

module attributes {stable_mosaic.version = 11 : i64} {
  func.func @_bn_relu_kernel(%arg0: i32, %arg1: memref<256x128xf32, #tpu.memory_space<vmem>>, %arg2: memref<2x128xf32, #tpu.memory_space<vmem>>, %arg3: memref<1x128xf32, #tpu.memory_space<vmem>>, %arg4: memref<1x128xf32, #tpu.memory_space<vmem>>, %arg5: memref<256x128xbf16, #tpu.memory_space<vmem>>) attributes {dimension_semantics = [#tpu.dimension_semantics<parallel>], iteration_bounds = array<i64: 4>, scalar_prefetch = 0 : i64, scratch_operands = 0 : i64, tpu.core_type = #tpu.core_type<tc>, window_params = [{transform_indices = @transform_0, window_bounds = array<i64: 256, 128>}, {pipeline_mode = #tpu.pipeline_mode<synchronous>, transform_indices = @transform_1, window_bounds = array<i64: 2, 128>}, {pipeline_mode = #tpu.pipeline_mode<synchronous>, transform_indices = @transform_2, window_bounds = array<i64: 1, 128>}, {pipeline_mode = #tpu.pipeline_mode<synchronous>, transform_indices = @transform_3, window_bounds = array<i64: 1, 128>}, {transform_indices = @transform_4, window_bounds = array<i64: 256, 128>}]} {
    %c0 = arith.constant 0 : index
    %c0_0 = arith.constant 0 : index
    %0 = vector.load %arg2[%c0, %c0_0] : memref<2x128xf32, #tpu.memory_space<vmem>>, vector<1x128xf32>
    %cst = arith.constant 9.765625E-4 : f32
    %1 = vector.broadcast %cst : f32 to vector<1x128xf32>
    %2 = arith.mulf %0, %1 : vector<1x128xf32>
    %c1 = arith.constant 1 : index
    %c0_1 = arith.constant 0 : index
    %3 = vector.load %arg2[%c1, %c0_1] : memref<2x128xf32, #tpu.memory_space<vmem>>, vector<1x128xf32>
    %cst_2 = arith.constant 9.765625E-4 : f32
    %4 = vector.broadcast %cst_2 : f32 to vector<1x128xf32>
    %5 = arith.mulf %3, %4 : vector<1x128xf32>
    %6 = arith.mulf %2, %2 : vector<1x128xf32>
    %7 = arith.subf %5, %6 : vector<1x128xf32>
    %cst_3 = arith.constant 0.000000e+00 : f32
    %8 = vector.broadcast %cst_3 : f32 to vector<1x128xf32>
    %9 = arith.maximumf %7, %8 : vector<1x128xf32>
    %cst_4 = arith.constant 9.99999974E-6 : f32
    %10 = vector.broadcast %cst_4 : f32 to vector<1x128xf32>
    %11 = arith.addf %9, %10 : vector<1x128xf32>
    %12 = math.rsqrt %11 : vector<1x128xf32>
    %c0_5 = arith.constant 0 : index
    %c0_6 = arith.constant 0 : index
    %13 = vector.load %arg3[%c0_5, %c0_6] : memref<1x128xf32, #tpu.memory_space<vmem>>, vector<1x128xf32>
    %14 = arith.mulf %12, %13 : vector<1x128xf32>
    %c0_7 = arith.constant 0 : index
    %c0_8 = arith.constant 0 : index
    %15 = vector.load %arg4[%c0_7, %c0_8] : memref<1x128xf32, #tpu.memory_space<vmem>>, vector<1x128xf32>
    %16 = arith.mulf %2, %14 : vector<1x128xf32>
    %17 = arith.subf %15, %16 : vector<1x128xf32>
    %c0_9 = arith.constant 0 : index
    %c0_10 = arith.constant 0 : index
    %18 = vector.load %arg1[%c0_9, %c0_10] : memref<256x128xf32, #tpu.memory_space<vmem>>, vector<256x128xf32>
    %19 = vector.broadcast %14 : vector<1x128xf32> to vector<256x128xf32>
    %20 = arith.mulf %18, %19 : vector<256x128xf32>
    %21 = vector.broadcast %17 : vector<1x128xf32> to vector<256x128xf32>
    %22 = arith.addf %20, %21 : vector<256x128xf32>
    %cst_11 = arith.constant 0.000000e+00 : f32
    %23 = vector.broadcast %cst_11 : f32 to vector<256x128xf32>
    %24 = arith.maximumf %22, %23 : vector<256x128xf32>
    %25 = arith.truncf %24 : vector<256x128xf32> to vector<256x128xbf16>
    %c0_12 = arith.constant 0 : index
    %c0_13 = arith.constant 0 : index
    %26 = vector.load %arg5[%c0_12, %c0_13] : memref<256x128xbf16, #tpu.memory_space<vmem>>, vector<256x128xbf16>
    tpu.vector_store %arg5[%c0_12, %c0_13], %25 {strides = array<i32>} : memref<256x128xbf16, #tpu.memory_space<vmem>>, vector<256x128xbf16>,
    return
  }
  func.func @transform_0(%arg0: i32) -> (i32, i32) {
    %c0_i32 = arith.constant 0 : i32
    %c0_i32_0 = arith.constant 0 : i32
    return %arg0, %c0_i32 : i32, i32
  }
  func.func @transform_1(%arg0: i32) -> (i32, i32) {
    %c0_i32 = arith.constant 0 : i32
    %c0_i32_0 = arith.constant 0 : i32
    %c0_i32_1 = arith.constant 0 : i32
    return %c0_i32, %c0_i32_0 : i32, i32
  }
  func.func @transform_2(%arg0: i32) -> (i32, i32) {
    %c0_i32 = arith.constant 0 : i32
    %c0_i32_0 = arith.constant 0 : i32
    %c0_i32_1 = arith.constant 0 : i32
    return %c0_i32, %c0_i32_0 : i32, i32
  }
  func.func @transform_3(%arg0: i32) -> (i32, i32) {
    %c0_i32 = arith.constant 0 : i32
    %c0_i32_0 = arith.constant 0 : i32
    %c0_i32_1 = arith.constant 0 : i32
    return %c0_i32, %c0_i32_0 : i32, i32
  }
  func.func @transform_4(%arg0: i32) -> (i32, i32) {
    %c0_i32 = arith.constant 0 : i32
    %c0_i32_0 = arith.constant 0 : i32
    return %arg0, %c0_i32 : i32, i32
  }
}

module attributes {stable_mosaic.version = 11 : i64} {
  func.func @_conv3x3x3_stats_kernel(%arg0: i32, %arg1: i32, %arg2: i32, %arg3: memref<1x1x10x10x128xbf16, #tpu.memory_space<vmem>>, %arg4: memref<1x9x128x128xbf16, #tpu.memory_space<vmem>>, %arg5: memref<1x1x64x128xf32, #tpu.memory_space<vmem>>, %arg6: memref<2x128xf32, #tpu.memory_space<vmem>>, %arg7: memref<64x128xf32, #tpu.memory_space<vmem>>) attributes {dimension_semantics = [#tpu.dimension_semantics<arbitrary>, #tpu.dimension_semantics<arbitrary>, #tpu.dimension_semantics<arbitrary>], iteration_bounds = array<i64: 2, 8, 3>, scalar_prefetch = 0 : i64, scratch_operands = 1 : i64, tpu.core_type = #tpu.core_type<tc>, window_params = [{transform_indices = @transform_0, window_bounds = array<i64: 1, 1, 10, 10, 128>}, {transform_indices = @transform_1, window_bounds = array<i64: 1, 9, 128, 128>}, {transform_indices = @transform_2, window_bounds = array<i64: 1, 1, 64, 128>}, {pipeline_mode = #tpu.pipeline_mode<synchronous>, transform_indices = @transform_3, window_bounds = array<i64: 2, 128>}]} {
    %c0_i32 = arith.constant 0 : i32
    %0 = arith.cmpi eq, %arg2, %c0_i32 : i32
    %1 = arith.extui %0 : i1 to i32
    %c0_i32_0 = arith.constant 0 : i32
    %2 = arith.cmpi ne, %1, %c0_i32_0 : i32
    scf.if %2 {
      %cst_90 = arith.constant 0.000000e+00 : f32
      %78 = vector.broadcast %cst_90 : f32 to vector<64x128xf32>
      %c0_91 = arith.constant 0 : index
      %c0_92 = arith.constant 0 : index
      %79 = vector.load %arg7[%c0_91, %c0_92] : memref<64x128xf32, #tpu.memory_space<vmem>>, vector<64x128xf32>
      tpu.vector_store %arg7[%c0_91, %c0_92], %78 {strides = array<i32>} : memref<64x128xf32, #tpu.memory_space<vmem>>, vector<64x128xf32>,
    } else {
    }
    %c0_i32_1 = arith.constant 0 : i32
    %3 = arith.cmpi eq, %arg0, %c0_i32_1 : i32
    %c0_i32_2 = arith.constant 0 : i32
    %4 = arith.cmpi eq, %arg1, %c0_i32_2 : i32
    %5 = arith.andi %3, %4 : i1
    %c0_i32_3 = arith.constant 0 : i32
    %6 = arith.cmpi eq, %arg2, %c0_i32_3 : i32
    %7 = arith.andi %5, %6 : i1
    %8 = arith.extui %7 : i1 to i32
    %c0_i32_4 = arith.constant 0 : i32
    %9 = arith.cmpi ne, %8, %c0_i32_4 : i32
    scf.if %9 {
      %cst_90 = arith.constant 0.000000e+00 : f32
      %78 = vector.broadcast %cst_90 : f32 to vector<2x128xf32>
      %c0_91 = arith.constant 0 : index
      %c0_92 = arith.constant 0 : index
      %79 = vector.load %arg6[%c0_91, %c0_92] : memref<2x128xf32, #tpu.memory_space<vmem>>, vector<2x128xf32>
      tpu.vector_store %arg6[%c0_91, %c0_92], %78 {strides = array<i32>} : memref<2x128xf32, #tpu.memory_space<vmem>>, vector<2x128xf32>,
    } else {
    }
    %c0 = arith.constant 0 : index
    %c0_5 = arith.constant 0 : index
    %10 = vector.load %arg7[%c0, %c0_5] : memref<64x128xf32, #tpu.memory_space<vmem>>, vector<64x128xf32>
    %c0_6 = arith.constant 0 : index
    %c0_7 = arith.constant 0 : index
    %c0_8 = arith.constant 0 : index
    %c0_9 = arith.constant 0 : index
    %c0_10 = arith.constant 0 : index
    %11 = vector.load %arg3[%c0_6, %c0_7, %c0_8, %c0_9, %c0_10] : memref<1x1x10x10x128xbf16, #tpu.memory_space<vmem>>, vector<1x1x8x8x128xbf16>
    %12 = vector.shape_cast %11 : vector<1x1x8x8x128xbf16> to vector<8x8x128xbf16>
    %13 = vector.shape_cast %12 : vector<8x8x128xbf16> to vector<64x128xbf16>
    %c0_11 = arith.constant 0 : index
    %c0_12 = arith.constant 0 : index
    %c0_13 = arith.constant 0 : index
    %c0_14 = arith.constant 0 : index
    %14 = vector.load %arg4[%c0_11, %c0_12, %c0_13, %c0_14] : memref<1x9x128x128xbf16, #tpu.memory_space<vmem>>, vector<1x1x128x128xbf16>
    %15 = vector.shape_cast %14 : vector<1x1x128x128xbf16> to vector<128x128xbf16>
    %cst = arith.constant dense<0.000000e+00> : vector<64x128xf32>
    %16 = tpu.matmul %13, %15, %cst {dimension_numbers = #tpu.dot_dimension_numbers<[1], [0], [0], [1], [0, 0, 1, 1], [], []>} : vector<64x128xbf16>, vector<128x128xbf16>, vector<64x128xf32> -> vector<64x128xf32>
    %17 = arith.addf %10, %16 : vector<64x128xf32>
    %c0_15 = arith.constant 0 : index
    %c0_16 = arith.constant 0 : index
    %c0_17 = arith.constant 0 : index
    %c1 = arith.constant 1 : index
    %c0_18 = arith.constant 0 : index
    %18 = vector.load %arg3[%c0_15, %c0_16, %c0_17, %c1, %c0_18] : memref<1x1x10x10x128xbf16, #tpu.memory_space<vmem>>, vector<1x1x8x8x128xbf16>
    %19 = vector.shape_cast %18 : vector<1x1x8x8x128xbf16> to vector<8x8x128xbf16>
    %20 = vector.shape_cast %19 : vector<8x8x128xbf16> to vector<64x128xbf16>
    %c0_19 = arith.constant 0 : index
    %c1_20 = arith.constant 1 : index
    %c0_21 = arith.constant 0 : index
    %c0_22 = arith.constant 0 : index
    %21 = vector.load %arg4[%c0_19, %c1_20, %c0_21, %c0_22] : memref<1x9x128x128xbf16, #tpu.memory_space<vmem>>, vector<1x1x128x128xbf16>
    %22 = vector.shape_cast %21 : vector<1x1x128x128xbf16> to vector<128x128xbf16>
    %cst_23 = arith.constant dense<0.000000e+00> : vector<64x128xf32>
    %23 = tpu.matmul %20, %22, %cst_23 {dimension_numbers = #tpu.dot_dimension_numbers<[1], [0], [0], [1], [0, 0, 1, 1], [], []>} : vector<64x128xbf16>, vector<128x128xbf16>, vector<64x128xf32> -> vector<64x128xf32>
    %24 = arith.addf %17, %23 : vector<64x128xf32>
    %c0_24 = arith.constant 0 : index
    %c0_25 = arith.constant 0 : index
    %c0_26 = arith.constant 0 : index
    %c2 = arith.constant 2 : index
    %c0_27 = arith.constant 0 : index
    %25 = vector.load %arg3[%c0_24, %c0_25, %c0_26, %c2, %c0_27] : memref<1x1x10x10x128xbf16, #tpu.memory_space<vmem>>, vector<1x1x8x8x128xbf16>
    %26 = vector.shape_cast %25 : vector<1x1x8x8x128xbf16> to vector<8x8x128xbf16>
    %27 = vector.shape_cast %26 : vector<8x8x128xbf16> to vector<64x128xbf16>
    %c0_28 = arith.constant 0 : index
    %c2_29 = arith.constant 2 : index
    %c0_30 = arith.constant 0 : index
    %c0_31 = arith.constant 0 : index
    %28 = vector.load %arg4[%c0_28, %c2_29, %c0_30, %c0_31] : memref<1x9x128x128xbf16, #tpu.memory_space<vmem>>, vector<1x1x128x128xbf16>
    %29 = vector.shape_cast %28 : vector<1x1x128x128xbf16> to vector<128x128xbf16>
    %cst_32 = arith.constant dense<0.000000e+00> : vector<64x128xf32>
    %30 = tpu.matmul %27, %29, %cst_32 {dimension_numbers = #tpu.dot_dimension_numbers<[1], [0], [0], [1], [0, 0, 1, 1], [], []>} : vector<64x128xbf16>, vector<128x128xbf16>, vector<64x128xf32> -> vector<64x128xf32>
    %31 = arith.addf %24, %30 : vector<64x128xf32>
    %c0_33 = arith.constant 0 : index
    %c0_34 = arith.constant 0 : index
    %c1_35 = arith.constant 1 : index
    %c0_36 = arith.constant 0 : index
    %c0_37 = arith.constant 0 : index
    %32 = vector.load %arg3[%c0_33, %c0_34, %c1_35, %c0_36, %c0_37] : memref<1x1x10x10x128xbf16, #tpu.memory_space<vmem>>, vector<1x1x8x8x128xbf16>
    %33 = vector.shape_cast %32 : vector<1x1x8x8x128xbf16> to vector<8x8x128xbf16>
    %34 = vector.shape_cast %33 : vector<8x8x128xbf16> to vector<64x128xbf16>
    %c0_38 = arith.constant 0 : index
    %c3 = arith.constant 3 : index
    %c0_39 = arith.constant 0 : index
    %c0_40 = arith.constant 0 : index
    %35 = vector.load %arg4[%c0_38, %c3, %c0_39, %c0_40] : memref<1x9x128x128xbf16, #tpu.memory_space<vmem>>, vector<1x1x128x128xbf16>
    %36 = vector.shape_cast %35 : vector<1x1x128x128xbf16> to vector<128x128xbf16>
    %cst_41 = arith.constant dense<0.000000e+00> : vector<64x128xf32>
    %37 = tpu.matmul %34, %36, %cst_41 {dimension_numbers = #tpu.dot_dimension_numbers<[1], [0], [0], [1], [0, 0, 1, 1], [], []>} : vector<64x128xbf16>, vector<128x128xbf16>, vector<64x128xf32> -> vector<64x128xf32>
    %38 = arith.addf %31, %37 : vector<64x128xf32>
    %c0_42 = arith.constant 0 : index
    %c0_43 = arith.constant 0 : index
    %c1_44 = arith.constant 1 : index
    %c1_45 = arith.constant 1 : index
    %c0_46 = arith.constant 0 : index
    %39 = vector.load %arg3[%c0_42, %c0_43, %c1_44, %c1_45, %c0_46] : memref<1x1x10x10x128xbf16, #tpu.memory_space<vmem>>, vector<1x1x8x8x128xbf16>
    %40 = vector.shape_cast %39 : vector<1x1x8x8x128xbf16> to vector<8x8x128xbf16>
    %41 = vector.shape_cast %40 : vector<8x8x128xbf16> to vector<64x128xbf16>
    %c0_47 = arith.constant 0 : index
    %c4 = arith.constant 4 : index
    %c0_48 = arith.constant 0 : index
    %c0_49 = arith.constant 0 : index
    %42 = vector.load %arg4[%c0_47, %c4, %c0_48, %c0_49] : memref<1x9x128x128xbf16, #tpu.memory_space<vmem>>, vector<1x1x128x128xbf16>
    %43 = vector.shape_cast %42 : vector<1x1x128x128xbf16> to vector<128x128xbf16>
    %cst_50 = arith.constant dense<0.000000e+00> : vector<64x128xf32>
    %44 = tpu.matmul %41, %43, %cst_50 {dimension_numbers = #tpu.dot_dimension_numbers<[1], [0], [0], [1], [0, 0, 1, 1], [], []>} : vector<64x128xbf16>, vector<128x128xbf16>, vector<64x128xf32> -> vector<64x128xf32>
    %45 = arith.addf %38, %44 : vector<64x128xf32>
    %c0_51 = arith.constant 0 : index
    %c0_52 = arith.constant 0 : index
    %c1_53 = arith.constant 1 : index
    %c2_54 = arith.constant 2 : index
    %c0_55 = arith.constant 0 : index
    %46 = vector.load %arg3[%c0_51, %c0_52, %c1_53, %c2_54, %c0_55] : memref<1x1x10x10x128xbf16, #tpu.memory_space<vmem>>, vector<1x1x8x8x128xbf16>
    %47 = vector.shape_cast %46 : vector<1x1x8x8x128xbf16> to vector<8x8x128xbf16>
    %48 = vector.shape_cast %47 : vector<8x8x128xbf16> to vector<64x128xbf16>
    %c0_56 = arith.constant 0 : index
    %c5 = arith.constant 5 : index
    %c0_57 = arith.constant 0 : index
    %c0_58 = arith.constant 0 : index
    %49 = vector.load %arg4[%c0_56, %c5, %c0_57, %c0_58] : memref<1x9x128x128xbf16, #tpu.memory_space<vmem>>, vector<1x1x128x128xbf16>
    %50 = vector.shape_cast %49 : vector<1x1x128x128xbf16> to vector<128x128xbf16>
    %cst_59 = arith.constant dense<0.000000e+00> : vector<64x128xf32>
    %51 = tpu.matmul %48, %50, %cst_59 {dimension_numbers = #tpu.dot_dimension_numbers<[1], [0], [0], [1], [0, 0, 1, 1], [], []>} : vector<64x128xbf16>, vector<128x128xbf16>, vector<64x128xf32> -> vector<64x128xf32>
    %52 = arith.addf %45, %51 : vector<64x128xf32>
    %c0_60 = arith.constant 0 : index
    %c0_61 = arith.constant 0 : index
    %c2_62 = arith.constant 2 : index
    %c0_63 = arith.constant 0 : index
    %c0_64 = arith.constant 0 : index
    %53 = vector.load %arg3[%c0_60, %c0_61, %c2_62, %c0_63, %c0_64] : memref<1x1x10x10x128xbf16, #tpu.memory_space<vmem>>, vector<1x1x8x8x128xbf16>
    %54 = vector.shape_cast %53 : vector<1x1x8x8x128xbf16> to vector<8x8x128xbf16>
    %55 = vector.shape_cast %54 : vector<8x8x128xbf16> to vector<64x128xbf16>
    %c0_65 = arith.constant 0 : index
    %c6 = arith.constant 6 : index
    %c0_66 = arith.constant 0 : index
    %c0_67 = arith.constant 0 : index
    %56 = vector.load %arg4[%c0_65, %c6, %c0_66, %c0_67] : memref<1x9x128x128xbf16, #tpu.memory_space<vmem>>, vector<1x1x128x128xbf16>
    %57 = vector.shape_cast %56 : vector<1x1x128x128xbf16> to vector<128x128xbf16>
    %cst_68 = arith.constant dense<0.000000e+00> : vector<64x128xf32>
    %58 = tpu.matmul %55, %57, %cst_68 {dimension_numbers = #tpu.dot_dimension_numbers<[1], [0], [0], [1], [0, 0, 1, 1], [], []>} : vector<64x128xbf16>, vector<128x128xbf16>, vector<64x128xf32> -> vector<64x128xf32>
    %59 = arith.addf %52, %58 : vector<64x128xf32>
    %c0_69 = arith.constant 0 : index
    %c0_70 = arith.constant 0 : index
    %c2_71 = arith.constant 2 : index
    %c1_72 = arith.constant 1 : index
    %c0_73 = arith.constant 0 : index
    %60 = vector.load %arg3[%c0_69, %c0_70, %c2_71, %c1_72, %c0_73] : memref<1x1x10x10x128xbf16, #tpu.memory_space<vmem>>, vector<1x1x8x8x128xbf16>
    %61 = vector.shape_cast %60 : vector<1x1x8x8x128xbf16> to vector<8x8x128xbf16>
    %62 = vector.shape_cast %61 : vector<8x8x128xbf16> to vector<64x128xbf16>
    %c0_74 = arith.constant 0 : index
    %c7 = arith.constant 7 : index
    %c0_75 = arith.constant 0 : index
    %c0_76 = arith.constant 0 : index
    %63 = vector.load %arg4[%c0_74, %c7, %c0_75, %c0_76] : memref<1x9x128x128xbf16, #tpu.memory_space<vmem>>, vector<1x1x128x128xbf16>
    %64 = vector.shape_cast %63 : vector<1x1x128x128xbf16> to vector<128x128xbf16>
    %cst_77 = arith.constant dense<0.000000e+00> : vector<64x128xf32>
    %65 = tpu.matmul %62, %64, %cst_77 {dimension_numbers = #tpu.dot_dimension_numbers<[1], [0], [0], [1], [0, 0, 1, 1], [], []>} : vector<64x128xbf16>, vector<128x128xbf16>, vector<64x128xf32> -> vector<64x128xf32>
    %66 = arith.addf %59, %65 : vector<64x128xf32>
    %c0_78 = arith.constant 0 : index
    %c0_79 = arith.constant 0 : index
    %c2_80 = arith.constant 2 : index
    %c2_81 = arith.constant 2 : index
    %c0_82 = arith.constant 0 : index
    %67 = vector.load %arg3[%c0_78, %c0_79, %c2_80, %c2_81, %c0_82] : memref<1x1x10x10x128xbf16, #tpu.memory_space<vmem>>, vector<1x1x8x8x128xbf16>
    %68 = vector.shape_cast %67 : vector<1x1x8x8x128xbf16> to vector<8x8x128xbf16>
    %69 = vector.shape_cast %68 : vector<8x8x128xbf16> to vector<64x128xbf16>
    %c0_83 = arith.constant 0 : index
    %c8 = arith.constant 8 : index
    %c0_84 = arith.constant 0 : index
    %c0_85 = arith.constant 0 : index
    %70 = vector.load %arg4[%c0_83, %c8, %c0_84, %c0_85] : memref<1x9x128x128xbf16, #tpu.memory_space<vmem>>, vector<1x1x128x128xbf16>
    %71 = vector.shape_cast %70 : vector<1x1x128x128xbf16> to vector<128x128xbf16>
    %cst_86 = arith.constant dense<0.000000e+00> : vector<64x128xf32>
    %72 = tpu.matmul %69, %71, %cst_86 {dimension_numbers = #tpu.dot_dimension_numbers<[1], [0], [0], [1], [0, 0, 1, 1], [], []>} : vector<64x128xbf16>, vector<128x128xbf16>, vector<64x128xf32> -> vector<64x128xf32>
    %73 = arith.addf %66, %72 : vector<64x128xf32>
    %c0_87 = arith.constant 0 : index
    %c0_88 = arith.constant 0 : index
    %74 = vector.load %arg7[%c0_87, %c0_88] : memref<64x128xf32, #tpu.memory_space<vmem>>, vector<64x128xf32>
    tpu.vector_store %arg7[%c0_87, %c0_88], %73 {strides = array<i32>} : memref<64x128xf32, #tpu.memory_space<vmem>>, vector<64x128xf32>,
    %c2_i32 = arith.constant 2 : i32
    %75 = arith.cmpi eq, %arg2, %c2_i32 : i32
    %76 = arith.extui %75 : i1 to i32
    %c0_i32_89 = arith.constant 0 : i32
    %77 = arith.cmpi ne, %76, %c0_i32_89 : i32
    scf.if %77 {
      %c0_90 = arith.constant 0 : index
      %c0_91 = arith.constant 0 : index
      %78 = vector.load %arg7[%c0_90, %c0_91] : memref<64x128xf32, #tpu.memory_space<vmem>>, vector<64x128xf32>
      %c0_92 = arith.constant 0 : index
      %c0_93 = arith.constant 0 : index
      %c0_94 = arith.constant 0 : index
      %c0_95 = arith.constant 0 : index
      %79 = vector.load %arg5[%c0_92, %c0_93, %c0_94, %c0_95] : memref<1x1x64x128xf32, #tpu.memory_space<vmem>>, vector<1x1x64x128xf32>
      %80 = vector.shape_cast %79 : vector<1x1x64x128xf32> to vector<64x128xf32>
      %81 = vector.shape_cast %78 : vector<64x128xf32> to vector<1x1x64x128xf32>
      tpu.vector_store %arg5[%c0_92, %c0_93, %c0_94, %c0_95], %81 {strides = array<i32>} : memref<1x1x64x128xf32, #tpu.memory_space<vmem>>, vector<1x1x64x128xf32>,
      %c0_96 = arith.constant 0 : index
      %c0_97 = arith.constant 0 : index
      %82 = vector.load %arg6[%c0_96, %c0_97] : memref<2x128xf32, #tpu.memory_space<vmem>>, vector<1x128xf32>
      %cst_98 = arith.constant dense<0.000000e+00> : vector<128xf32>
      %83 = vector.multi_reduction <add>, %78, %cst_98 [0] : vector<64x128xf32> to vector<128xf32>
      %84 = vector.shape_cast %83 : vector<128xf32> to vector<1x128xf32>
      %85 = arith.addf %82, %84 : vector<1x128xf32>
      %c0_99 = arith.constant 0 : index
      %c0_100 = arith.constant 0 : index
      %86 = vector.load %arg6[%c0_99, %c0_100] : memref<2x128xf32, #tpu.memory_space<vmem>>, vector<1x128xf32>
      tpu.vector_store %arg6[%c0_99, %c0_100], %85 {strides = array<i32>} : memref<2x128xf32, #tpu.memory_space<vmem>>, vector<1x128xf32>,
      %c1_101 = arith.constant 1 : index
      %c0_102 = arith.constant 0 : index
      %87 = vector.load %arg6[%c1_101, %c0_102] : memref<2x128xf32, #tpu.memory_space<vmem>>, vector<1x128xf32>
      %88 = arith.mulf %78, %78 : vector<64x128xf32>
      %cst_103 = arith.constant dense<0.000000e+00> : vector<128xf32>
      %89 = vector.multi_reduction <add>, %88, %cst_103 [0] : vector<64x128xf32> to vector<128xf32>
      %90 = vector.shape_cast %89 : vector<128xf32> to vector<1x128xf32>
      %91 = arith.addf %87, %90 : vector<1x128xf32>
      %c1_104 = arith.constant 1 : index
      %c0_105 = arith.constant 0 : index
      %92 = vector.load %arg6[%c1_104, %c0_105] : memref<2x128xf32, #tpu.memory_space<vmem>>, vector<1x128xf32>
      tpu.vector_store %arg6[%c1_104, %c0_105], %91 {strides = array<i32>} : memref<2x128xf32, #tpu.memory_space<vmem>>, vector<1x128xf32>,
    } else {
    }
    return
  }
  func.func @transform_0(%arg0: i32, %arg1: i32, %arg2: i32) -> (i32, i32, i32, i32, i32) {
    %0 = arith.addi %arg1, %arg2 : i32
    %c0_i32 = arith.constant 0 : i32
    %c0_i32_0 = arith.constant 0 : i32
    %c0_i32_1 = arith.constant 0 : i32
    %c0_i32_2 = arith.constant 0 : i32
    return %arg0, %0, %c0_i32, %c0_i32_0, %c0_i32_1 : i32, i32, i32, i32, i32
  }
  func.func @transform_1(%arg0: i32, %arg1: i32, %arg2: i32) -> (i32, i32, i32, i32) {
    %c0_i32 = arith.constant 0 : i32
    %c0_i32_0 = arith.constant 0 : i32
    %c0_i32_1 = arith.constant 0 : i32
    %c0_i32_2 = arith.constant 0 : i32
    return %arg2, %c0_i32, %c0_i32_0, %c0_i32_1 : i32, i32, i32, i32
  }
  func.func @transform_2(%arg0: i32, %arg1: i32, %arg2: i32) -> (i32, i32, i32, i32) {
    %c0_i32 = arith.constant 0 : i32
    %c0_i32_0 = arith.constant 0 : i32
    %c0_i32_1 = arith.constant 0 : i32
    return %arg0, %arg1, %c0_i32, %c0_i32_0 : i32, i32, i32, i32
  }
  func.func @transform_3(%arg0: i32, %arg1: i32, %arg2: i32) -> (i32, i32) {
    %c0_i32 = arith.constant 0 : i32
    %c0_i32_0 = arith.constant 0 : i32
    %c0_i32_1 = arith.constant 0 : i32
    return %c0_i32, %c0_i32_0 : i32, i32
  }
}

module attributes {stable_mosaic.version = 11 : i64} {
  func.func @_bn_relu_res_kernel(%arg0: i32, %arg1: memref<256x128xf32, #tpu.memory_space<vmem>>, %arg2: memref<2x128xf32, #tpu.memory_space<vmem>>, %arg3: memref<1x128xf32, #tpu.memory_space<vmem>>, %arg4: memref<1x128xf32, #tpu.memory_space<vmem>>, %arg5: memref<256x128xf32, #tpu.memory_space<vmem>>, %arg6: memref<256x128xf32, #tpu.memory_space<vmem>>) attributes {dimension_semantics = [#tpu.dimension_semantics<parallel>], iteration_bounds = array<i64: 4>, scalar_prefetch = 0 : i64, scratch_operands = 0 : i64, tpu.core_type = #tpu.core_type<tc>, window_params = [{transform_indices = @transform_0, window_bounds = array<i64: 256, 128>}, {pipeline_mode = #tpu.pipeline_mode<synchronous>, transform_indices = @transform_1, window_bounds = array<i64: 2, 128>}, {pipeline_mode = #tpu.pipeline_mode<synchronous>, transform_indices = @transform_2, window_bounds = array<i64: 1, 128>}, {pipeline_mode = #tpu.pipeline_mode<synchronous>, transform_indices = @transform_3, window_bounds = array<i64: 1, 128>}, {transform_indices = @transform_4, window_bounds = array<i64: 256, 128>}, {transform_indices = @transform_5, window_bounds = array<i64: 256, 128>}]} {
    %c0 = arith.constant 0 : index
    %c0_0 = arith.constant 0 : index
    %0 = vector.load %arg2[%c0, %c0_0] : memref<2x128xf32, #tpu.memory_space<vmem>>, vector<1x128xf32>
    %cst = arith.constant 9.765625E-4 : f32
    %1 = vector.broadcast %cst : f32 to vector<1x128xf32>
    %2 = arith.mulf %0, %1 : vector<1x128xf32>
    %c1 = arith.constant 1 : index
    %c0_1 = arith.constant 0 : index
    %3 = vector.load %arg2[%c1, %c0_1] : memref<2x128xf32, #tpu.memory_space<vmem>>, vector<1x128xf32>
    %cst_2 = arith.constant 9.765625E-4 : f32
    %4 = vector.broadcast %cst_2 : f32 to vector<1x128xf32>
    %5 = arith.mulf %3, %4 : vector<1x128xf32>
    %6 = arith.mulf %2, %2 : vector<1x128xf32>
    %7 = arith.subf %5, %6 : vector<1x128xf32>
    %cst_3 = arith.constant 0.000000e+00 : f32
    %8 = vector.broadcast %cst_3 : f32 to vector<1x128xf32>
    %9 = arith.maximumf %7, %8 : vector<1x128xf32>
    %cst_4 = arith.constant 9.99999974E-6 : f32
    %10 = vector.broadcast %cst_4 : f32 to vector<1x128xf32>
    %11 = arith.addf %9, %10 : vector<1x128xf32>
    %12 = math.rsqrt %11 : vector<1x128xf32>
    %c0_5 = arith.constant 0 : index
    %c0_6 = arith.constant 0 : index
    %13 = vector.load %arg3[%c0_5, %c0_6] : memref<1x128xf32, #tpu.memory_space<vmem>>, vector<1x128xf32>
    %14 = arith.mulf %12, %13 : vector<1x128xf32>
    %c0_7 = arith.constant 0 : index
    %c0_8 = arith.constant 0 : index
    %15 = vector.load %arg4[%c0_7, %c0_8] : memref<1x128xf32, #tpu.memory_space<vmem>>, vector<1x128xf32>
    %16 = arith.mulf %2, %14 : vector<1x128xf32>
    %17 = arith.subf %15, %16 : vector<1x128xf32>
    %c0_9 = arith.constant 0 : index
    %c0_10 = arith.constant 0 : index
    %18 = vector.load %arg1[%c0_9, %c0_10] : memref<256x128xf32, #tpu.memory_space<vmem>>, vector<256x128xf32>
    %19 = vector.broadcast %14 : vector<1x128xf32> to vector<256x128xf32>
    %20 = arith.mulf %18, %19 : vector<256x128xf32>
    %21 = vector.broadcast %17 : vector<1x128xf32> to vector<256x128xf32>
    %22 = arith.addf %20, %21 : vector<256x128xf32>
    %c0_11 = arith.constant 0 : index
    %c0_12 = arith.constant 0 : index
    %23 = vector.load %arg5[%c0_11, %c0_12] : memref<256x128xf32, #tpu.memory_space<vmem>>, vector<256x128xf32>
    %24 = arith.addf %22, %23 : vector<256x128xf32>
    %cst_13 = arith.constant 0.000000e+00 : f32
    %25 = vector.broadcast %cst_13 : f32 to vector<256x128xf32>
    %26 = arith.maximumf %24, %25 : vector<256x128xf32>
    %c0_14 = arith.constant 0 : index
    %c0_15 = arith.constant 0 : index
    %27 = vector.load %arg6[%c0_14, %c0_15] : memref<256x128xf32, #tpu.memory_space<vmem>>, vector<256x128xf32>
    tpu.vector_store %arg6[%c0_14, %c0_15], %26 {strides = array<i32>} : memref<256x128xf32, #tpu.memory_space<vmem>>, vector<256x128xf32>,
    return
  }
  func.func @transform_0(%arg0: i32) -> (i32, i32) {
    %c0_i32 = arith.constant 0 : i32
    %c0_i32_0 = arith.constant 0 : i32
    return %arg0, %c0_i32 : i32, i32
  }
  func.func @transform_1(%arg0: i32) -> (i32, i32) {
    %c0_i32 = arith.constant 0 : i32
    %c0_i32_0 = arith.constant 0 : i32
    %c0_i32_1 = arith.constant 0 : i32
    return %c0_i32, %c0_i32_0 : i32, i32
  }
  func.func @transform_2(%arg0: i32) -> (i32, i32) {
    %c0_i32 = arith.constant 0 : i32
    %c0_i32_0 = arith.constant 0 : i32
    %c0_i32_1 = arith.constant 0 : i32
    return %c0_i32, %c0_i32_0 : i32, i32
  }
  func.func @transform_3(%arg0: i32) -> (i32, i32) {
    %c0_i32 = arith.constant 0 : i32
    %c0_i32_0 = arith.constant 0 : i32
    %c0_i32_1 = arith.constant 0 : i32
    return %c0_i32, %c0_i32_0 : i32, i32
  }
  func.func @transform_4(%arg0: i32) -> (i32, i32) {
    %c0_i32 = arith.constant 0 : i32
    %c0_i32_0 = arith.constant 0 : i32
    return %arg0, %c0_i32 : i32, i32
  }
  func.func @transform_5(%arg0: i32) -> (i32, i32) {
    %c0_i32 = arith.constant 0 : i32
    %c0_i32_0 = arith.constant 0 : i32
    return %arg0, %c0_i32 : i32, i32
  }
}

</mosaic_0001>

<bundles_post_ra>
// kernel: bottleneck_forward.7
= control target key start
LH: loop header
LB: loop body
LE: loop exit
PB: predicated region body
PF: predicated region fallthrough
CT: control target
= control target key end

     0   :  { %s782_s15 = smov 0   ;;  %s935_s0 = inlined_call_operand.vmem [shape: f32[1024,128], index: 0, kind: input, shape index: {}]   ;;  %s936_s1 = inlined_call_operand.vmem [shape: f32[2,128], index: 1, kind: input, shape index: {}]   ;;  %s937_s2 = inlined_call_operand.vmem [shape: f32[1,128], index: 2, kind: input, shape index: {}]   ;;  %s938_s3 = inlined_call_operand.vmem [shape: f32[1,128], index: 3, kind: input, shape index: {}]   ;;  %s939_s4 = inlined_call_operand.vmem [shape: bf16[1024,128], index: 4, kind: output, shape index: {}]  }
   0x1 LB: > { %s569_s16 = sadd.s32 4294967295, %s755_s15   ;;  %p573_p0 = scmp.ge.s32.totalorder %s755_s15, 1  ;;  %s755_s15 = sphi %s782_s15, %s14_s15  }
   0x2   : > { %p163_p1 = scmp.lt.s32.totalorder %s755_s15, 5 }
   0x4   : > { %p164_p2 = pnand %p573_p0, %p163_p1 }
   0x5   : > { %s574_s21 = sshll.u32 (!%p164_p2), %s569_s16, 5 }
   0x6   : > { %167 = sbr.rel (%p164_p2) target bundleno = 74 (0x4a), region = 36  ;;  %p190_p3 = scmp.lt.s32.totalorder (!%p164_p2), %s574_s21, 127 }
   0xb   : > { %v201_v0 = vld [vmem:[%s936_s1] sm:$0x1]  ;;  %v203_v1 = vld [vmem:[%s936_s1 + $0x1] sm:$0x1]  ;;  %s941_s21 = smov (!%p190_p3, %s574_s21), 127  ;;  %v247_v8 = vlaneseq }
   0xc   : > { %v202_v2 = vmul.f32 0.0009765625, %v201_v0  ;;  %v204_v3 = vmul.f32 0.0009765625, %v203_v1  ;;  %s575_s22 = sshll.u32 %s941_s21, 3  ;;  %v210_v10 = vld [vmem:[%s937_s2] sm:$0x1]  ;;  %s577_s30 = sshll.u32 %s941_s21, 2 }
   0xd   : > { %v248_v9 = vshrl.u32 %v247_v8, 7  ;;  %s802_s25 = scalar_lea.vmem %s935_s0, %s575_s22  ;;  %v212_v14 = vld [vmem:[%s938_s3] sm:$0x1]  ;;  %s854_s7 = scalar_lea.vmem %s939_s4, %s577_s30 }
   0xe   : > { %v205_v4 = vmul.f32 %v202_v2, %v202_v2  ;;  %v215_v15 = vld [vmem:[%s802_s25] sm:$0xff]  ;;  %v216_v16 = vld [vmem:[%s802_s25 + $0x8] sm:$0xff]  ;;  %v217_v17 = vld [vmem:[%s802_s25 + $0x10] sm:$0xff] }
   0xf   : > { %v249_v11 = vsub.s32 0, %v248_v9  ;;  %v218_v18 = vld [vmem:[%s802_s25 + $0x18] sm:$0xff]  ;;  %v219_v19 = vld [vmem:[%s802_s25 + $0x20] sm:$0xff]  ;;  %v220_v22 = vld [vmem:[%s802_s25 + $0x28] sm:$0xff] }
  0x10   : > { %v206_v5 = vsub.f32 %v204_v3, %v205_v4  ;;  %v221_v23 = vld [vmem:[%s802_s25 + $0x30] sm:$0xff]  ;;  %v222_v24 = vld [vmem:[%s802_s25 + $0x38] sm:$0xff]  ;;  %v223_v25 = vld [vmem:[%s802_s25 + $0x40] sm:$0xff] }
  0x11   : > { %v224_v26 = vld [vmem:[%s802_s25 + $0x48] sm:$0xff]  ;;  %v225_v27 = vld [vmem:[%s802_s25 + $0x50] sm:$0xff]  ;;  %v226_v32 = vld [vmem:[%s802_s25 + $0x58] sm:$0xff] }
  0x12   : > { %v207_v6 = vmax.f32 %v206_v5, 0.0  ;;  %v227_v33 = vld [vmem:[%s802_s25 + $0x60] sm:$0xff]  ;;  %v228_v34 = vld [vmem:[%s802_s25 + $0x68] sm:$0xff]  ;;  %v229_v3 = vld [vmem:[%s802_s25 + $0x70] sm:$0xff] }
  0x13   : > { %v230_v4 = vld [vmem:[%s802_s25 + $0x78] sm:$0xff]  ;;  %v231_v9 = vld [vmem:[%s802_s25 + $0x80] sm:$0xff] }
  0x14   : > { %v208_v7 = vadd.f32 1e-05, %v207_v6 }
  0x16   : > { %747 = vrsqrt.f32 %v208_v7 }
  0x23   : > { %v748_v12 = vpop.eup %747 }
  0x24   : > { %v211_v13 = vmul.f32 %v748_v12, %v210_v10 }
  0x26   : > { %v213_v20 = vmul.f32 %v211_v13, %v202_v2  ;;  %v815_v21 = vrot.slane %v211_v13, %v249_v11 }
  0x28   : > { %v214_v28 = vsub.f32 %v212_v14, %v213_v20  ;;  %v251_v29 = vmul.f32 %v815_v21, %v215_v15  ;;  %v252_v30 = vmul.f32 %v815_v21, %v216_v16  ;;  %v253_v31 = vmul.f32 %v815_v21, %v217_v17  ;;  %v232_v14 = vld [vmem:[%s802_s25 + $0x88] sm:$0xff]  ;;  %v234_v20 = vld [vmem:[%s802_s25 + $0x98] sm:$0xff] }
  0x29   : > { %v254_v35 = vmul.f32 %v815_v21, %v218_v18  ;;  %v255_v36 = vmul.f32 %v815_v21, %v219_v19  ;;  %v256_v37 = vmul.f32 %v815_v21, %v220_v22  ;;  %v257_v38 = vmul.f32 %v815_v21, %v221_v23  ;;  %v233_v19 = vld [vmem:[%s802_s25 + $0x90] sm:$0xff] }
  0x2a   : > { %v833_v39 = vrot.slane %v214_v28, %v249_v11  ;;  %v258_v40 = vmul.f32 %v815_v21, %v222_v24  ;;  %v259_v41 = vmul.f32 %v815_v21, %v223_v25  ;;  %v260_v42 = vmul.f32 %v815_v21, %v224_v26  ;;  %v235_v26 = vld [vmem:[%s802_s25 + $0xa0] sm:$0xff] }
  0x2b   : > { %v261_v43 = vmul.f32 %v815_v21, %v225_v27  ;;  %v262_v44 = vmul.f32 %v815_v21, %v226_v32  ;;  %v263_v45 = vmul.f32 %v815_v21, %v227_v33  ;;  %v264_v46 = vmul.f32 %v815_v21, %v228_v34 }
  0x2c   : > { %v289_v47 = vadd.f32 %v833_v39, %v251_v29  ;;  %v290_v48 = vadd.f32 %v833_v39, %v252_v30  ;;  %v291_v49 = vadd.f32 %v833_v39, %v253_v31  ;;  %v292_v50 = vadd.f32 %v833_v39, %v254_v35  ;;  %v236_v31 = vld [vmem:[%s802_s25 + $0xa8] sm:$0xff] }
  0x2d   : > { %v293_v51 = vadd.f32 %v833_v39, %v255_v36  ;;  %v294_v52 = vadd.f32 %v833_v39, %v256_v37  ;;  %v295_v53 = vadd.f32 %v833_v39, %v257_v38  ;;  %v296_v54 = vadd.f32 %v833_v39, %v258_v40  ;;  %v237_v36 = vld [vmem:[%s802_s25 + $0xb0] sm:$0xff] }
  0x2e   : > { %v321_v55 = vmax.f32 %v289_v47, 0.0  ;;  %v322_v56 = vmax.f32 %v290_v48, 0.0  ;;  %v323_v57 = vmax.f32 %v291_v49, 0.0  ;;  %v324_v58 = vmax.f32 %v292_v50, 0.0  ;;  %v239_v47 = vld [vmem:[%s802_s25 + $0xc0] sm:$0xff] }
  0x2f   : > { %v325_v59 = vmax.f32 %v293_v51, 0.0  ;;  %v326_v60 = vmax.f32 %v294_v52, 0.0  ;;  %v327_v61 = vmax.f32 %v295_v53, 0.0  ;;  %v328_v62 = vmax.f32 %v296_v54, 0.0  ;;  %v240_v52 = vld [vmem:[%s802_s25 + $0xc8] sm:$0xff] }
  0x30   : > { %v647_v63 = vpack.c.bf16 %v322_v56, %v321_v55  ;;  %v652_v0 = vpack.c.bf16 %v324_v58, %v323_v57  ;;  %v297_v1 = vadd.f32 %v833_v39, %v259_v41  ;;  %v298_v2 = vadd.f32 %v833_v39, %v260_v42  ;;  %v238_v42 = vld [vmem:[%s802_s25 + $0xb8] sm:$0xff]  ;;  %v241_v57 = vld [vmem:[%s802_s25 + $0xd0] sm:$0xff] }
  0x31   : > { %v657_v5 = vpack.c.bf16 %v326_v60, %v325_v59  ;;  %v662_v6 = vpack.c.bf16 %v328_v62, %v327_v61  ;;  %v299_v7 = vadd.f32 %v833_v39, %v261_v43  ;;  %v300_v8 = vadd.f32 %v833_v39, %v262_v44  ;;  %v242_v58 = vld [vmem:[%s802_s25 + $0xd8] sm:$0xff] }
  0x32   : > { %648 = vst [vmem:[%s854_s7] sm:$0xff] %v647_v63   ;;  %724 = vst [vmem:[%s854_s7 + $0x8] sm:$0xff] %v652_v0   ;;  %v329_v10 = vmax.f32 %v297_v1, 0.0  ;;  %v330_v11 = vmax.f32 %v298_v2, 0.0  ;;  %v301_v12 = vadd.f32 %v833_v39, %v263_v45  ;;  %v302_v13 = vadd.f32 %v833_v39, %v264_v46  ;;  %v243_v63 = vld [vmem:[%s802_s25 + $0xe0] sm:$0xff] }
  0x33   : > { %725 = vst [vmem:[%s854_s7 + $0x10] sm:$0xff] %v657_v5   ;;  %726 = vst [vmem:[%s854_s7 + $0x18] sm:$0xff] %v662_v6   ;;  %v331_v15 = vmax.f32 %v299_v7, 0.0  ;;  %v332_v16 = vmax.f32 %v300_v8, 0.0  ;;  %v265_v17 = vmul.f32 %v815_v21, %v229_v3  ;;  %v266_v18 = vmul.f32 %v815_v21, %v230_v4  ;;  %v244_v4 = vld [vmem:[%s802_s25 + $0xe8] sm:$0xff] }
  0x34   : > { %v667_v22 = vpack.c.bf16 %v330_v11, %v329_v10  ;;  %v333_v23 = vmax.f32 %v301_v12, 0.0  ;;  %v334_v24 = vmax.f32 %v302_v13, 0.0  ;;  %v267_v25 = vmul.f32 %v815_v21, %v231_v9  ;;  %v245_v9 = vld [vmem:[%s802_s25 + $0xf0] sm:$0xff] }
  0x35   : > { %v672_v27 = vpack.c.bf16 %v332_v16, %v331_v15  ;;  %v303_v28 = vadd.f32 %v833_v39, %v265_v17  ;;  %v304_v29 = vadd.f32 %v833_v39, %v266_v18  ;;  %v268_v30 = vmul.f32 %v815_v21, %v232_v14  ;;  %v246_v14 = vld [vmem:[%s802_s25 + $0xf8] sm:$0xff] }
  0x36   : > { %727 = vst [vmem:[%s854_s7 + $0x20] sm:$0xff] %v667_v22   ;;  %v677_v32 = vpack.c.bf16 %v334_v24, %v333_v23  ;;  %v305_v33 = vadd.f32 %v833_v39, %v267_v25  ;;  %v269_v34 = vmul.f32 %v815_v21, %v233_v19  ;;  %v270_v35 = vmul.f32 %v815_v21, %v234_v20 }
  0x37   : > { %728 = vst [vmem:[%s854_s7 + $0x28] sm:$0xff] %v672_v27   ;;  %v335_v37 = vmax.f32 %v303_v28, 0.0  ;;  %v336_v38 = vmax.f32 %v304_v29, 0.0  ;;  %v306_v40 = vadd.f32 %v833_v39, %v268_v30  ;;  %v271_v41 = vmul.f32 %v815_v21, %v235_v26 }
  0x38   : > { %729 = vst [vmem:[%s854_s7 + $0x30] sm:$0xff] %v677_v32   ;;  %v337_v43 = vmax.f32 %v305_v33, 0.0  ;;  %v307_v44 = vadd.f32 %v833_v39, %v269_v34  ;;  %v308_v45 = vadd.f32 %v833_v39, %v270_v35  ;;  %v272_v46 = vmul.f32 %v815_v21, %v236_v31 }
  0x39   : > { %v682_v48 = vpack.c.bf16 %v336_v38, %v335_v37  ;;  %v338_v49 = vmax.f32 %v306_v40, 0.0  ;;  %v309_v50 = vadd.f32 %v833_v39, %v271_v41  ;;  %v273_v51 = vmul.f32 %v815_v21, %v237_v36 }
  0x3a   : > { %v339_v53 = vmax.f32 %v307_v44, 0.0  ;;  %v340_v54 = vmax.f32 %v308_v45, 0.0  ;;  %v310_v55 = vadd.f32 %v833_v39, %v272_v46  ;;  %v274_v56 = vmul.f32 %v815_v21, %v238_v42 }
  0x3b   : > { %730 = vst [vmem:[%s854_s7 + $0x38] sm:$0xff] %v682_v48   ;;  %v687_v59 = vpack.c.bf16 %v338_v49, %v337_v43  ;;  %v341_v60 = vmax.f32 %v309_v50, 0.0  ;;  %v311_v61 = vadd.f32 %v833_v39, %v273_v51  ;;  %v275_v62 = vmul.f32 %v815_v21, %v239_v47 }
  0x3c   : > { %v692_v0 = vpack.c.bf16 %v340_v54, %v339_v53  ;;  %v342_v1 = vmax.f32 %v310_v55, 0.0  ;;  %v312_v2 = vadd.f32 %v833_v39, %v274_v56  ;;  %v276_v3 = vmul.f32 %v815_v21, %v240_v52 }
  0x3d   : > { %731 = vst [vmem:[%s854_s7 + $0x40] sm:$0xff] %v687_v59   ;;  %v343_v5 = vmax.f32 %v311_v61, 0.0  ;;  %v313_v6 = vadd.f32 %v833_v39, %v275_v62  ;;  %v277_v7 = vmul.f32 %v815_v21, %v241_v57  ;;  %v278_v8 = vmul.f32 %v815_v21, %v242_v58 }
  0x3e   : > { %732 = vst [vmem:[%s854_s7 + $0x48] sm:$0xff] %v692_v0   ;;  %v697_v10 = vpack.c.bf16 %v342_v1, %v341_v60  ;;  %v344_v11 = vmax.f32 %v312_v2, 0.0  ;;  %v314_v12 = vadd.f32 %v833_v39, %v276_v3  ;;  %v279_v13 = vmul.f32 %v815_v21, %v243_v63 }
  0x3f   : > { %v345_v15 = vmax.f32 %v313_v6, 0.0  ;;  %v315_v16 = vadd.f32 %v833_v39, %v277_v7  ;;  %v316_v17 = vadd.f32 %v833_v39, %v278_v8  ;;  %v280_v18 = vmul.f32 %v815_v21, %v244_v4 }
  0x40   : > { %733 = vst [vmem:[%s854_s7 + $0x50] sm:$0xff] %v697_v10   ;;  %v702_v19 = vpack.c.bf16 %v344_v11, %v343_v5  ;;  %v346_v20 = vmax.f32 %v314_v12, 0.0  ;;  %v317_v22 = vadd.f32 %v833_v39, %v279_v13  ;;  %v281_v23 = vmul.f32 %v815_v21, %v245_v9 }
  0x41   : > { %v347_v24 = vmax.f32 %v315_v16, 0.0  ;;  %v348_v25 = vmax.f32 %v316_v17, 0.0  ;;  %v318_v26 = vadd.f32 %v833_v39, %v280_v18  ;;  %v282_v27 = vmul.f32 %v815_v21, %v246_v14 }
  0x42   : > { %734 = vst [vmem:[%s854_s7 + $0x58] sm:$0xff] %v702_v19   ;;  %v707_v28 = vpack.c.bf16 %v346_v20, %v345_v15  ;;  %v349_v29 = vmax.f32 %v317_v22, 0.0  ;;  %v319_v30 = vadd.f32 %v833_v39, %v281_v23 }
  0x43   : > { %v712_v31 = vpack.c.bf16 %v348_v25, %v347_v24  ;;  %v350_v32 = vmax.f32 %v318_v26, 0.0  ;;  %v320_v33 = vadd.f32 %v833_v39, %v282_v27 }
  0x44   : > { %735 = vst [vmem:[%s854_s7 + $0x60] sm:$0xff] %v707_v28   ;;  %v351_v34 = vmax.f32 %v319_v30, 0.0 }
  0x45   : > { %736 = vst [vmem:[%s854_s7 + $0x68] sm:$0xff] %v712_v31   ;;  %v717_v35 = vpack.c.bf16 %v350_v32, %v349_v29  ;;  %v352_v36 = vmax.f32 %v320_v33, 0.0 }
  0x47   : > { %737 = vst [vmem:[%s854_s7 + $0x70] sm:$0xff] %v717_v35   ;;  %v722_v37 = vpack.c.bf16 %v352_v36, %v351_v34 }
  0x49   : > { %738 = vst [vmem:[%s854_s7 + $0x78] sm:$0xff] %v722_v37  }
  0x4a PF: > { %s14_s15 = sadd.s32 1, %s755_s15  }
  0x4b   : > { %p11_p4 = scmp.ge.s32.totalorder %s14_s15, 6  }
  0x4d   :  { %13 = sbr.rel (!%p11_p4) target bundleno = 1 (0x1), region = 66 }

// kernel: bottleneck_forward.6
= control target key start
LH: loop header
LB: loop body
LE: loop exit
PB: predicated region body
PF: predicated region fallthrough
CT: control target
= control target key end

     0   :  { %s923_s12 = smov 0   ;;  %s1171_s0 = inlined_call_operand.vmem [shape: bf16[1024,128], index: 0, kind: input, shape index: {}]   ;;  %s1172_s1 = inlined_call_operand.vmem [shape: bf16[128,128], index: 1, kind: input, shape index: {}]   ;;  %s1173_s2 = inlined_call_operand.vmem [shape: f32[1024,128], index: 2, kind: output, shape index: {0}]   ;;  %s1174_s3 = inlined_call_operand.vmem [shape: f32[2,128], index: 3, kind: output, shape index: {1}]  }
   0x1 LB: > { %s737_s13 = sadd.s32 4294967295, %s900_s12   ;;  %p741_p0 = scmp.ge.s32.totalorder %s900_s12, 1  ;;  %s900_s12 = sphi %s923_s12, %s14_s12  }
   0x2   : > { %p136_p1 = scmp.lt.s32.totalorder %s900_s12, 5 }
   0x4   : > { %p137_p2 = pnand %p741_p0, %p136_p1 }
   0x5   : > { %s742_s16 = sshll.u32 (!%p137_p2), %s737_s13, 5  ;;  %p770_p4 = scmp.ne.s32.totalorder (!%p137_p2), %s737_s13, 0 }
   0x6   : > { %140 = sbr.rel (%p137_p2) target bundleno = 349 (0x15d), region = 28  ;;  %p161_p3 = scmp.lt.s32.totalorder (!%p137_p2), %s742_s16, 127 }
   0xb   : > { %v870_v0 = vld [vmem:[%s1172_s1 + $0x38] sm:$0xff]   ;;  %v871_v1 = vld [vmem:[%s1172_s1 + $0x30] sm:$0xff]   ;;  %s1176_s16 = smov (!%p161_p3, %s742_s16), 127  ;;  %v872_v2 = vld [vmem:[%s1172_s1 + $0x28] sm:$0xff]  }
   0xc   : > { %797 = vmatprep.subr.bf16.mxu0 %v870_v0  ;;  %845 = vmatprep.subr.bf16.mxu1 %v870_v0  ;;  %s743_s21 = sshll.u32 %s1176_s16, 2  ;;  %v873_v3 = vld [vmem:[%s1172_s1 + $0x20] sm:$0xff]   ;;  %v874_v6 = vld [vmem:[%s1172_s1 + $0x18] sm:$0xff]   ;;  %v875_v7 = vld [vmem:[%s1172_s1 + $0x10] sm:$0xff]   ;;  %s745_s8 = sshll.u32 %s1176_s16, 3 }
   0xd   : > { %798 = vmatpush3.bf16.msra.mxu0 %v870_v0  ;;  %853 = vmatpush3.bf16.msra.mxu1 %v870_v0  ;;  %s948_s24 = scalar_lea.vmem %s1171_s0, %s743_s21  ;;  %v876_v8 = vld [vmem:[%s1172_s1 + $0x8] sm:$0xff]   ;;  %v877_v9 = vld [vmem:[%s1172_s1] sm:$0xff]   ;;  %s985_s11 = scalar_lea.vmem %s1173_s2, %s745_s8 }
   0xe   : > { %799 = vmatprep.subr.bf16.mxu0 %v871_v1  ;;  %846 = vmatprep.subr.bf16.mxu1 %v871_v1  ;;  %v878_v4 = vld [vmem:[%s948_s24] sm:$0xff]   ;;  %v880_v10 = vld [vmem:[%s948_s24 + $0x8] sm:$0xff]   ;;  %v882_v12 = vld [vmem:[%s948_s24 + $0x10] sm:$0xff]  }
   0xf   : > { %v879_v5 = vld [vmem:[%s948_s24 + $0x40] sm:$0xff]   ;;  %813 = vmatprep.mubr.bf16.mxu0 %v878_v4  ;;  %v881_v11 = vld [vmem:[%s948_s24 + $0x48] sm:$0xff]   ;;  %v883_v13 = vld [vmem:[%s948_s24 + $0x50] sm:$0xff]  }
  0x10   : > { %829 = vmatprep.mubr.bf16.mxu1 %v879_v5  ;;  %v884_v14 = vld [vmem:[%s948_s24 + $0x18] sm:$0xff]   ;;  %v886_v16 = vld [vmem:[%s948_s24 + $0x20] sm:$0xff]   ;;  %v888_v18 = vld [vmem:[%s948_s24 + $0x28] sm:$0xff]  }
  0x11   : > { %800 = vmatpush3.bf16.msra.mxu0 %v871_v1  ;;  %854 = vmatpush3.bf16.msra.mxu1 %v871_v1  ;;  %v885_v15 = vld [vmem:[%s948_s24 + $0x58] sm:$0xff]   ;;  %v887_v17 = vld [vmem:[%s948_s24 + $0x60] sm:$0xff]   ;;  %v889_v19 = vld [vmem:[%s948_s24 + $0x68] sm:$0xff]  }
  0x12   : > { %801 = vmatprep.subr.bf16.mxu0 %v872_v2  ;;  %847 = vmatprep.subr.bf16.mxu1 %v872_v2  ;;  %v890_v20 = vld [vmem:[%s948_s24 + $0x30] sm:$0xff]   ;;  %v892_v22 = vld [vmem:[%s948_s24 + $0x38] sm:$0xff]  }
  0x13   : > { %v891_v21 = vld [vmem:[%s948_s24 + $0x70] sm:$0xff]   ;;  %v893_v23 = vld [vmem:[%s948_s24 + $0x78] sm:$0xff]  }
  0x15   : > { %802 = vmatpush3.bf16.msra.mxu0 %v872_v2  ;;  %855 = vmatpush3.bf16.msra.mxu1 %v872_v2 }
  0x16   : > { %803 = vmatprep.subr.bf16.mxu0 %v873_v3  ;;  %848 = vmatprep.subr.bf16.mxu1 %v873_v3 }
  0x19   : > { %804 = vmatpush3.bf16.msra.mxu0 %v873_v3  ;;  %856 = vmatpush3.bf16.msra.mxu1 %v873_v3 }
  0x1a   : > { %805 = vmatprep.subr.bf16.mxu0 %v874_v6  ;;  %849 = vmatprep.subr.bf16.mxu1 %v874_v6 }
  0x1d   : > { %806 = vmatpush3.bf16.msra.mxu0 %v874_v6  ;;  %857 = vmatpush3.bf16.msra.mxu1 %v874_v6 }
  0x1e   : > { %807 = vmatprep.subr.bf16.mxu0 %v875_v7  ;;  %850 = vmatprep.subr.bf16.mxu1 %v875_v7 }
  0x21   : > { %808 = vmatpush3.bf16.msra.mxu0 %v875_v7  ;;  %858 = vmatpush3.bf16.msra.mxu1 %v875_v7 }
  0x22   : > { %809 = vmatprep.subr.bf16.mxu0 %v876_v8  ;;  %851 = vmatprep.subr.bf16.mxu1 %v876_v8 }
  0x25   : > { %810 = vmatpush3.bf16.msra.mxu0 %v876_v8  ;;  %859 = vmatpush3.bf16.msra.mxu1 %v876_v8 }
  0x26   : > { %811 = vmatprep.subr.bf16.mxu0 %v877_v9  ;;  %852 = vmatprep.subr.bf16.mxu1 %v877_v9 }
  0x29   : > { %812 = vmatpush3.bf16.msra.mxu0 %v877_v9  ;;  %860 = vmatpush3.bf16.msra.mxu1 %v877_v9 }
  0x2c   : > { %814 = vmatmul.mubr.bf16.vlgmr.msra.gmra.mxu0 %v880_v10  ;;  %830 = vmatmul.mubr.bf16.vlgmr.msra.gmra.mxu1 %v881_v11 }
  0x2d   : > { %817 = vmatprep.mubr.bf16.mxu0 %v882_v12  ;;  %833 = vmatprep.mubr.bf16.mxu1 %v883_v13 }
  0x34   : > { %818 = vmatmul.mubr.bf16.gmra.mxu0 %v884_v14  ;;  %834 = vmatmul.mubr.bf16.gmra.mxu1 %v885_v15 }
  0x35   : > { %821 = vmatprep.mubr.bf16.mxu0 %v886_v16  ;;  %837 = vmatprep.mubr.bf16.mxu1 %v887_v17 }
  0x3c   : > { %822 = vmatmul.mubr.bf16.gmra.mxu0 %v888_v18  ;;  %838 = vmatmul.mubr.bf16.gmra.mxu1 %v889_v19 }
  0x3d   : > { %825 = vmatprep.mubr.bf16.mxu0 %v890_v20  ;;  %841 = vmatprep.mubr.bf16.mxu1 %v891_v21 }
  0x44   : > { %826 = vmatmul.mubr.bf16.gmra.mxu0 %v892_v22  ;;  %842 = vmatmul.mubr.bf16.gmra.mxu1 %v893_v23 }
  0xec   : > { %v987_v24 = vpop.f32.mrf.mxu0  ;;  %v989_v25 = vpop.f32.mrf.mxu1 }
  0xed   : > { %528 = vst [vmem:[%s985_s11 + $0x10] sm:$0xff] %v987_v24  ;;  %544 = vst [vmem:[%s985_s11 + $0x90] sm:$0xff] %v989_v25 }
  0xee   : > { %v995_v26 = vpop.f32.mrf.mxu0  ;;  %v997_v27 = vpop.f32.mrf.mxu1 }
  0xef   : > { %526 = vst [vmem:[%s985_s11] sm:$0xff] %v995_v26  ;;  %542 = vst [vmem:[%s985_s11 + $0x80] sm:$0xff] %v997_v27 }
  0xf0   : > { %v1003_v28 = vpop.f32.mrf.mxu0  ;;  %v1005_v29 = vpop.f32.mrf.mxu1 }
  0xf1   : > { %529 = vst [vmem:[%s985_s11 + $0x18] sm:$0xff] %v1003_v28  ;;  %545 = vst [vmem:[%s985_s11 + $0x98] sm:$0xff] %v1005_v29 }
  0xf2   : > { %v402_v30 = vpop.f32.mrf.mxu0  ;;  %v1011_v31 = vpop.f32.mrf.mxu1 }
  0xf3   : > { %527 = vst [vmem:[%s985_s11 + $0x8] sm:$0xff] %v402_v30  ;;  %543 = vst [vmem:[%s985_s11 + $0x88] sm:$0xff] %v1011_v31 }
  0xf4   : > { %v1016_v32 = vpop.f32.mrf.mxu0  ;;  %v1018_v33 = vpop.f32.mrf.mxu1 }
  0xf5   : > { %532 = vst [vmem:[%s985_s11 + $0x30] sm:$0xff] %v1016_v32  ;;  %548 = vst [vmem:[%s985_s11 + $0xb0] sm:$0xff] %v1018_v33 }
  0xf6   : > { %v415_v34 = vpop.f32.mrf.mxu0  ;;  %v1024_v35 = vpop.f32.mrf.mxu1 }
  0xf7   : > { %530 = vst [vmem:[%s985_s11 + $0x20] sm:$0xff] %v415_v34  ;;  %546 = vst [vmem:[%s985_s11 + $0xa0] sm:$0xff] %v1024_v35 }
  0xf8   : > { %v1029_v36 = vpop.f32.mrf.mxu0  ;;  %v1031_v37 = vpop.f32.mrf.mxu1 }
  0xf9   : > { %533 = vst [vmem:[%s985_s11 + $0x38] sm:$0xff] %v1029_v36  ;;  %549 = vst [vmem:[%s985_s11 + $0xb8] sm:$0xff] %v1031_v37 }
  0xfa   : > { %v418_v38 = vpop.f32.mrf.mxu0  ;;  %v1037_v39 = vpop.f32.mrf.mxu1 }
  0xfb   : > { %531 = vst [vmem:[%s985_s11 + $0x28] sm:$0xff] %v418_v38  ;;  %547 = vst [vmem:[%s985_s11 + $0xa8] sm:$0xff] %v1037_v39 }
  0xfc   : > { %v1042_v40 = vpop.f32.mrf.mxu0  ;;  %v1044_v41 = vpop.f32.mrf.mxu1 }
  0xfd   : > { %536 = vst [vmem:[%s985_s11 + $0x50] sm:$0xff] %v1042_v40  ;;  %552 = vst [vmem:[%s985_s11 + $0xd0] sm:$0xff] %v1044_v41 }
  0xfe   : > { %v431_v42 = vpop.f32.mrf.mxu0  ;;  %v1050_v43 = vpop.f32.mrf.mxu1 }
  0xff   : > { %534 = vst [vmem:[%s985_s11 + $0x40] sm:$0xff] %v431_v42  ;;  %550 = vst [vmem:[%s985_s11 + $0xc0] sm:$0xff] %v1050_v43 }
 0x100   : > { %v824_v44 = vpop.f32.mrf.mxu0  ;;  %v1055_v45 = vpop.f32.mrf.mxu1 }
 0x101   : > { %537 = vst [vmem:[%s985_s11 + $0x58] sm:$0xff] %v824_v44  ;;  %553 = vst [vmem:[%s985_s11 + $0xd8] sm:$0xff] %v1055_v45 }
 0x102   : > { %v434_v46 = vpop.f32.mrf.mxu0  ;;  %v1060_v47 = vpop.f32.mrf.mxu1 }
 0x103   : > { %535 = vst [vmem:[%s985_s11 + $0x48] sm:$0xff] %v434_v46  ;;  %551 = vst [vmem:[%s985_s11 + $0xc8] sm:$0xff] %v1060_v47 }
 0x104   : > { %v827_v48 = vpop.f32.mrf.mxu0  ;;  %v1065_v49 = vpop.f32.mrf.mxu1 }
 0x105   : > { %540 = vst [vmem:[%s985_s11 + $0x70] sm:$0xff] %v827_v48  ;;  %556 = vst [vmem:[%s985_s11 + $0xf0] sm:$0xff] %v1065_v49 }
 0x106   : > { %v447_v50 = vpop.f32.mrf.mxu0  ;;  %v1070_v51 = vpop.f32.mrf.mxu1 }
 0x107   : > { %538 = vst [vmem:[%s985_s11 + $0x60] sm:$0xff] %v447_v50  ;;  %554 = vst [vmem:[%s985_s11 + $0xe0] sm:$0xff] %v1070_v51  ;;  %561 = sbr.rel (%p770_p4) target bundleno = 270 (0x10e), region = 32 }
 0x108   : > { %v828_v52 = vpop.f32.mrf.mxu0  ;;  %v1075_v53 = vpop.f32.mrf.mxu1 }
 0x109   : > { %541 = vst [vmem:[%s985_s11 + $0x78] sm:$0xff] %v828_v52  ;;  %557 = vst [vmem:[%s985_s11 + $0xf8] sm:$0xff] %v1075_v53 }
 0x10a   : > { %v450_v54 = vpop.f32.mrf.mxu0  ;;  %v1080_v55 = vpop.f32.mrf.mxu1 }
 0x10b   : > { %539 = vst [vmem:[%s985_s11 + $0x68] sm:$0xff] %v450_v54  ;;  %555 = vst [vmem:[%s985_s11 + $0xe8] sm:$0xff] %v1080_v55 }
 0x10c   : > { %v902_v56 = vmov 0.0  }
 0x10d   : > { %562 = vst [vmem:[%s1174_s3] sm:$0x3] %v902_v56 }
 0x10e PF: > { %v564_v57 = vadd.f32 %v402_v30, %v995_v26  ;;  %v604_v60 = vmul.f32 %v995_v26, %v995_v26  ;;  %v605_v61 = vmul.f32 %v402_v30, %v402_v30  ;;  %v606_v63 = vmul.f32 %v987_v24, %v987_v24 }
 0x10f   : > { %v607_v1 = vmul.f32 %v1003_v28, %v1003_v28  ;;  %v608_v4 = vmul.f32 %v415_v34, %v415_v34  ;;  %v609_v7 = vmul.f32 %v418_v38, %v418_v38  ;;  %v610_v10 = vmul.f32 %v1016_v32, %v1016_v32 }
 0x110   : > { %v565_v58 = vadd.f32 %v987_v24, %v564_v57  ;;  %v636_v2 = vadd.f32 %v605_v61, %v604_v60  ;;  %v611_v13 = vmul.f32 %v1029_v36, %v1029_v36  ;;  %v612_v16 = vmul.f32 %v431_v42, %v431_v42 }
 0x111   : > { %v613_v19 = vmul.f32 %v434_v46, %v434_v46  ;;  %v614_v22 = vmul.f32 %v1042_v40, %v1042_v40  ;;  %v615_v26 = vmul.f32 %v824_v44, %v824_v44  ;;  %v618_v57 = vmul.f32 %v827_v48, %v827_v48 }
 0x112   : > { %v566_v59 = vadd.f32 %v1003_v28, %v565_v58  ;;  %v637_v5 = vadd.f32 %v636_v2, %v606_v63 }
 0x114   : > { %v567_v62 = vadd.f32 %v566_v59, %v415_v34  ;;  %v638_v8 = vadd.f32 %v637_v5, %v607_v1  ;;  %v619_v59 = vmul.f32 %v828_v52, %v828_v52  ;;  %v623_v1 = vmul.f32 %v1005_v29, %v1005_v29 }
 0x115   : > { %v625_v5 = vmul.f32 %v1037_v39, %v1037_v39 }
 0x116   : > { %v568_v0 = vadd.f32 %v567_v62, %v418_v38  ;;  %v639_v11 = vadd.f32 %v638_v8, %v608_v4  ;;  %v617_v38 = vmul.f32 %v450_v54, %v450_v54 }
 0x118   : > { %v569_v3 = vadd.f32 %v1016_v32, %v568_v0  ;;  %v640_v14 = vadd.f32 %v639_v11, %v609_v7  ;;  %v616_v32 = vmul.f32 %v447_v50, %v447_v50  ;;  %v626_v7 = vmul.f32 %v1018_v33, %v1018_v33 }
 0x119   : > { %v628_v11 = vmul.f32 %v1050_v43, %v1050_v43 }
 0x11a   : > { %v570_v6 = vadd.f32 %v1029_v36, %v569_v3  ;;  %v641_v17 = vadd.f32 %v640_v14, %v610_v10  ;;  %v624_v3 = vmul.f32 %v1024_v35, %v1024_v35 }
 0x11c   : > { %v571_v9 = vadd.f32 %v570_v6, %v431_v42  ;;  %v642_v20 = vadd.f32 %v641_v17, %v611_v13  ;;  %v629_v13 = vmul.f32 %v1060_v47, %v1060_v47  ;;  %v631_v17 = vmul.f32 %v1055_v45, %v1055_v45 }
 0x11e   : > { %v572_v12 = vadd.f32 %v571_v9, %v434_v46  ;;  %v643_v23 = vadd.f32 %v642_v20, %v612_v16  ;;  %v627_v9 = vmul.f32 %v1031_v37, %v1031_v37 }
 0x120   : > { %v573_v15 = vadd.f32 %v1042_v40, %v572_v12  ;;  %v644_v28 = vadd.f32 %v643_v23, %v613_v19  ;;  %v632_v19 = vmul.f32 %v1070_v51, %v1070_v51  ;;  %v634_v23 = vmul.f32 %v1065_v49, %v1065_v49 }
 0x122   : > { %v574_v18 = vadd.f32 %v824_v44, %v573_v15  ;;  %v645_v34 = vadd.f32 %v644_v28, %v614_v22  ;;  %v620_v44 = vmul.f32 %v997_v27, %v997_v27  ;;  %v630_v15 = vmul.f32 %v1044_v41, %v1044_v41 }
 0x124   : > { %v575_v21 = vadd.f32 %v574_v18, %v447_v50  ;;  %v646_v56 = vadd.f32 %v645_v34, %v615_v26 }
 0x126   : > { %v576_v24 = vadd.f32 %v575_v21, %v450_v54  ;;  %v647_v58 = vadd.f32 %v646_v56, %v616_v32  ;;  %v621_v54 = vmul.f32 %v1011_v31, %v1011_v31  ;;  %v633_v21 = vmul.f32 %v1080_v55, %v1080_v55 }
 0x128   : > { %v577_v30 = vadd.f32 %v827_v48, %v576_v24  ;;  %v648_v60 = vadd.f32 %v647_v58, %v617_v38  ;;  %v622_v48 = vmul.f32 %v989_v25, %v989_v25 }
 0x12a   : > { %v578_v36 = vadd.f32 %v828_v52, %v577_v30  ;;  %v649_v61 = vadd.f32 %v648_v60, %v618_v57 }
 0x12c   : > { %v579_v42 = vadd.f32 %v578_v36, %v997_v27  ;;  %v650_v62 = vadd.f32 %v649_v61, %v619_v59 }
 0x12e   : > { %v580_v46 = vadd.f32 %v579_v42, %v1011_v31  ;;  %v651_v0 = vadd.f32 %v650_v62, %v620_v44 }
 0x130   : > { %v581_v40 = vadd.f32 %v989_v25, %v580_v46  ;;  %v652_v2 = vadd.f32 %v651_v0, %v621_v54  ;;  %v603_v46 = vld [vmem:[%s1174_s3 + $0x1] sm:$0x1] }
 0x132   : > { %v582_v50 = vadd.f32 %v1005_v29, %v581_v40  ;;  %v653_v4 = vadd.f32 %v652_v2, %v622_v48 }
 0x134   : > { %v583_v63 = vadd.f32 %v582_v50, %v1024_v35  ;;  %v654_v6 = vadd.f32 %v653_v4, %v623_v1 }
 0x136   : > { %v584_v52 = vadd.f32 %v583_v63, %v1037_v39  ;;  %v655_v8 = vadd.f32 %v654_v6, %v624_v3 }
 0x138   : > { %v585_v27 = vadd.f32 %v1018_v33, %v584_v52  ;;  %v656_v10 = vadd.f32 %v655_v8, %v625_v5 }
 0x13a   : > { %v586_v31 = vadd.f32 %v1031_v37, %v585_v27  ;;  %v657_v12 = vadd.f32 %v656_v10, %v626_v7 }
 0x13c   : > { %v587_v25 = vadd.f32 %v586_v31, %v1050_v43  ;;  %v658_v14 = vadd.f32 %v657_v12, %v627_v9 }
 0x13e   : > { %v588_v29 = vadd.f32 %v587_v25, %v1060_v47  ;;  %v659_v16 = vadd.f32 %v658_v14, %v628_v11 }
 0x140   : > { %v589_v35 = vadd.f32 %v1044_v41, %v588_v29  ;;  %v660_v18 = vadd.f32 %v659_v16, %v629_v13 }
 0x142   : > { %v590_v39 = vadd.f32 %v1055_v45, %v589_v35  ;;  %v661_v20 = vadd.f32 %v660_v18, %v630_v15  ;;  %v635_v45 = vmul.f32 %v1075_v53, %v1075_v53 }
 0x144   : > { %v591_v33 = vadd.f32 %v590_v39, %v1070_v51  ;;  %v662_v22 = vadd.f32 %v661_v20, %v631_v17 }
 0x146   : > { %v592_v37 = vadd.f32 %v591_v33, %v1080_v55  ;;  %v663_v24 = vadd.f32 %v662_v22, %v632_v19  ;;  %v563_v55 = vld [vmem:[%s1174_s3] sm:$0x1] }
 0x148   : > { %v593_v43 = vadd.f32 %v1065_v49, %v592_v37  ;;  %v664_v28 = vadd.f32 %v663_v24, %v633_v21 }
 0x14a   : > { %v594_v47 = vadd.f32 %v1075_v53, %v593_v43  ;;  %v665_v32 = vadd.f32 %v664_v28, %v634_v23 }
 0x14c   : > { %v595_v41 = vrot.slane %v594_v47, 4  ;;  %v666_v34 = vadd.f32 %v665_v32, %v635_v45 }
 0x14e   : > { %v596_v26 = vadd.f32 %v595_v41, %v594_v47  ;;  %v667_v38 = vrot.slane %v666_v34, 4 }
 0x150   : > { %v597_v30 = vrot.slane %v596_v26, 2  ;;  %v668_v42 = vadd.f32 %v667_v38, %v666_v34 }
 0x152   : > { %v598_v51 = vadd.f32 %v597_v30, %v596_v26  ;;  %v669_v49 = vrot.slane %v668_v42, 2 }
 0x154   : > { %v599_v36 = vrot.slane %v598_v51, 1  ;;  %v670_v53 = vadd.f32 %v669_v49, %v668_v42 }
 0x156   : > { %v600_v56 = vadd.f32 %v599_v36, %v598_v51  ;;  %v671_v58 = vrot.slane %v670_v53, 1 }
 0x158   : > { %v601_v57 = vadd.f32 %v600_v56, %v563_v55  ;;  %v672_v59 = vadd.f32 %v671_v58, %v670_v53 }
 0x15a   : > { %602 = vst [vmem:[%s1174_s3] sm:$0x1] %v601_v57  ;;  %v673_v60 = vadd.f32 %v672_v59, %v603_v46 }
 0x15c   : > { %674 = vst [vmem:[%s1174_s3 + $0x1] sm:$0x1] %v673_v60 }
 0x15d PF: > { %s14_s12 = sadd.s32 1, %s900_s12  }
 0x15e   : > { %p11_p5 = scmp.ge.s32.totalorder %s14_s12, 6  }
 0x160   :  { %13 = sbr.rel (!%p11_p5) target bundleno = 1 (0x1), region = 70 }

// kernel: bottleneck_forward.11
= control target key start
LH: loop header
LB: loop body
LE: loop exit
PB: predicated region body
PF: predicated region fallthrough
CT: control target
= control target key end

     0   :  { %10 = vsyncpa [#allocation3], 0  ;;  %s1031_s0 = inlined_call_operand.vmem [shape: f32[1024,128], index: 0, kind: input, shape index: {}]   ;;  %s1032_s1 = inlined_call_operand.vmem [shape: f32[2,128], index: 1, kind: input, shape index: {}]   ;;  %s1033_s2 = inlined_call_operand.vmem [shape: f32[1,128], index: 2, kind: input, shape index: {}]   ;;  %s1034_s3 = inlined_call_operand.vmem [shape: f32[1,128], index: 3, kind: input, shape index: {}]   ;;  %s1035_s4 = inlined_call_operand.vmem [shape: f32[1024,128], index: 4, kind: input, shape index: {}]   ;;  %s1036_s5 = inlined_call_operand.hbm [shape: f32[1024,128], index: 5, kind: output, shape index: {}]  }
   0x1   :  { %12 = vsyncpa [#allocation3 + $0x1], 0  ;;  %s737_s18 = smov 0   ;;  %s739_s19 = smov 0  }
   0x2   :  { %s741_s20 = smov 0   ;;  %s743_s21 = smov 0  }
   0x3 LB: > { %s758_s22 = sadd.s32 4294967295, %s702_s21   ;;  %s584_s23 = sadd.s32 4294967294, %s702_s21   ;;  %s702_s21 = sphi %s743_s21, %s1042_s21   ;;  %s698_s20 = sphi %s741_s20, %s1041_s20   ;;  %s694_s19 = sphi %s739_s19, %s1040_s19   ;;  %s690_s18 = sphi %s737_s18, %s1039_s18  }
   0x4   : > { %s762_s24 = sadd.s32 1, %s702_s21   ;;  %s140_s25 = sadd.s32 1, %s698_s20 }
   0x5   : > { %s137_s26 = ssub.s32 %s702_s21, %s762_s24  ;;  %p150_p0 = scmp.ne.s32.totalorder %s698_s20, %s694_s19 }
   0x6   : > { %p138_p1 = scmp.eq.s32.totalorder %s137_s26, 0  ;;  %p151_p2 = scmp.eq.s32.totalorder %s758_s22, 3 }
   0x7   : > { %p156_p3 = scmp.ne.s32.totalorder %s694_s19, %s690_s18  ;;  %p157_p4 = scmp.eq.s32.totalorder %s584_s23, 3 }
   0x8   : > { %s773_s27 = scalar_select %p138_p1, %s698_s20, %s140_s25  }
   0x9   : > { %p775_p5 = por %p151_p2, %p150_p0  ;;  %p779_p6 = por %p157_p4, %p156_p3 }
   0xa   : > { %p587_p7 = scmp.ge.s32.totalorder %s702_s21, 1  ;;  %p202_p8 = scmp.lt.s32.totalorder %s702_s21, 5 }
   0xc   : > { %p203_p9 = pnand %p587_p7, %p202_p8 }
   0xd   : > { %s589_s9 = sshll.u32 (!%p203_p9), %s758_s22, 5  ;;  %s232_s30 = sand.u32 (!%p203_p9), 1, %s694_s19  }
   0xe   : > { %206 = sbr.rel (%p203_p9) target bundleno = 100 (0x64), region = 40  ;;  %p236_p10 = scmp.lt.s32.totalorder (!%p203_p9), %s589_s9, 127 }
   0xf   : > { %s848_s6 = sshll.u32 (!%p203_p9), %s232_s30, 8  ;;  %s598_s8 = sshll.u32 (!%p203_p9), %s758_s22, 12 }
  0x10   : > { %s868_s7 = scalar_lea.vmem (!%p203_p9), [#allocation2], %s848_s6  ;;  %s981_s11 = scalar_lea.hbm (!%p203_p9), %s1036_s5, %s598_s8 }
  0x11   : > { %s991_s12 = scalar_lea.sflag (!%p203_p9), [#allocation3], %s232_s30  ;;  %s704_s14 = smov (!%p203_p9), [#allocation2]  }
  0x12   : > { %s646_s15 = sshll.u32 (!%p203_p9), %s704_s14, 4  ;;  %s647_s15 = int_to_ptr.vmem [resolvable:$false] %s646_s15 }
  0x13   : > { %v248_v0 = vld [vmem:[%s1032_s1] sm:$0x1]  ;;  %v250_v1 = vld [vmem:[%s1032_s1 + $0x1] sm:$0x1]  ;;  %s1044_s9 = smov (!%p236_p10, %s589_s9), 127  ;;  %v294_v8 = vlaneseq  ;;  %s648_s16 = scalar_lea.vmem %s647_s15, 8192 }
  0x14   : > { %v249_v2 = vmul.f32 0.0009765625, %v248_v0  ;;  %v251_v3 = vmul.f32 0.0009765625, %v250_v1  ;;  %s590_s10 = sshll.u32 %s1044_s9, 3  ;;  %v257_v10 = vld [vmem:[%s1033_s2] sm:$0x1]  ;;  %s510_s9 = sshll.u32 %s868_s7, 4  ;;  %s983_s9 = int_to_ptr.vmem [resolvable:$true] %s510_s9 }
  0x15   : > { %v295_v9 = vshrl.u32 %v294_v8, 7  ;;  %s795_s13 = scalar_lea.vmem %s1031_s0, %s590_s10  ;;  %v259_v14 = vld [vmem:[%s1034_s3] sm:$0x1]  ;;  %s816_s26 = scalar_lea.vmem %s1035_s4, %s590_s10 }
  0x16   : > { %v252_v4 = vmul.f32 %v249_v2, %v249_v2  ;;  %v262_v15 = vld [vmem:[%s795_s13] sm:$0xff]  ;;  %v263_v16 = vld [vmem:[%s795_s13 + $0x8] sm:$0xff]  ;;  %v264_v17 = vld [vmem:[%s795_s13 + $0x10] sm:$0xff]  ;;  %p649_p0 = scmp.lt.s32.totalorder %s983_s9, %s647_s15 }
  0x17   : > { %v296_v11 = vsub.s32 0, %v295_v9  ;;  %v265_v18 = vld [vmem:[%s795_s13 + $0x18] sm:$0xff]  ;;  %v266_v19 = vld [vmem:[%s795_s13 + $0x20] sm:$0xff]  ;;  %v267_v22 = vld [vmem:[%s795_s13 + $0x28] sm:$0xff] }
  0x18   : > { %v253_v5 = vsub.f32 %v251_v3, %v252_v4  ;;  %v268_v23 = vld [vmem:[%s795_s13 + $0x30] sm:$0xff]  ;;  %v269_v24 = vld [vmem:[%s795_s13 + $0x38] sm:$0xff]  ;;  %v270_v25 = vld [vmem:[%s795_s13 + $0x40] sm:$0xff] }
  0x19   : > { %v271_v26 = vld [vmem:[%s795_s13 + $0x48] sm:$0xff]  ;;  %v272_v27 = vld [vmem:[%s795_s13 + $0x50] sm:$0xff]  ;;  %v273_v32 = vld [vmem:[%s795_s13 + $0x58] sm:$0xff] }
  0x1a   : > { %v254_v6 = vmax.f32 %v253_v5, 0.0  ;;  %v274_v33 = vld [vmem:[%s795_s13 + $0x60] sm:$0xff]  ;;  %v275_v34 = vld [vmem:[%s795_s13 + $0x68] sm:$0xff]  ;;  %v370_v45 = vld [vmem:[%s816_s26 + $0x10] sm:$0xff] }
  0x1b   : > { %v368_v40 = vld [vmem:[%s816_s26] sm:$0xff]  ;;  %v369_v41 = vld [vmem:[%s816_s26 + $0x8] sm:$0xff]  ;;  %v371_v46 = vld [vmem:[%s816_s26 + $0x18] sm:$0xff] }
  0x1c   : > { %v255_v7 = vadd.f32 1e-05, %v254_v6  ;;  %v372_v47 = vld [vmem:[%s816_s26 + $0x20] sm:$0xff]  ;;  %v373_v56 = vld [vmem:[%s816_s26 + $0x28] sm:$0xff]  ;;  %v374_v57 = vld [vmem:[%s816_s26 + $0x30] sm:$0xff] }
  0x1d   : > { %v375_v58 = vld [vmem:[%s816_s26 + $0x38] sm:$0xff]  ;;  %v377_v8 = vld [vmem:[%s816_s26 + $0x48] sm:$0xff] }
  0x1e   : > { %640 = vrsqrt.f32 %v255_v7  ;;  %v376_v7 = vld [vmem:[%s816_s26 + $0x40] sm:$0xff] }
  0x2b   : > { %v641_v12 = vpop.eup %640 }
  0x2c   : > { %v258_v13 = vmul.f32 %v641_v12, %v257_v10 }
  0x2e   : > { %v260_v20 = vmul.f32 %v258_v13, %v249_v2  ;;  %v808_v21 = vrot.slane %v258_v13, %v296_v11  ;;  %v276_v13 = vld [vmem:[%s795_s13 + $0x70] sm:$0xff] }
  0x30   : > { %v261_v28 = vsub.f32 %v259_v14, %v260_v20  ;;  %v298_v29 = vmul.f32 %v808_v21, %v262_v15  ;;  %v299_v30 = vmul.f32 %v808_v21, %v263_v16  ;;  %v300_v31 = vmul.f32 %v808_v21, %v264_v17  ;;  %v277_v14 = vld [vmem:[%s795_s13 + $0x78] sm:$0xff] }
  0x31   : > { %v301_v35 = vmul.f32 %v808_v21, %v265_v18  ;;  %v302_v36 = vmul.f32 %v808_v21, %v266_v19  ;;  %v303_v37 = vmul.f32 %v808_v21, %v267_v22  ;;  %v304_v38 = vmul.f32 %v808_v21, %v268_v23  ;;  %v378_v19 = vld [vmem:[%s816_s26 + $0x50] sm:$0xff]  ;;  %v379_v20 = vld [vmem:[%s816_s26 + $0x58] sm:$0xff] }
  0x32   : > { %v832_v39 = vrot.slane %v261_v28, %v296_v11  ;;  %v305_v42 = vmul.f32 %v808_v21, %v269_v24  ;;  %v306_v43 = vmul.f32 %v808_v21, %v270_v25  ;;  %v307_v44 = vmul.f32 %v808_v21, %v271_v26  ;;  %v380_v26 = vld [vmem:[%s816_s26 + $0x60] sm:$0xff] }
  0x33   : > { %v308_v48 = vmul.f32 %v808_v21, %v272_v27  ;;  %v309_v49 = vmul.f32 %v808_v21, %v273_v32  ;;  %v310_v50 = vmul.f32 %v808_v21, %v274_v33  ;;  %v311_v51 = vmul.f32 %v808_v21, %v275_v34  ;;  %v381_v27 = vld [vmem:[%s816_s26 + $0x68] sm:$0xff] }
  0x34   : > { %v336_v52 = vadd.f32 %v832_v39, %v298_v29  ;;  %v337_v53 = vadd.f32 %v832_v39, %v299_v30  ;;  %v338_v54 = vadd.f32 %v832_v39, %v300_v31  ;;  %v339_v55 = vadd.f32 %v832_v39, %v301_v35 }
  0x35   : > { %v340_v59 = vadd.f32 %v832_v39, %v302_v36  ;;  %v341_v60 = vadd.f32 %v832_v39, %v303_v37  ;;  %v342_v61 = vadd.f32 %v832_v39, %v304_v38  ;;  %v343_v62 = vadd.f32 %v832_v39, %v305_v42  ;;  %v382_v36 = vld [vmem:[%s816_s26 + $0x70] sm:$0xff]  ;;  %v383_v37 = vld [vmem:[%s816_s26 + $0x78] sm:$0xff]  ;;  %v278_v38 = vld [vmem:[%s795_s13 + $0x80] sm:$0xff] }
  0x36   : > { %v400_v63 = vadd.f32 %v368_v40, %v336_v52  ;;  %v401_v0 = vadd.f32 %v369_v41, %v337_v53  ;;  %v402_v1 = vadd.f32 %v370_v45, %v338_v54  ;;  %v403_v2 = vadd.f32 %v371_v46, %v339_v55  ;;  %v280_v45 = vld [vmem:[%s795_s13 + $0x90] sm:$0xff]  ;;  %v281_v46 = vld [vmem:[%s795_s13 + $0x98] sm:$0xff]  ;;  %v283_v52 = vld [vmem:[%s795_s13 + $0xa8] sm:$0xff] }
  0x37   : > { %v404_v3 = vadd.f32 %v372_v47, %v340_v59  ;;  %v405_v4 = vadd.f32 %v373_v56, %v341_v60  ;;  %v406_v5 = vadd.f32 %v374_v57, %v342_v61  ;;  %v407_v6 = vadd.f32 %v375_v58, %v343_v62  ;;  %v384_v58 = vld [vmem:[%s816_s26 + $0x80] sm:$0xff]  ;;  %v284_v62 = vld [vmem:[%s795_s13 + $0xb0] sm:$0xff] }
  0x38   : > { %v432_v9 = vmax.f32 %v400_v63, 0.0  ;;  %v433_v10 = vmax.f32 %v401_v0, 0.0  ;;  %v434_v11 = vmax.f32 %v402_v1, 0.0  ;;  %v435_v12 = vmax.f32 %v403_v2, 0.0  ;;  %v285_v63 = vld [vmem:[%s795_s13 + $0xb8] sm:$0xff]  ;;  %v385_v2 = vld [vmem:[%s816_s26 + $0x88] sm:$0xff] }
  0x39   : > { %v436_v15 = vmax.f32 %v404_v3, 0.0  ;;  %v437_v16 = vmax.f32 %v405_v4, 0.0  ;;  %v438_v17 = vmax.f32 %v406_v5, 0.0  ;;  %v439_v18 = vmax.f32 %v407_v6, 0.0  ;;  %v386_v3 = vld [vmem:[%s816_s26 + $0x90] sm:$0xff]  ;;  %v387_v4 = vld [vmem:[%s816_s26 + $0x98] sm:$0xff] }
  0x3a   : > { %464 = vst [vmem:[%s868_s7] sm:$0xff] %v432_v9  ;;  %465 = vst [vmem:[%s868_s7 + $0x8] sm:$0xff] %v433_v10  ;;  %v344_v22 = vadd.f32 %v832_v39, %v306_v43  ;;  %v345_v23 = vadd.f32 %v832_v39, %v307_v44  ;;  %v346_v24 = vadd.f32 %v832_v39, %v308_v48  ;;  %v279_v44 = vld [vmem:[%s795_s13 + $0x88] sm:$0xff] }
  0x3b   : > { %466 = vst [vmem:[%s868_s7 + $0x10] sm:$0xff] %v434_v11  ;;  %467 = vst [vmem:[%s868_s7 + $0x18] sm:$0xff] %v435_v12  ;;  %v347_v25 = vadd.f32 %v832_v39, %v309_v49  ;;  %v348_v28 = vadd.f32 %v832_v39, %v310_v50  ;;  %v349_v29 = vadd.f32 %v832_v39, %v311_v51  ;;  %v282_v51 = vld [vmem:[%s795_s13 + $0xa0] sm:$0xff]  ;;  %v389_v12 = vld [vmem:[%s816_s26 + $0xa8] sm:$0xff] }
  0x3c   : > { %468 = vst [vmem:[%s868_s7 + $0x20] sm:$0xff] %v436_v15  ;;  %469 = vst [vmem:[%s868_s7 + $0x28] sm:$0xff] %v437_v16  ;;  %v312_v30 = vmul.f32 %v808_v21, %v276_v13  ;;  %v313_v31 = vmul.f32 %v808_v21, %v277_v14  ;;  %v408_v32 = vadd.f32 %v376_v7, %v344_v22  ;;  %v388_v11 = vld [vmem:[%s816_s26 + $0xa0] sm:$0xff]  ;;  %v390_v22 = vld [vmem:[%s816_s26 + $0xb0] sm:$0xff] }
  0x3d   : > { %470 = vst [vmem:[%s868_s7 + $0x30] sm:$0xff] %v438_v17  ;;  %471 = vst [vmem:[%s868_s7 + $0x38] sm:$0xff] %v439_v18  ;;  %v409_v33 = vadd.f32 %v377_v8, %v345_v23  ;;  %v410_v34 = vadd.f32 %v378_v19, %v346_v24  ;;  %v411_v35 = vadd.f32 %v379_v20, %v347_v25  ;;  %v391_v23 = vld [vmem:[%s816_s26 + $0xb8] sm:$0xff]  ;;  %v286_v24 = vld [vmem:[%s795_s13 + $0xc0] sm:$0xff] }
  0x3e   : > { %v412_v40 = vadd.f32 %v380_v26, %v348_v28  ;;  %v413_v41 = vadd.f32 %v381_v27, %v349_v29  ;;  %v350_v42 = vadd.f32 %v832_v39, %v312_v30  ;;  %v351_v43 = vadd.f32 %v832_v39, %v313_v31  ;;  %v287_v29 = vld [vmem:[%s795_s13 + $0xc8] sm:$0xff]  ;;  %v288_v30 = vld [vmem:[%s795_s13 + $0xd0] sm:$0xff]  ;;  %v289_v31 = vld [vmem:[%s795_s13 + $0xd8] sm:$0xff] }
  0x3f   : > { %v440_v47 = vmax.f32 %v408_v32, 0.0  ;;  %v441_v48 = vmax.f32 %v409_v33, 0.0  ;;  %v442_v49 = vmax.f32 %v410_v34, 0.0  ;;  %v443_v50 = vmax.f32 %v411_v35, 0.0 }
  0x40   : > { %v444_v53 = vmax.f32 %v412_v40, 0.0  ;;  %v445_v54 = vmax.f32 %v413_v41, 0.0  ;;  %v414_v55 = vadd.f32 %v382_v36, %v350_v42  ;;  %v415_v56 = vadd.f32 %v383_v37, %v351_v43  ;;  %v290_v36 = vld [vmem:[%s795_s13 + $0xe0] sm:$0xff]  ;;  %v291_v37 = vld [vmem:[%s795_s13 + $0xe8] sm:$0xff] }
  0x41   : > { %472 = vst [vmem:[%s868_s7 + $0x40] sm:$0xff] %v440_v47  ;;  %473 = vst [vmem:[%s868_s7 + $0x48] sm:$0xff] %v441_v48  ;;  %v314_v57 = vmul.f32 %v808_v21, %v278_v38  ;;  %v315_v59 = vmul.f32 %v808_v21, %v279_v44  ;;  %v316_v60 = vmul.f32 %v808_v21, %v280_v45  ;;  %v392_v44 = vld [vmem:[%s816_s26 + $0xc0] sm:$0xff]  ;;  %v292_v48 = vld [vmem:[%s795_s13 + $0xf0] sm:$0xff] }
  0x42   : > { %474 = vst [vmem:[%s868_s7 + $0x50] sm:$0xff] %v442_v49  ;;  %475 = vst [vmem:[%s868_s7 + $0x58] sm:$0xff] %v443_v50  ;;  %v317_v61 = vmul.f32 %v808_v21, %v281_v46  ;;  %v446_v0 = vmax.f32 %v414_v55, 0.0  ;;  %v447_v1 = vmax.f32 %v415_v56, 0.0  ;;  %v318_v5 = vmul.f32 %v808_v21, %v282_v51  ;;  %v293_v49 = vld [vmem:[%s795_s13 + $0xf8] sm:$0xff]  ;;  %s642_s13 = scalar_lea.vmem %s983_s9, 4096 }
  0x43   : > { %476 = vst [vmem:[%s868_s7 + $0x60] sm:$0xff] %v444_v53  ;;  %477 = vst [vmem:[%s868_s7 + $0x68] sm:$0xff] %v445_v54  ;;  %v319_v6 = vmul.f32 %v808_v21, %v283_v52  ;;  %v352_v7 = vadd.f32 %v832_v39, %v314_v57  ;;  %v353_v8 = vadd.f32 %v832_v39, %v315_v59  ;;  %v393_v52 = vld [vmem:[%s816_s26 + $0xc8] sm:$0xff]  ;;  %v394_v53 = vld [vmem:[%s816_s26 + $0xd0] sm:$0xff]  ;;  %p643_p11 = scmp.ne.s32.totalorder %s983_s9, %s642_s13  ;;  %p650_p1 = scmp.lt.s32.totalorder %s648_s16, %s642_s13 }
  0x44   : > { %v354_v9 = vadd.f32 %v832_v39, %v316_v60  ;;  %v355_v10 = vadd.f32 %v832_v39, %v317_v61  ;;  %478 = vst [vmem:[%s868_s7 + $0x70] sm:$0xff] %v446_v0  ;;  %479 = vst [vmem:[%s868_s7 + $0x78] sm:$0xff] %v447_v1  ;;  %v356_v13 = vadd.f32 %v832_v39, %v318_v5  ;;  %v395_v54 = vld [vmem:[%s816_s26 + $0xd8] sm:$0xff]  ;;  %v396_v61 = vld [vmem:[%s816_s26 + $0xe0] sm:$0xff] }
  0x45   : > { %v357_v14 = vadd.f32 %v832_v39, %v319_v6  ;;  %v320_v15 = vmul.f32 %v808_v21, %v284_v62  ;;  %v321_v16 = vmul.f32 %v808_v21, %v285_v63  ;;  %v416_v17 = vadd.f32 %v384_v58, %v352_v7  ;;  %v397_v62 = vld [vmem:[%s816_s26 + $0xe8] sm:$0xff]  ;;  %v398_v7 = vld [vmem:[%s816_s26 + $0xf0] sm:$0xff]  ;;  %p644_p12 = pnand %p643_p11, %p775_p5  ;;  %p651_p2 = por %p650_p1, %p649_p0 }
  0x46   : > { %v417_v18 = vadd.f32 %v385_v2, %v353_v8  ;;  %v418_v19 = vadd.f32 %v386_v3, %v354_v9  ;;  %v419_v20 = vadd.f32 %v387_v4, %v355_v10  ;;  %v420_v25 = vadd.f32 %v388_v11, %v356_v13  ;;  %v399_v8 = vld [vmem:[%s816_s26 + $0xf8] sm:$0xff] }
  0x47   : > { %v421_v26 = vadd.f32 %v389_v12, %v357_v14  ;;  %v358_v27 = vadd.f32 %v832_v39, %v320_v15  ;;  %v359_v28 = vadd.f32 %v832_v39, %v321_v16  ;;  %v448_v32 = vmax.f32 %v416_v17, 0.0  ;;  %p645_p13 = pneg %p644_p12 }
  0x48   : > { %v449_v33 = vmax.f32 %v417_v18, 0.0  ;;  %v450_v34 = vmax.f32 %v418_v19, 0.0  ;;  %v451_v35 = vmax.f32 %v419_v20, 0.0  ;;  %v452_v38 = vmax.f32 %v420_v25, 0.0 }
  0x49   : > { %v453_v40 = vmax.f32 %v421_v26, 0.0  ;;  %v422_v41 = vadd.f32 %v390_v22, %v358_v27  ;;  %v423_v42 = vadd.f32 %v391_v23, %v359_v28  ;;  %480 = vst [vmem:[%s868_s7 + $0x80] sm:$0xff] %v448_v32  ;;  %v322_v43 = vmul.f32 %v808_v21, %v286_v24  ;;  %p652_p3 = pnand %p651_p2, %p645_p13 }
  0x4a   : > { %481 = vst [vmem:[%s868_s7 + $0x88] sm:$0xff] %v449_v33  ;;  %482 = vst [vmem:[%s868_s7 + $0x90] sm:$0xff] %v450_v34  ;;  %v323_v45 = vmul.f32 %v808_v21, %v287_v29  ;;  %v324_v46 = vmul.f32 %v808_v21, %v288_v30  ;;  %v325_v47 = vmul.f32 %v808_v21, %v289_v31 }
  0x4b   : > { %483 = vst [vmem:[%s868_s7 + $0x98] sm:$0xff] %v451_v35  ;;  %484 = vst [vmem:[%s868_s7 + $0xa0] sm:$0xff] %v452_v38  ;;  %v454_v50 = vmax.f32 %v422_v41, 0.0  ;;  %v455_v51 = vmax.f32 %v423_v42, 0.0  ;;  %v326_v55 = vmul.f32 %v808_v21, %v290_v36  ;;  %v327_v56 = vmul.f32 %v808_v21, %v291_v37 }
  0x4c   : > { %485 = vst [vmem:[%s868_s7 + $0xa8] sm:$0xff] %v453_v40  ;;  %v360_v57 = vadd.f32 %v832_v39, %v322_v43  ;;  %v361_v58 = vadd.f32 %v832_v39, %v323_v45  ;;  %v362_v59 = vadd.f32 %v832_v39, %v324_v46  ;;  %v363_v60 = vadd.f32 %v832_v39, %v325_v47 }
  0x4d   : > { %486 = vst [vmem:[%s868_s7 + $0xb0] sm:$0xff] %v454_v50  ;;  %487 = vst [vmem:[%s868_s7 + $0xb8] sm:$0xff] %v455_v51  ;;  %v364_v63 = vadd.f32 %v832_v39, %v326_v55  ;;  %v365_v0 = vadd.f32 %v832_v39, %v327_v56  ;;  %v328_v1 = vmul.f32 %v808_v21, %v292_v48 }
  0x4e   : > { %v329_v2 = vmul.f32 %v808_v21, %v293_v49  ;;  %v424_v3 = vadd.f32 %v392_v44, %v360_v57  ;;  %v425_v4 = vadd.f32 %v393_v52, %v361_v58  ;;  %v426_v5 = vadd.f32 %v394_v53, %v362_v59 }
  0x4f   : > { %v427_v6 = vadd.f32 %v395_v54, %v363_v60  ;;  %v428_v9 = vadd.f32 %v396_v61, %v364_v63  ;;  %v429_v10 = vadd.f32 %v397_v62, %v365_v0  ;;  %v366_v11 = vadd.f32 %v832_v39, %v328_v1 }
  0x50   : > { %v367_v12 = vadd.f32 %v832_v39, %v329_v2  ;;  %v456_v21 = vmax.f32 %v424_v3, 0.0  ;;  %v457_v13 = vmax.f32 %v425_v4, 0.0  ;;  %v458_v14 = vmax.f32 %v426_v5, 0.0 }
  0x51   : > { %v459_v15 = vmax.f32 %v427_v6, 0.0  ;;  %v460_v16 = vmax.f32 %v428_v9, 0.0  ;;  %v461_v17 = vmax.f32 %v429_v10, 0.0  ;;  %v430_v18 = vadd.f32 %v398_v7, %v366_v11 }
  0x52   : > { %v431_v19 = vadd.f32 %v399_v8, %v367_v12  ;;  %488 = vst [vmem:[%s868_s7 + $0xc0] sm:$0xff] %v456_v21  ;;  %489 = vst [vmem:[%s868_s7 + $0xc8] sm:$0xff] %v457_v13 }
  0x53   : > { %490 = vst [vmem:[%s868_s7 + $0xd0] sm:$0xff] %v458_v14  ;;  %491 = vst [vmem:[%s868_s7 + $0xd8] sm:$0xff] %v459_v15  ;;  %v462_v39 = vmax.f32 %v430_v18, 0.0 }
  0x54   : > { %492 = vst [vmem:[%s868_s7 + $0xe0] sm:$0xff] %v460_v16  ;;  %493 = vst [vmem:[%s868_s7 + $0xe8] sm:$0xff] %v461_v17  ;;  %v463_v20 = vmax.f32 %v431_v19, 0.0 }
  0x55   : > { %494 = vst [vmem:[%s868_s7 + $0xf0] sm:$0xff] %v462_v39 }
  0x56   : > { %495 = vst [vmem:[%s868_s7 + $0xf8] sm:$0xff] %v463_v20 }
  0x57   : > { %655 = shalt.err (!%p652_p3)
}
  0x58   : > { %s656_s17 = scalar_lea.hbm %s981_s11, 4096  ;;  %s660_s26 = scalar_lea.hbm %s1036_s5, 16384 }
  0x59   : > { %p657_p4 = scmp.ne.s32.totalorder %s981_s11, %s656_s17  ;;  %p661_p9 = scmp.lt.s32.totalorder %s981_s11, %s1036_s5 }
  0x5a   : > { %p662_p10 = scmp.lt.s32.totalorder %s660_s26, %s656_s17 }
  0x5b   : > { %p658_p7 = pnand %p657_p4, %p775_p5 }
  0x5c   : > { %p663_p11 = por %p662_p10, %p661_p9 }
  0x5d   : > { %p659_p8 = pneg %p658_p7 }
  0x5f   : > { %p664_p12 = pnand %p663_p11, %p659_p8 }
  0x61   : > { %667 = shalt.err (!%p664_p12)
}
  0x62   : > { %s705_s7 = smov 128   ;;  %s706_s8 = smov 8  }
  0x63   : > { %599 = dma.vmem_to_hbm [thread:$0]  (%p775_p5), %s983_s9, 4096, %s981_s11, %s991_s12, %s705_s7, %s705_s7, %s706_s8  }
  0x64 PF: > { %p605_p13 = scmp.ge.s32.totalorder %s702_s21, 2  ;;  %s525_s22 = sand.u32 1, %s690_s18  }
  0x65   : > { %s526_s10 = scalar_lea.sflag [#allocation3], %s525_s22 }
  0x66   : > { %p602_p0 = pnand %p605_p13, %p779_p6 }
  0x68   : > { %p603_p1 = pneg %p602_p0 }
  0x6a   : > { %685 = dma.done.wait (%p603_p1), %s526_s10, 4096  }
  0x6b   : > { %687 = vsyncadd (%p603_p1), %s526_s10, 4294963200  ;;  %p15_p2 = scmp.ge.s32.totalorder %s762_s24, 6   ;;  %s1039_s18 = smov %s694_s19 }
  0x6c   : > { %s1040_s19 = smov %s698_s20  ;;  %s1041_s20 = smov %s773_s27 }
  0x6d   : > { %s1042_s21 = smov %s762_s24  ;;  %17 = sbr.rel (!%p15_p2) target bundleno = 3 (0x3), region = 78 }
  0x72   :  { %531 = vsyncpa [#allocation3], 1 }
  0x73   :  { %533 = vsyncpa [#allocation3 + $0x1], 1 }

// kernel: bottleneck_forward.8
= control target key start
LH: loop header
LB: loop body
LE: loop exit
PB: predicated region body
PF: predicated region fallthrough
CT: control target
= control target key end

     0   :  { %s3350_s12 = smov 0   ;;  %s3352_s13 = smov 0   ;;  %s3932_s0 = inlined_call_operand.vmem [shape: bf16[2,10,10,10,128], index: 0, kind: input, shape index: {}]   ;;  %s3933_s1 = inlined_call_operand.vmem [shape: bf16[3,9,128,128], index: 1, kind: input, shape index: {}]   ;;  %s3934_s2 = inlined_call_operand.vmem [shape: f32[2,8,64,128], index: 2, kind: output, shape index: {0}]   ;;  %s3935_s3 = inlined_call_operand.vmem [shape: f32[2,128], index: 3, kind: output, shape index: {1}]  }
   0x1   :  { %s3354_s14 = smov 0   ;;  %s3356_s15 = smov 0  }
   0x2   :  { %s3358_s16 = smov 0   ;;  %s3360_s17 = smov 0  }
   0x3   :  { %s3362_s18 = smov 0  }
   0x4 LB: > { %s26_s19 = sadd.s32 1, %s3314_s15  ;;  %s29_s20 = sadd.s32 1, %s3318_s16  ;;  %s3326_s18 = sphi %s3362_s18, %s14_s18   ;;  %s3322_s17 = sphi %s3360_s17, %s3967_s17   ;;  %s3318_s16 = sphi %s3358_s16, %s3966_s16   ;;  %s3314_s15 = sphi %s3356_s15, %s3965_s15   ;;  %s3310_s14 = sphi %s3354_s14, %s3964_s14   ;;  %s3306_s13 = sphi %s3352_s13, %s3963_s13   ;;  %s3302_s12 = sphi %s3350_s12, %s3962_s12  }
   0x5   : > { %p27_p0 = scmp.ge.s32.totalorder %s26_s19, 3  ;;  %p2453_p1 = scmp.ge.s32.totalorder %s3326_s18, 1 }
   0x6   : > { %p176_p2 = scmp.lt.s32.totalorder %s3326_s18, 49  ;;  %s33_s21 = sadd.s32 1, %s3322_s17 }
   0x7   : > { %s3969_s19 = smov (%p27_p0, %s26_s19), 0  ;;  %s3971_s20 = smov (!%p27_p0, %s29_s20), %s3318_s16 }
   0x8   : > { %p177_p3 = pnand %p2453_p1, %p176_p2  ;;  %p31_p4 = scmp.ge.s32.totalorder %s3971_s20, 8 }
   0xa   : > { %s3973_s20 = smov (%p31_p4, %s3971_s20), 0  ;;  %s3975_s21 = smov (!%p31_p4, %s33_s21), %s3322_s17 }
   0xb   : > { %3936 = sst [smem:[#allocation3_spill]] %s3973_s20  ;;  %p35_p5 = scmp.ge.s32.totalorder %s3975_s21, 2 }
   0xc   : > { %180 = sbr.rel (%p177_p3) target bundleno = 455 (0x1c7), region = 28 }
   0xd   : > { %s3977_s21 = smov (%p35_p5, %s3975_s21), 0 }
   0xe   : > { %3937 = sst [smem:[#allocation4_spill]] %s3977_s21 }
  0x11   : > { %s214_s22 = sadd.s32 %s3302_s12, %s3306_s13  ;;  %p215_p6 = scmp.lt.s32.totalorder %s3310_s14, 1 }
  0x12   : > { %p217_p7 = scmp.lt.s32.totalorder %s214_s22, 9  ;;  %p225_p8 = scmp.lt.s32.totalorder %s3302_s12, 2 }
  0x13   : > { %s216_s23 = scalar_select %p215_p6, %s3310_s14, 1 }
  0x14   : > { %s3979_s22 = smov (!%p217_p7, %s214_s22), 9  ;;  %p232_p9 = scmp.lt.s32.totalorder %s3306_s13, 7 }
  0x15   : > { %s3128_s24 = smul.u32 200, %s216_s23  ;;  %p240_p10 = scmp.eq.s32.totalorder %s3302_s12, 0 }
  0x16   : > { %s3127_s25 = smul.u32 20, %s3979_s22  ;;  %s2457_s9 = sshll.u32 %s216_s23, 6 }
  0x17   : > { %s226_s26 = scalar_select %p225_p8, %s3302_s12, 2 }
  0x18   : > { %s221_s27 = sadd.s32 %s3128_s24, %s3127_s25  ;;  %p2459_p11 = scmp.ne.s32.totalorder %s3302_s12, 0 }
  0x19   : > { %s2454_s28 = sshll.u32 %s221_s27, 2  ;;  %s3129_s29 = smul.u32 576, %s226_s26 }
  0x1a   : > { %s3409_s5 = scalar_lea.vmem %s3932_s0, %s2454_s28 }
  0x1b   : > { %s3414_s8 = scalar_lea.vmem %s3933_s1, %s3129_s29 }
  0x1c   : > { %s233_s10 = scalar_select %p232_p9, %s3306_s13, 7 }
  0x1d   : > { %243 = sbr.rel (%p2459_p11) target bundleno = 39 (0x27), region = 32 }
  0x1e   : > { %s2456_s11 = sshll.u32 %s233_s10, 3 }
  0x1f   : > { %s236_s22 = sadd.s32 %s2457_s9, %s2456_s11 }
  0x20   : > { %s2458_s21 = sshll.u32 %s236_s22, 3 }
  0x21   : > { %s3420_s25 = scalar_lea.vmem %s3934_s2, %s2458_s21 }
  0x22   : > { %v3328_v0 = vmov 0.0  }
  0x23   : > { %244 = vst [vmem:[#allocation2 + $0x30] sm:$0xff] %v3328_v0  ;;  %245 = vst [vmem:[#allocation2] sm:$0xff] %v3328_v0 }
  0x24   : > { %246 = vst [vmem:[#allocation2 + $0x18] sm:$0xff] %v3328_v0  ;;  %247 = vst [vmem:[#allocation2 + $0x10] sm:$0xff] %v3328_v0 }
  0x25   : > { %248 = vst [vmem:[#allocation2 + $0x8] sm:$0xff] %v3328_v0  ;;  %249 = vst [vmem:[#allocation2 + $0x20] sm:$0xff] %v3328_v0 }
  0x26   : > { %250 = vst [vmem:[#allocation2 + $0x28] sm:$0xff] %v3328_v0  ;;  %251 = vst [vmem:[#allocation2 + $0x38] sm:$0xff] %v3328_v0 }
  0x27 PF: > { %p252_p12 = scmp.eq.s32.totalorder %s3310_s14, 0  ;;  %p253_p13 = scmp.eq.s32.totalorder %s3306_s13, 0 }
  0x29   : > { %p254_p0 = pnand %p253_p13, %p252_p12 }
  0x2b   : > { %p255_p1 = pneg %p254_p0 }
  0x2d   : > { %p256_p2 = pnand %p255_p1, %p240_p10 }
  0x2f   : > { %259 = sbr.rel (%p256_p2) target bundleno = 54 (0x36), region = 36 }
  0x34   : > { %v3329_v1 = vmov 0.0  }
  0x35   : > { %260 = vst [vmem:[%s3935_s3] sm:$0x3] %v3329_v1 }
  0x36 PF: > { %v3188_v2 = vld [vmem:[%s3414_s8 + $0x38] sm:$0xff]   ;;  %v3190_v4 = vld [vmem:[%s3414_s8 + $0x30] sm:$0xff]   ;;  %v3192_v6 = vld [vmem:[%s3414_s8 + $0x28] sm:$0xff]   ;;  %vm454_vm0 = vsmask.f32 3328  ;;  %vm747_vm3 = vcmask 1042432  }
  0x37   : > { %v3189_v3 = vld [vmem:[%s3414_s8 + $0x78] sm:$0xff]   ;;  %2895 = vmatprep.subr.bf16.mxu0 %v3188_v2  ;;  %v3191_v5 = vld [vmem:[%s3414_s8 + $0x70] sm:$0xff]   ;;  %v3193_v7 = vld [vmem:[%s3414_s8 + $0x68] sm:$0xff]   ;;  %vm455_vm1 = vsmask.f32 7440  ;;  %vm748_vm4 = vcmask 1046532  }
  0x38   : > { %2919 = vmatprep.subr.bf16.mxu1 %v3189_v3  ;;  %2896 = vmatpush3.bf16.msra.mxu0 %v3188_v2  ;;  %v3194_v8 = vld [vmem:[%s3414_s8 + $0x20] sm:$0xff]   ;;  %v3196_v10 = vld [vmem:[%s3414_s8 + $0x18] sm:$0xff]   ;;  %v3198_v12 = vld [vmem:[%s3414_s8 + $0x10] sm:$0xff]   ;;  %p2784_p3 = scmp.ne.s32.totalorder %s3302_s12, 2 }
  0x39   : > { %2920 = vmatpush3.bf16.msra.mxu1 %v3189_v3  ;;  %2897 = vmatprep.subr.bf16.mxu0 %v3190_v4  ;;  %v3195_v9 = vld [vmem:[%s3414_s8 + $0x60] sm:$0xff]   ;;  %v3197_v11 = vld [vmem:[%s3414_s8 + $0x58] sm:$0xff]   ;;  %v3199_v13 = vld [vmem:[%s3414_s8 + $0x50] sm:$0xff]  }
  0x3a   : > { %2921 = vmatprep.subr.bf16.mxu1 %v3191_v5  ;;  %v3204_v14 = vld [vmem:[%s3409_s5] ss:$8 sps:$4 sm:$0xff]   ;;  %v3445_v16 = vld [vmem:[%s3409_s5 + $0x4] sm:$0x1]  ;;  %v3450_v19 = vld [vmem:[%s3409_s5 + $0xc] sm:$0x1] }
  0x3b   : > { %v438_v15 = vld [vmem:[%s3409_s5] sm:$0xf]  ;;  %v440_v17 = vld [vmem:[%s3409_s5 + $0x8] sm:$0xf]  ;;  %2911 = vmatprep.mubr.bf16.mxu0 %v3204_v14  ;;  %v467_v22 = vshll.u32 %v3445_v16, 16  ;;  %v481_v25 = vshll.u32 %v3450_v19, 16  ;;  %vm3467_vm2 = vmor %vm454_vm0, %vm455_vm1 }
  0x3c   : > { %2898 = vmatpush3.bf16.msra.mxu0 %v3190_v4  ;;  %v3200_v18 = vld [vmem:[%s3414_s8 + $0x8] sm:$0xff]   ;;  %v458_v20 = vshrl.u32 %v438_v15, 16  ;;  %v461_v21 = vshll.u32 %v438_v15, 16  ;;  %v472_v23 = vshrl.u32 %v440_v17, 16  ;;  %v475_v24 = vshll.u32 %v440_v17, 16  ;;  %v3202_v31 = vld [vmem:[%s3414_s8] sm:$0xff]   ;;  %vm3520_vm5 = vmor %vm747_vm3, %vm748_vm4 }
  0x3d   : > { %2922 = vmatpush3.bf16.msra.mxu1 %v3191_v5  ;;  %2899 = vmatprep.subr.bf16.mxu0 %v3192_v6  ;;  %v3201_v26 = vld [vmem:[%s3414_s8 + $0x48] sm:$0xff]   ;;  %v469_v29 = vrot.slane %v467_v22, 5  ;;  %v483_v33 = vrot.slane %v481_v25, 5  ;;  %v442_v34 = vld [vmem:[%s3409_s5 + $0x10] sm:$0xf]  ;;  %v3203_v41 = vld [vmem:[%s3414_s8 + $0x40] sm:$0xff]  }
  0x3e   : > { %2923 = vmatprep.subr.bf16.mxu1 %v3193_v7  ;;  %v460_v27 = vrot.slane %v458_v20, 4  ;;  %v463_v28 = vrot.slane %v461_v21, 5  ;;  %v474_v30 = vrot.slane %v472_v23, 4  ;;  %v477_v32 = vrot.slane %v475_v24, 5  ;;  %v3458_v35 = vld [vmem:[%s3409_s5 + $0x14] sm:$0x1] }
  0x3f   : > { %v444_v37 = vld [vmem:[%s3409_s5 + $0x18] sm:$0xf]  ;;  %v3462_v38 = vld [vmem:[%s3409_s5 + $0x1c] sm:$0x1]  ;;  %v486_v39 = vshrl.u32 %v442_v34, 16  ;;  %v489_v40 = vshll.u32 %v442_v34, 16 }
  0x40   : > { %2900 = vmatpush3.bf16.msra.mxu0 %v3192_v6  ;;  %v464_v36 = vor.u32 %v463_v28, %v460_v27  ;;  %v478_v43 = vor.u32 %v477_v32, %v474_v30  ;;  %v495_v44 = vshll.u32 %v3458_v35, 16  ;;  %v500_v45 = vshrl.u32 %v444_v37, 16  ;;  %v3205_v58 = vld [vmem:[%s3409_s5 + $0x10] ss:$8 sps:$4 sm:$0xff]   ;;  %v3494_v14 = vld [vmem:[%s3409_s5 + $0x24] sm:$0x1] }
  0x41   : > { %2924 = vmatpush3.bf16.msra.mxu1 %v3193_v7  ;;  %2901 = vmatprep.subr.bf16.mxu0 %v3194_v8  ;;  %v503_v46 = vshll.u32 %v444_v37, 16  ;;  %v488_v48 = vrot.slane %v486_v39, 4  ;;  %v491_v49 = vrot.slane %v489_v40, 5  ;;  %v509_v50 = vshll.u32 %v3462_v38, 16  ;;  %v3206_v61 = vld [vmem:[%s3414_s8 + $0xb8] sm:$0xff]   ;;  %v3208_v4 = vld [vmem:[%s3414_s8 + $0xb0] sm:$0xff]  }
  0x42   : > { %2925 = vmatprep.subr.bf16.mxu1 %v3195_v9  ;;  %v465_v47 = vrot.slane %v464_v36, 4  ;;  %v479_v51 = vrot.slane %v478_v43, 4  ;;  %v502_v52 = vrot.slane %v500_v45, 4  ;;  %v497_v56 = vrot.slane %v495_v44, 5  ;;  %v3207_v0 = vld [vmem:[%s3414_s8 + $0xf8] sm:$0xff]   ;;  %v3209_v6 = vld [vmem:[%s3414_s8 + $0xf0] sm:$0xff]  }
  0x43   : > { %v505_v53 = vrot.slane %v503_v46, 5  ;;  %v492_v55 = vor.u32 %v491_v49, %v488_v48  ;;  %v511_v60 = vrot.slane %v509_v50, 5  ;;  %v3214_v7 = vld [vmem:[%s3409_s5 + $0x20] ss:$8 sps:$4 sm:$0xff]   ;;  %v3498_v17 = vld [vmem:[%s3409_s5 + $0x2c] sm:$0x1] }
  0x44   : > { %2902 = vmatpush3.bf16.msra.mxu0 %v3194_v8  ;;  %v470_v54 = vsel %vm3467_vm2, %v465_v47, %v469_v29  ;;  %v484_v57 = vsel %vm3467_vm2, %v479_v51, %v483_v33  ;;  %v3210_v8 = vld [vmem:[%s3414_s8 + $0xa8] sm:$0xff]   ;;  %v523_v22 = vshll.u32 %v3494_v14, 16  ;;  %v450_v24 = vld [vmem:[%s3409_s5 + $0x30] sm:$0xf]  ;;  %v3505_v27 = vld [vmem:[%s3409_s5 + $0x34] sm:$0x1] }
  0x45   : > { %2926 = vmatpush3.bf16.msra.mxu1 %v3195_v9  ;;  %2903 = vmatprep.subr.bf16.mxu0 %v3196_v10  ;;  %v506_v59 = vor.u32 %v505_v53, %v502_v52  ;;  %v2488_v62 = vcombine.low %v470_v54, %v484_v57  ;;  %v493_v63 = vrot.slane %v492_v55, 4  ;;  %v752_v9 = vrot.slane %v3445_v16, 5  ;;  %v448_v15 = vld [vmem:[%s3409_s5 + $0x28] sm:$0xf]  ;;  %v452_v28 = vld [vmem:[%s3409_s5 + $0x38] sm:$0xf] }
  0x46   : > { %2927 = vmatprep.subr.bf16.mxu1 %v3197_v11  ;;  %v528_v23 = vshrl.u32 %v448_v15, 16  ;;  %v531_v25 = vshll.u32 %v448_v15, 16  ;;  %v3509_v33 = vld [vmem:[%s3409_s5 + $0x3c] sm:$0x1]  ;;  %v542_v37 = vshrl.u32 %v450_v24, 16  ;;  %v545_v39 = vshll.u32 %v450_v24, 16 }
  0x47   : > { %v507_v1 = vrot.slane %v506_v59, 4  ;;  %2935 = vmatprep.mubr.bf16.mxu1 %v2488_v62  ;;  %v498_v2 = vsel %vm3467_vm2, %v493_v63, %v497_v56  ;;  %v556_v43 = vshrl.u32 %v452_v28, 16  ;;  %v559_v44 = vshll.u32 %v452_v28, 16  ;;  %v3215_v45 = vld [vmem:[%s3414_s8 + $0x98] sm:$0xff]   ;;  %v3218_v63 = vld [vmem:[%s3414_s8 + $0x90] sm:$0xff]   ;;  %v3222_v16 = vld [vmem:[%s3414_s8 + $0x80] sm:$0xff]  }
  0x48   : > { %2904 = vmatpush3.bf16.msra.mxu0 %v3196_v10  ;;  %v3211_v10 = vld [vmem:[%s3414_s8 + $0xe8] sm:$0xff]   ;;  %v530_v32 = vrot.slane %v528_v23, 4  ;;  %v533_v34 = vrot.slane %v531_v25, 5  ;;  %v544_v47 = vrot.slane %v542_v37, 4  ;;  %v547_v48 = vrot.slane %v545_v39, 5  ;;  %v3216_v50 = vld [vmem:[%s3414_s8 + $0xd8] sm:$0xff]  }
  0x49   : > { %2928 = vmatpush3.bf16.msra.mxu1 %v3197_v11  ;;  %2905 = vmatprep.subr.bf16.mxu0 %v3198_v12  ;;  %v512_v3 = vsel %vm3467_vm2, %v507_v1, %v511_v60  ;;  %v3217_v11 = vld [vmem:[%s3409_s5 + $0x30] ss:$8 sps:$4 sm:$0xff]   ;;  %v565_v49 = vshll.u32 %v3509_v33, 16  ;;  %v558_v52 = vrot.slane %v556_v43, 4  ;;  %v561_v53 = vrot.slane %v559_v44, 5 }
  0x4a   : > { %2929 = vmatprep.subr.bf16.mxu1 %v3199_v13  ;;  %v2489_v5 = vcombine.low %v498_v2, %v512_v3  ;;  %v534_v46 = vor.u32 %v533_v34, %v530_v32  ;;  %v548_v55 = vor.u32 %v547_v48, %v544_v47  ;;  %v756_v57 = vrot.slane %v3450_v19, 5  ;;  %v3219_v2 = vld [vmem:[%s3414_s8 + $0xd0] sm:$0xff]   ;;  %v726_v15 = vld [vmem:[%s3409_s5 + $0x18] sm:$0xe]  ;;  %v727_v28 = vld [vmem:[%s3409_s5 + $0x20] sm:$0xe] }
  0x4b   : > { %v562_v59 = vor.u32 %v561_v53, %v558_v52  ;;  %v567_v60 = vrot.slane %v565_v49, 5  ;;  %v764_v23 = vrot.slane %v3462_v38, 5  ;;  %v768_v38 = vrot.slane %v3494_v14, 5  ;;  %v3226_v32 = vld [vmem:[%s3414_s8 + $0x138] sm:$0xff]   ;;  %v729_v37 = vld [vmem:[%s3409_s5 + $0x30] sm:$0xe] }
  0x4c   : > { %2906 = vmatpush3.bf16.msra.mxu0 %v3198_v12  ;;  %v446_v12 = vld [vmem:[%s3409_s5 + $0x20] sm:$0xf]  ;;  %v535_v54 = vrot.slane %v534_v46, 4  ;;  %v549_v62 = vrot.slane %v548_v55, 4  ;;  %v2504_v34 = vrot.slane %v727_v28, 9  ;;  %v2506_v46 = vrot.slane %v729_v37, 9 }
  0x4d   : > { %2930 = vmatpush3.bf16.msra.mxu1 %v3199_v13  ;;  %2907 = vmatprep.subr.bf16.mxu0 %v3200_v18  ;;  %v3212_v13 = vld [vmem:[%s3414_s8 + $0xa0] sm:$0xff]   ;;  %v514_v20 = vshrl.u32 %v446_v12, 16  ;;  %v517_v21 = vshll.u32 %v446_v12, 16  ;;  %v563_v1 = vrot.slane %v562_v59, 4  ;;  %v3224_v12 = vld [vmem:[%s3409_s5 + $0x8] ss:$8 sps:$4 sm:$0xff]  }
  0x4e   : > { %2931 = vmatprep.subr.bf16.mxu1 %v3201_v26  ;;  %v730_v39 = vld [vmem:[%s3409_s5 + $0x38] sm:$0xe]  ;;  %v769_v43 = vsel %vm3520_vm5, %v2504_v34, %v768_v38  ;;  %v3228_v48 = vld [vmem:[%s3414_s8 + $0x130] sm:$0xff]   ;;  %v3230_v52 = vld [vmem:[%s3414_s8 + $0x128] sm:$0xff]  }
  0x4f   : > { %v516_v29 = vrot.slane %v514_v20, 4  ;;  %v519_v30 = vrot.slane %v517_v21, 5  ;;  %v3225_v14 = vld [vmem:[%s3409_s5 + $0x18] ss:$8 sps:$4 sm:$0xff]   ;;  %v2507_v47 = vrot.slane %v730_v39, 9  ;;  %v3229_v49 = vld [vmem:[%s3414_s8 + $0x170] sm:$0xff]  }
  0x50   : > { %2908 = vmatpush3.bf16.msra.mxu0 %v3200_v18  ;;  %v3213_v18 = vld [vmem:[%s3414_s8 + $0xe0] sm:$0xff]   ;;  %v3231_v53 = vld [vmem:[%s3414_s8 + $0x168] sm:$0xff]   ;;  %v2618_v39 = vld [vmem:[%s3409_s5 + $0x18] sm:$0xe] }
  0x51   : > { %2932 = vmatpush3.bf16.msra.mxu1 %v3201_v26  ;;  %2909 = vmatprep.subr.bf16.mxu0 %v3202_v31  ;;  %v537_v26 = vshll.u32 %v3498_v17, 16  ;;  %v520_v40 = vor.u32 %v519_v30, %v516_v29  ;;  %v772_v29 = vrot.slane %v3498_v17, 5  ;;  %v776_v17 = vrot.slane %v3505_v27, 5  ;;  %v3233_v55 = vld [vmem:[%s3409_s5 + $0x38] ss:$8 sps:$4 sm:$0xff]  }
  0x52   : > { %2933 = vmatprep.subr.bf16.mxu1 %v3203_v41  ;;  %v2572_v59 = vld [vmem:[%s3409_s5 + $0x8] sm:$0xf] }
  0x53   : > { %v539_v36 = vrot.slane %v537_v26, 5  ;;  %v521_v51 = vrot.slane %v520_v40, 4  ;;  %v2503_v26 = vrot.slane %v726_v15, 9  ;;  %v3227_v40 = vld [vmem:[%s3414_s8 + $0x178] sm:$0xff]  }
  0x54   : > { %2910 = vmatpush3.bf16.msra.mxu0 %v3202_v31  ;;  %v525_v31 = vrot.slane %v523_v22, 5  ;;  %v760_v22 = vrot.slane %v3458_v35, 5  ;;  %v728_v35 = vld [vmem:[%s3409_s5 + $0x28] sm:$0xe] }
  0x55   : > { %2934 = vmatpush3.bf16.msra.mxu1 %v3203_v41  ;;  %2943 = vmatprep.subr.bf16.mxu0 %v3206_v61  ;;  %v551_v41 = vshll.u32 %v3505_v27, 16  ;;  %v540_v19 = vsel %vm3467_vm2, %v535_v54, %v539_v36  ;;  %v2505_v36 = vrot.slane %v728_v35, 9  ;;  %v2579_v35 = vld [vmem:[%s3409_s5 + $0x24] sm:$0x1] }
  0x56   : > { %2967 = vmatprep.subr.bf16.mxu1 %v3207_v0 }
  0x57   : > { %2912 = vmatmul.mubr.bf16.vlgmr.msra.gmra.mxu0 %v3205_v58  ;;  %v553_v56 = vrot.slane %v551_v41, 5  ;;  %v526_v58 = vsel %vm3467_vm2, %v521_v51, %v525_v31  ;;  %v765_v31 = vsel %vm3520_vm5, %v2503_v26, %v764_v23  ;;  %v773_v44 = vsel %vm3520_vm5, %v2505_v36, %v772_v29  ;;  %v2577_v26 = vld [vmem:[%s3409_s5 + $0x1c] sm:$0x1] }
  0x58   : > { %2936 = vmatmul.mubr.bf16.vlgmr.msra.gmra.mxu1 %v2489_v5  ;;  %2944 = vmatpush3.bf16.msra.mxu0 %v3206_v61  ;;  %v723_v5 = vld [vmem:[%s3409_s5] sm:$0xe]  ;;  %v2526_v27 = vcombine.low %v769_v43, %v773_v44 }
  0x59   : > { %2968 = vmatpush3.bf16.msra.mxu1 %v3207_v0  ;;  %2945 = vmatprep.subr.bf16.mxu0 %v3208_v4  ;;  %v2490_v0 = vcombine.low %v526_v58, %v540_v19  ;;  %v554_v3 = vsel %vm3467_vm2, %v549_v62, %v553_v56  ;;  %v3234_v56 = vld [vmem:[%s3414_s8 + $0x120] sm:$0xff]   ;;  %v3236_v58 = vld [vmem:[%s3414_s8 + $0x118] sm:$0xff]   ;;  %v2574_v62 = vld [vmem:[%s3409_s5 + $0x10] sm:$0xf] }
  0x5a   : > { %2969 = vmatprep.subr.bf16.mxu1 %v3209_v6  ;;  %2915 = vmatprep.mubr.bf16.mxu0 %v3214_v7  ;;  %v568_v7 = vsel %vm3467_vm2, %v563_v1, %v567_v60  ;;  %v2573_v60 = vld [vmem:[%s3409_s5 + $0xc] sm:$0x1]  ;;  %v3237_v19 = vld [vmem:[%s3414_s8 + $0x158] sm:$0xff]   ;;  %v1127_v1 = vshll.u32 %v2572_v59, 16  ;;  %v2619_v44 = vld [vmem:[%s3409_s5 + $0x20] sm:$0xe] }
  0x5b   : > { %2939 = vmatprep.mubr.bf16.mxu1 %v2490_v0  ;;  %v1124_v0 = vshrl.u32 %v2572_v59, 16  ;;  %v1427_v59 = vrot.slane %v2579_v35, 5 }
  0x5c   : > { %2946 = vmatpush3.bf16.msra.mxu0 %v3208_v4  ;;  %v3220_v4 = vld [vmem:[%s3414_s8 + $0x88] sm:$0xff]  }
  0x5d   : > { %2970 = vmatpush3.bf16.msra.mxu1 %v3209_v6  ;;  %2947 = vmatprep.subr.bf16.mxu0 %v3210_v8  ;;  %v724_v6 = vld [vmem:[%s3409_s5 + $0x8] sm:$0xe] }
  0x5e   : > { %2971 = vmatprep.subr.bf16.mxu1 %v3211_v10 }
  0x5f   : > { %2916 = vmatmul.mubr.bf16.gmra.mxu0 %v3217_v11  ;;  %v2491_v11 = vcombine.low %v554_v3, %v568_v7  ;;  %v1138_v3 = vshrl.u32 %v2574_v62, 16  ;;  %v1126_v7 = vrot.slane %v1124_v0, 4 }
  0x60   : > { %2948 = vmatpush3.bf16.msra.mxu0 %v3210_v8  ;;  %v2500_v8 = vrot.slane %v723_v5, 9 }
  0x61   : > { %2972 = vmatpush3.bf16.msra.mxu1 %v3211_v10  ;;  %2949 = vmatprep.subr.bf16.mxu0 %v3212_v13  ;;  %v2501_v10 = vrot.slane %v724_v6, 9  ;;  %v2616_v6 = vld [vmem:[%s3409_s5 + $0x8] sm:$0xe]  ;;  %v1140_v15 = vrot.slane %v1138_v3, 4  ;;  %v2582_v3 = vld [vmem:[%s3409_s5 + $0x30] sm:$0xf] }
  0x62   : > { %2973 = vmatprep.subr.bf16.mxu1 %v3213_v18  ;;  %v753_v20 = vsel %vm3520_vm5, %v2500_v8, %v752_v9  ;;  %2940 = vmatmul.mubr.bf16.gmra.mxu1 %v2491_v11  ;;  %v3223_v9 = vld [vmem:[%s3414_s8 + $0xc0] sm:$0xff]   ;;  %v1129_v8 = vrot.slane %v1127_v1, 5  ;;  %v2624_v11 = vrot.slane %v2616_v6, 9  ;;  %v2580_v1 = vld [vmem:[%s3409_s5 + $0x28] sm:$0xf] }
  0x63   : > { %v757_v21 = vsel %vm3520_vm5, %v2501_v10, %v756_v57  ;;  %2983 = vmatprep.mubr.bf16.mxu1 %v3224_v12  ;;  %v3235_v57 = vld [vmem:[%s3414_s8 + $0x160] sm:$0xff]   ;;  %v2617_v10 = vld [vmem:[%s3409_s5 + $0x10] sm:$0xe]  ;;  %v1415_v12 = vrot.slane %v2573_v60, 5  ;;  %v3628_v6 = vld [vmem:[%s3409_s5 + $0x34] sm:$0x1] }
  0x64   : > { %2950 = vmatpush3.bf16.msra.mxu0 %v3212_v13  ;;  %v725_v13 = vld [vmem:[%s3409_s5 + $0x10] sm:$0xe]  ;;  %v2524_v24 = vcombine.low %v753_v20, %v757_v21  ;;  %v2576_v21 = vld [vmem:[%s3409_s5 + $0x18] sm:$0xf] }
  0x65   : > { %2974 = vmatpush3.bf16.msra.mxu1 %v3213_v18  ;;  %2951 = vmatprep.subr.bf16.mxu0 %v3215_v45  ;;  %v3221_v18 = vld [vmem:[%s3414_s8 + $0xc8] sm:$0xff]   ;;  %v2502_v25 = vrot.slane %v725_v13, 9  ;;  %v1416_v23 = vsel %vm3520_vm5, %v2624_v11, %v1415_v12  ;;  %v1152_v38 = vshrl.u32 %v2576_v21, 16  ;;  %v1155_v29 = vshll.u32 %v2576_v21, 16  ;;  %v3244_v12 = vld [vmem:[%s3414_s8 + $0x1b8] sm:$0xff]  }
  0x66   : > { %2975 = vmatprep.subr.bf16.mxu1 %v3216_v50  ;;  %2959 = vmatprep.mubr.bf16.mxu0 %v2524_v24  ;;  %v2625_v24 = vrot.slane %v2617_v10, 9  ;;  %v2584_v10 = vld [vmem:[%s3409_s5 + $0x38] sm:$0xf] }
  0x67   : > { %v761_v30 = vsel %vm3520_vm5, %v2502_v25, %v760_v22  ;;  %v1130_v22 = vor.u32 %v1129_v8, %v1126_v7  ;;  %v1157_v43 = vrot.slane %v1155_v29, 5  ;;  %v1180_v7 = vshrl.u32 %v2580_v1, 16 }
  0x68   : > { %2952 = vmatpush3.bf16.msra.mxu0 %v3215_v45  ;;  %v2525_v41 = vcombine.low %v761_v30, %v765_v31  ;;  %v780_v45 = vrot.slane %v3509_v33, 5  ;;  %v777_v33 = vsel %vm3520_vm5, %v2506_v46, %v776_v17  ;;  %v1161_v30 = vshll.u32 %v2577_v26, 16  ;;  %v3239_v31 = vld [vmem:[%s3414_s8 + $0x150] sm:$0xff]  }
  0x69   : > { %2976 = vmatpush3.bf16.msra.mxu1 %v3216_v50  ;;  %2953 = vmatprep.subr.bf16.mxu0 %v3218_v63  ;;  %v3232_v50 = vld [vmem:[%s3409_s5 + $0x28] ss:$8 sps:$4 sm:$0xff]   ;;  %v1183_v8 = vshll.u32 %v2580_v1, 16  ;;  %v1182_v21 = vrot.slane %v1180_v7, 4 }
  0x6a   : > { %2977 = vmatprep.subr.bf16.mxu1 %v3219_v2  ;;  %v781_v51 = vsel %vm3520_vm5, %v2507_v47, %v780_v45  ;;  %v3241_v45 = vld [vmem:[%s3414_s8 + $0x148] sm:$0xff]   ;;  %v1163_v47 = vrot.slane %v1161_v30, 5 }
  0x6b   : > { %v2527_v54 = vcombine.low %v777_v33, %v781_v51  ;;  %v1175_v33 = vshll.u32 %v2579_v35, 16  ;;  %v2626_v51 = vrot.slane %v2618_v39, 9  ;;  %v1211_v35 = vshll.u32 %v2584_v10, 16 }
  0x6c   : > { %2954 = vmatpush3.bf16.msra.mxu0 %v3218_v63  ;;  %v2575_v63 = vld [vmem:[%s3409_s5 + $0x14] sm:$0x1] }
  0x6d   : > { %2978 = vmatpush3.bf16.msra.mxu1 %v3219_v2  ;;  %2955 = vmatprep.subr.bf16.mxu0 %v3220_v4  ;;  %v1133_v2 = vshll.u32 %v2573_v60, 16  ;;  %v1147_v5 = vshll.u32 %v2575_v63, 16  ;;  %v1419_v25 = vrot.slane %v2575_v63, 5  ;;  %v3243_v60 = vld [vmem:[%s3414_s8 + $0x140] sm:$0xff]  }
  0x6e   : > { %2979 = vmatprep.subr.bf16.mxu1 %v3221_v18 }
  0x6f   : > { %v1135_v13 = vrot.slane %v1133_v2, 5  ;;  %v1149_v20 = vrot.slane %v1147_v5, 5  ;;  %v1420_v34 = vsel %vm3520_vm5, %v2625_v24, %v1419_v25  ;;  %v3620_v2 = vld [vmem:[%s3409_s5 + $0x2c] sm:$0x1]  ;;  %v2586_v24 = vld [vmem:[%s3409_s5 + $0x40] sm:$0xf] }
  0x70   : > { %2956 = vmatpush3.bf16.msra.mxu0 %v3220_v4  ;;  %v1141_v4 = vshll.u32 %v2574_v62, 16  ;;  %v2648_v17 = vcombine.low %v1416_v23, %v1420_v34  ;;  %v1203_v23 = vshll.u32 %v3628_v6, 16  ;;  %v1208_v25 = vshrl.u32 %v2584_v10, 16  ;;  %v3246_v34 = vld [vmem:[%s3414_s8 + $0x1b0] sm:$0xff]   ;;  %v3250_v10 = vld [vmem:[%s3414_s8 + $0x1a0] sm:$0xff]  }
  0x71   : > { %2980 = vmatpush3.bf16.msra.mxu1 %v3221_v18  ;;  %2957 = vmatprep.subr.bf16.mxu0 %v3222_v16  ;;  %v1222_v39 = vshrl.u32 %v2586_v24, 16 }
  0x72   : > { %2981 = vmatprep.subr.bf16.mxu1 %v3223_v9  ;;  %v1143_v18 = vrot.slane %v1141_v4, 5  ;;  %v1205_v30 = vrot.slane %v1203_v23, 5  ;;  %v3679_v23 = vld [vmem:[%s3409_s5 + $0x14] sm:$0x1] }
  0x74   : > { %2958 = vmatpush3.bf16.msra.mxu0 %v3222_v16  ;;  %v2578_v16 = vld [vmem:[%s3409_s5 + $0x20] sm:$0xf]  ;;  %v1144_v28 = vor.u32 %v1143_v18, %v1140_v15  ;;  %v1194_v15 = vshrl.u32 %v2582_v3, 16  ;;  %v1197_v18 = vshll.u32 %v2582_v3, 16  ;;  %v3249_v3 = vld [vmem:[%s3414_s8 + $0x1e8] sm:$0xff]  }
  0x75   : > { %2982 = vmatpush3.bf16.msra.mxu1 %v3223_v9  ;;  %2991 = vmatprep.subr.bf16.mxu0 %v3226_v32  ;;  %v3238_v9 = vld [vmem:[%s3414_s8 + $0x110] sm:$0xff]   ;;  %v1166_v36 = vshrl.u32 %v2578_v16, 16  ;;  %v1169_v37 = vshll.u32 %v2578_v16, 16 }
  0x76   : > { %3015 = vmatprep.subr.bf16.mxu1 %v3227_v40  ;;  %v1196_v16 = vrot.slane %v1194_v15, 4  ;;  %v3251_v15 = vld [vmem:[%s3414_s8 + $0x1e0] sm:$0xff]  }
  0x77   : > { %2960 = vmatmul.mubr.bf16.vlgmr.msra.gmra.mxu0 %v2525_v41  ;;  %v1154_v41 = vrot.slane %v1152_v38, 4  ;;  %v3245_v38 = vld [vmem:[%s3414_s8 + $0x1f8] sm:$0xff]  }
  0x78   : > { %2984 = vmatmul.mubr.bf16.vlgmr.msra.gmra.mxu1 %v3225_v14  ;;  %2992 = vmatpush3.bf16.msra.mxu0 %v3226_v32  ;;  %v1131_v32 = vrot.slane %v1130_v22, 4  ;;  %v3240_v14 = vld [vmem:[%s3414_s8 + $0x108] sm:$0xff]   ;;  %v1185_v22 = vrot.slane %v1183_v8, 5 }
  0x79   : > { %3016 = vmatpush3.bf16.msra.mxu1 %v3227_v40  ;;  %2993 = vmatprep.subr.bf16.mxu0 %v3228_v48  ;;  %v1145_v40 = vrot.slane %v1144_v28, 4  ;;  %v3639_v28 = vld [vmem:[%s3409_s5 + $0x44] sm:$0x1] }
  0x7a   : > { %3017 = vmatprep.subr.bf16.mxu1 %v3229_v49  ;;  %2963 = vmatprep.mubr.bf16.mxu0 %v2526_v27  ;;  %v1136_v46 = vsel %vm3467_vm2, %v1131_v32, %v1135_v13  ;;  %v1189_v13 = vshll.u32 %v3620_v2, 16  ;;  %v1186_v29 = vor.u32 %v1185_v22, %v1182_v21  ;;  %v3260_v21 = vld [vmem:[%s3409_s5 + $0x10] ss:$8 sps:$4 sm:$0xff]  }
  0x7b   : > { %2987 = vmatprep.mubr.bf16.mxu1 %v3232_v50  ;;  %v1150_v27 = vsel %vm3467_vm2, %v1145_v40, %v1149_v20  ;;  %v1158_v50 = vor.u32 %v1157_v43, %v1154_v41  ;;  %v3634_v20 = vld [vmem:[%s3409_s5 + $0x3c] sm:$0x1]  ;;  %v1231_v41 = vshll.u32 %v3639_v28, 16  ;;  %v1431_v43 = vrot.slane %v3620_v2, 5  ;;  %v2696_v22 = vld [vmem:[%s3409_s5 + $0x10] sm:$0xf] }
  0x7c   : > { %2994 = vmatpush3.bf16.msra.mxu0 %v3228_v48  ;;  %v1168_v48 = vrot.slane %v1166_v36, 4  ;;  %v1217_v32 = vshll.u32 %v3634_v20, 16  ;;  %v1187_v40 = vrot.slane %v1186_v29, 4  ;;  %v3254_v29 = vld [vmem:[%s3414_s8 + $0x190] sm:$0xff]  }
  0x7d   : > { %3018 = vmatpush3.bf16.msra.mxu1 %v3229_v49  ;;  %2995 = vmatprep.subr.bf16.mxu0 %v3230_v52  ;;  %v1171_v49 = vrot.slane %v1169_v37, 5  ;;  %v1213_v37 = vrot.slane %v1211_v35, 5 }
  0x7e   : > { %3019 = vmatprep.subr.bf16.mxu1 %v3231_v53 }
  0x7f   : > { %2964 = vmatmul.mubr.bf16.gmra.mxu0 %v2527_v54  ;;  %v1423_v54 = vrot.slane %v2577_v26, 5  ;;  %v1191_v26 = vrot.slane %v1189_v13, 5 }
  0x80   : > { %2996 = vmatpush3.bf16.msra.mxu0 %v3230_v52  ;;  %2988 = vmatmul.mubr.bf16.gmra.mxu1 %v3233_v55  ;;  %v2604_v52 = vcombine.low %v1136_v46, %v1150_v27  ;;  %v2627_v55 = vrot.slane %v2619_v44, 9  ;;  %v3247_v44 = vld [vmem:[%s3414_s8 + $0x1f0] sm:$0xff]   ;;  %v1233_v27 = vrot.slane %v1231_v41, 5  ;;  %v2702_v41 = vld [vmem:[%s3409_s5 + $0x28] sm:$0xf] }
  0x81   : > { %3020 = vmatpush3.bf16.msra.mxu1 %v3231_v53  ;;  %2997 = vmatprep.subr.bf16.mxu0 %v3234_v56  ;;  %v1172_v53 = vor.u32 %v1171_v49, %v1168_v48  ;;  %v3610_v62 = vsel %vm3520_vm5, %v2626_v51, %v1423_v54  ;;  %v1192_v49 = vsel %vm3467_vm2, %v1187_v40, %v1191_v26  ;;  %v1435_v51 = vrot.slane %v3628_v6, 5 }
  0x82   : > { %3021 = vmatprep.subr.bf16.mxu1 %v3235_v57  ;;  %3031 = vmatprep.mubr.bf16.mxu1 %v2648_v17  ;;  %v3616_v0 = vsel %vm3520_vm5, %v2627_v55, %v1427_v59  ;;  %v1219_v17 = vrot.slane %v1217_v32, 5  ;;  %v3248_v59 = vld [vmem:[%s3414_s8 + $0x1a8] sm:$0xff]   ;;  %v1443_v6 = vrot.slane %v3639_v28, 5  ;;  %v1787_v26 = vshrl.u32 %v2696_v22, 16 }
  0x83   : > { %3007 = vmatprep.mubr.bf16.mxu0 %v2604_v52  ;;  %v2649_v5 = vcombine.low %v3610_v62, %v3616_v0  ;;  %v1439_v62 = vrot.slane %v3634_v20, 5  ;;  %v3253_v20 = vld [vmem:[%s3414_s8 + $0x1d8] sm:$0xff]  }
  0x84   : > { %2998 = vmatpush3.bf16.msra.mxu0 %v3234_v56  ;;  %v3242_v56 = vld [vmem:[%s3414_s8 + $0x100] sm:$0xff]  }
  0x85   : > { %3022 = vmatpush3.bf16.msra.mxu1 %v3235_v57  ;;  %2999 = vmatprep.subr.bf16.mxu0 %v3236_v58  ;;  %v1159_v57 = vrot.slane %v1158_v50, 4  ;;  %v2620_v50 = vld [vmem:[%s3409_s5 + $0x28] sm:$0xe] }
  0x86   : > { %3023 = vmatprep.subr.bf16.mxu1 %v3237_v19  ;;  %v2628_v55 = vrot.slane %v2620_v50, 9  ;;  %v1832_v50 = vshll.u32 %v2702_v41, 16 }
  0x87   : > { %v1164_v63 = vsel %vm3467_vm2, %v1159_v57, %v1163_v47  ;;  %v1224_v47 = vrot.slane %v1222_v39, 4  ;;  %v2623_v57 = vld [vmem:[%s3409_s5 + $0x40] sm:$0xe] }
  0x88   : > { %3000 = vmatpush3.bf16.msra.mxu0 %v3236_v58  ;;  %v1177_v58 = vrot.slane %v1175_v33, 5  ;;  %v2621_v33 = vld [vmem:[%s3409_s5 + $0x30] sm:$0xe]  ;;  %v1432_v1 = vsel %vm3520_vm5, %v2628_v55, %v1431_v43  ;;  %v2631_v2 = vrot.slane %v2623_v57, 9  ;;  %v3695_v43 = vld [vmem:[%s3409_s5 + $0x2c] sm:$0x1] }
  0x89   : > { %3024 = vmatpush3.bf16.msra.mxu1 %v3237_v19  ;;  %3001 = vmatprep.subr.bf16.mxu0 %v3238_v9  ;;  %v1173_v19 = vrot.slane %v1172_v53, 4  ;;  %v1834_v57 = vrot.slane %v1832_v50, 5 }
  0x8a   : > { %3025 = vmatprep.subr.bf16.mxu1 %v3239_v31 }
  0x8b   : > { %v1178_v4 = vsel %vm3467_vm2, %v1173_v19, %v1177_v58 }
  0x8c   : > { %3002 = vmatpush3.bf16.msra.mxu0 %v3238_v9  ;;  %v2605_v11 = vcombine.low %v1164_v63, %v1178_v4  ;;  %v1199_v9 = vrot.slane %v1197_v18, 5  ;;  %v3252_v18 = vld [vmem:[%s3414_s8 + $0x198] sm:$0xff]  }
  0x8d   : > { %3026 = vmatpush3.bf16.msra.mxu1 %v3239_v31  ;;  %3003 = vmatprep.subr.bf16.mxu0 %v3240_v14  ;;  %v1210_v31 = vrot.slane %v1208_v25, 4  ;;  %v3683_v25 = vld [vmem:[%s3409_s5 + $0x1c] sm:$0x1] }
  0x8e   : > { %3027 = vmatprep.subr.bf16.mxu1 %v3241_v45  ;;  %v1200_v36 = vor.u32 %v1199_v9, %v1196_v16  ;;  %v1790_v16 = vshll.u32 %v2696_v22, 16  ;;  %v1796_v9 = vshll.u32 %v3679_v23, 16  ;;  %v2708_v22 = vld [vmem:[%s3409_s5 + $0x40] sm:$0xf] }
  0x8f   : > { %v1214_v46 = vor.u32 %v1213_v37, %v1210_v31  ;;  %v1789_v31 = vrot.slane %v1787_v26, 4 }
  0x90   : > { %3004 = vmatpush3.bf16.msra.mxu0 %v3240_v14  ;;  %v1225_v14 = vshll.u32 %v2586_v24, 16  ;;  %v2698_v24 = vld [vmem:[%s3409_s5 + $0x18] sm:$0xf]  ;;  %v1792_v32 = vrot.slane %v1790_v16, 5 }
  0x91   : > { %3028 = vmatpush3.bf16.msra.mxu1 %v3241_v45  ;;  %3005 = vmatprep.subr.bf16.mxu0 %v3242_v56  ;;  %v1201_v45 = vrot.slane %v1200_v36, 4  ;;  %v1215_v53 = vrot.slane %v1214_v46, 4  ;;  %v1801_v28 = vshrl.u32 %v2698_v24, 16  ;;  %v1804_v35 = vshll.u32 %v2698_v24, 16 }
  0x92   : > { %3029 = vmatprep.subr.bf16.mxu1 %v3243_v60  ;;  %v1227_v48 = vrot.slane %v1225_v14, 5  ;;  %v2700_v14 = vld [vmem:[%s3409_s5 + $0x20] sm:$0xf]  ;;  %v1793_v40 = vor.u32 %v1792_v32, %v1789_v31  ;;  %v1871_v31 = vshrl.u32 %v2708_v22, 16  ;;  %v3264_v32 = vld [vmem:[%s3409_s5 + $0x30] ss:$8 sps:$4 sm:$0xff]  }
  0x93   : > { %v1206_v52 = vsel %vm3467_vm2, %v1201_v45, %v1205_v30  ;;  %v1220_v63 = vsel %vm3467_vm2, %v1215_v53, %v1219_v17  ;;  %v3255_v30 = vld [vmem:[%s3414_s8 + $0x1d0] sm:$0xff]   ;;  %v1803_v36 = vrot.slane %v1801_v28, 4  ;;  %v1806_v37 = vrot.slane %v1804_v35, 5  ;;  %v3691_v17 = vld [vmem:[%s3409_s5 + $0x24] sm:$0x1] }
  0x94   : > { %3006 = vmatpush3.bf16.msra.mxu0 %v3242_v56  ;;  %v1228_v54 = vor.u32 %v1227_v48, %v1224_v47  ;;  %v2622_v56 = vld [vmem:[%s3409_s5 + $0x38] sm:$0xe]  ;;  %v2606_v58 = vcombine.low %v1192_v49, %v1206_v52  ;;  %v1815_v46 = vshrl.u32 %v2700_v14, 16  ;;  %v1818_v47 = vshll.u32 %v2700_v14, 16  ;;  %v3725_v28 = vld [vmem:[%s3409_s5 + $0x44] sm:$0x1] }
  0x95   : > { %3030 = vmatpush3.bf16.msra.mxu1 %v3243_v60  ;;  %3039 = vmatprep.subr.bf16.mxu0 %v3244_v12  ;;  %v2629_v60 = vrot.slane %v2621_v33, 9  ;;  %v2630_v19 = vrot.slane %v2622_v56, 9  ;;  %v1807_v45 = vor.u32 %v1806_v37, %v1803_v36  ;;  %v1824_v48 = vshll.u32 %v3691_v17, 16  ;;  %v3730_v37 = vld [vmem:[%s3409_s5 + $0x4c] sm:$0x1] }
  0x96   : > { %3063 = vmatprep.subr.bf16.mxu1 %v3245_v38  ;;  %v1229_v0 = vrot.slane %v1228_v54, 4  ;;  %v1794_v49 = vrot.slane %v1793_v40, 4  ;;  %v1838_v33 = vshll.u32 %v3695_v43, 16  ;;  %v1817_v53 = vrot.slane %v1815_v46, 4  ;;  %v3263_v40 = vld [vmem:[%s3414_s8 + $0x230] sm:$0xff]  }
  0x97   : > { %3008 = vmatmul.mubr.bf16.vlgmr.msra.gmra.mxu0 %v2605_v11  ;;  %v1436_v4 = vsel %vm3520_vm5, %v2629_v60, %v1435_v51  ;;  %v3257_v51 = vld [vmem:[%s3414_s8 + $0x1c8] sm:$0xff]   ;;  %v1808_v52 = vrot.slane %v1807_v45, 4  ;;  %v1820_v54 = vrot.slane %v1818_v47, 5  ;;  %v1826_v60 = vrot.slane %v1824_v48, 5 }
  0x98   : > { %3032 = vmatmul.mubr.bf16.vlgmr.msra.gmra.mxu1 %v2649_v5  ;;  %3040 = vmatpush3.bf16.msra.mxu0 %v3244_v12  ;;  %v1440_v5 = vsel %vm3520_vm5, %v2630_v19, %v1439_v62  ;;  %v1234_v7 = vsel %vm3467_vm2, %v1229_v0, %v1233_v27  ;;  %v2650_v8 = vcombine.low %v1432_v1, %v1436_v4  ;;  %v1829_v27 = vshrl.u32 %v2702_v41, 16  ;;  %v3258_v19 = vld [vmem:[%s3414_s8 + $0x180] sm:$0xff]   ;;  %v2704_v4 = vld [vmem:[%s3409_s5 + $0x30] sm:$0xf] }
  0x99   : > { %3064 = vmatpush3.bf16.msra.mxu1 %v3245_v38  ;;  %3041 = vmatprep.subr.bf16.mxu0 %v3246_v34  ;;  %v2607_v11 = vcombine.low %v1220_v63, %v1234_v7  ;;  %v1444_v12 = vsel %vm3520_vm5, %v2631_v2, %v1443_v6  ;;  %v1810_v38 = vshll.u32 %v3683_v25, 16  ;;  %v1840_v0 = vrot.slane %v1838_v33, 5  ;;  %v3259_v1 = vld [vmem:[%s3414_s8 + $0x1c0] sm:$0xff]   ;;  %v2706_v7 = vld [vmem:[%s3409_s5 + $0x38] sm:$0xf] }
  0x9a   : > { %3065 = vmatprep.subr.bf16.mxu1 %v3247_v44  ;;  %3011 = vmatprep.mubr.bf16.mxu0 %v2606_v58  ;;  %v2651_v13 = vcombine.low %v1440_v5, %v1444_v12  ;;  %v1831_v56 = vrot.slane %v1829_v27, 4  ;;  %v3709_v5 = vld [vmem:[%s3409_s5 + $0x34] sm:$0x1]  ;;  %v3261_v12 = vld [vmem:[%s3409_s5 + $0x20] ss:$8 sps:$4 sm:$0xff]   ;;  %v1880_v14 = vshll.u32 %v3725_v28, 16 }
  0x9b   : > { %3035 = vmatprep.mubr.bf16.mxu1 %v2650_v8  ;;  %v1812_v39 = vrot.slane %v1810_v38, 5  ;;  %v3715_v8 = vld [vmem:[%s3409_s5 + $0x3c] sm:$0x1]  ;;  %v3266_v27 = vld [vmem:[%s3414_s8 + $0x228] sm:$0xff]  }
  0x9c   : > { %3042 = vmatpush3.bf16.msra.mxu0 %v3246_v34  ;;  %v1798_v34 = vrot.slane %v1796_v9, 5  ;;  %v1835_v63 = vor.u32 %v1834_v57, %v1831_v56  ;;  %v1866_v9 = vshll.u32 %v3715_v8, 16  ;;  %v3265_v56 = vld [vmem:[%s3409_s5 + $0x40] ss:$8 sps:$4 sm:$0xff]  }
  0x9d   : > { %3066 = vmatpush3.bf16.msra.mxu1 %v3247_v44  ;;  %3043 = vmatprep.subr.bf16.mxu0 %v3248_v59  ;;  %v3256_v44 = vld [vmem:[%s3414_s8 + $0x188] sm:$0xff]   ;;  %v1813_v58 = vsel %vm3467_vm2, %v1808_v52, %v1812_v39  ;;  %v1874_v39 = vshll.u32 %v2708_v22, 16  ;;  %v3268_v22 = vld [vmem:[%s3414_s8 + $0x218] sm:$0xff]  }
  0x9e   : > { %3067 = vmatprep.subr.bf16.mxu1 %v3249_v3  ;;  %v1799_v55 = vsel %vm3467_vm2, %v1794_v49, %v1798_v34  ;;  %v1868_v36 = vrot.slane %v1866_v9, 5  ;;  %v1894_v49 = vshll.u32 %v3730_v37, 16  ;;  %v2743_v9 = vld [vmem:[%s3409_s5 + $0x28] sm:$0xe] }
  0x9f   : > { %3012 = vmatmul.mubr.bf16.gmra.mxu0 %v2607_v11  ;;  %v2728_v62 = vcombine.low %v1799_v55, %v1813_v58  ;;  %v1846_v11 = vshll.u32 %v2704_v4, 16  ;;  %v1876_v48 = vrot.slane %v1874_v39, 5  ;;  %v3271_v39 = vld [vmem:[%s3414_s8 + $0x200] sm:$0xff]  }
  0xa0   : > { %3044 = vmatpush3.bf16.msra.mxu0 %v3248_v59  ;;  %3036 = vmatmul.mubr.bf16.gmra.mxu1 %v2651_v13  ;;  %v1821_v59 = vor.u32 %v1820_v54, %v1817_v53  ;;  %v1882_v54 = vrot.slane %v1880_v14, 5  ;;  %v1896_v55 = vrot.slane %v1894_v49, 5 }
  0xa1   : > { %3068 = vmatpush3.bf16.msra.mxu1 %v3249_v3  ;;  %3045 = vmatprep.subr.bf16.mxu0 %v3250_v10  ;;  %v1836_v3 = vrot.slane %v1835_v63, 4  ;;  %v1848_v16 = vrot.slane %v1846_v11, 5  ;;  %v2740_v63 = vld [vmem:[%s3409_s5 + $0x10] sm:$0xe] }
  0xa2   : > { %3069 = vmatprep.subr.bf16.mxu1 %v3251_v15  ;;  %3055 = vmatprep.mubr.bf16.mxu0 %v3260_v21  ;;  %v1822_v2 = vrot.slane %v1821_v59, 4  ;;  %v1860_v21 = vshll.u32 %v2706_v7, 16 }
  0xa3   : > { %3079 = vmatprep.mubr.bf16.mxu1 %v2728_v62  ;;  %v1841_v13 = vsel %vm3467_vm2, %v1836_v3, %v1840_v0  ;;  %v2741_v0 = vld [vmem:[%s3409_s5 + $0x18] sm:$0xe]  ;;  %v2748_v3 = vrot.slane %v2740_v63, 9 }
  0xa4   : > { %3046 = vmatpush3.bf16.msra.mxu0 %v3250_v10  ;;  %v1827_v6 = vsel %vm3467_vm2, %v1822_v2, %v1826_v60  ;;  %v1843_v10 = vshrl.u32 %v2704_v4, 16  ;;  %v2749_v4 = vrot.slane %v2741_v0, 9 }
  0xa5   : > { %3070 = vmatpush3.bf16.msra.mxu1 %v3251_v15  ;;  %3047 = vmatprep.subr.bf16.mxu0 %v3252_v18  ;;  %v3262_v15 = vld [vmem:[%s3414_s8 + $0x238] sm:$0xff]   ;;  %v2729_v24 = vcombine.low %v1827_v6, %v1841_v13  ;;  %v2744_v6 = vld [vmem:[%s3409_s5 + $0x30] sm:$0xe] }
  0xa6   : > { %3071 = vmatprep.subr.bf16.mxu1 %v3253_v20  ;;  %v1845_v26 = vrot.slane %v1843_v10, 4  ;;  %v2752_v11 = vrot.slane %v2744_v6, 9 }
  0xa8   : > { %3048 = vmatpush3.bf16.msra.mxu0 %v3252_v18  ;;  %v1852_v18 = vshll.u32 %v3709_v5, 16  ;;  %v1849_v34 = vor.u32 %v1848_v16, %v1845_v26  ;;  %v3270_v26 = vld [vmem:[%s3414_s8 + $0x208] sm:$0xff]   ;;  %v2742_v16 = vld [vmem:[%s3409_s5 + $0x20] sm:$0xe] }
  0xa9   : > { %3072 = vmatpush3.bf16.msra.mxu1 %v3253_v20  ;;  %3049 = vmatprep.subr.bf16.mxu0 %v3254_v29  ;;  %v1857_v20 = vshrl.u32 %v2706_v7, 16  ;;  %v2745_v7 = vld [vmem:[%s3409_s5 + $0x38] sm:$0xe] }
  0xaa   : > { %3073 = vmatprep.subr.bf16.mxu1 %v3255_v30  ;;  %v1854_v35 = vrot.slane %v1852_v18, 5  ;;  %v1850_v47 = vrot.slane %v1849_v34, 4  ;;  %v2102_v34 = vrot.slane %v3725_v28, 5 }
  0xab   : > { %v1859_v38 = vrot.slane %v1857_v20, 4  ;;  %v2098_v20 = vrot.slane %v3715_v8, 5  ;;  %v3269_v8 = vld [vmem:[%s3414_s8 + $0x210] sm:$0xff]  }
  0xac   : > { %3050 = vmatpush3.bf16.msra.mxu0 %v3254_v29  ;;  %v1862_v29 = vrot.slane %v1860_v21, 5  ;;  %v1855_v52 = vsel %vm3467_vm2, %v1850_v47, %v1854_v35  ;;  %v2746_v35 = vld [vmem:[%s3409_s5 + $0x40] sm:$0xe] }
  0xad   : > { %3074 = vmatpush3.bf16.msra.mxu1 %v3255_v30  ;;  %3051 = vmatprep.subr.bf16.mxu0 %v3256_v44  ;;  %v2710_v30 = vld [vmem:[%s3409_s5 + $0x48] sm:$0xf]  ;;  %v2754_v14 = vrot.slane %v2746_v35, 9 }
  0xae   : > { %3075 = vmatprep.subr.bf16.mxu1 %v3257_v51  ;;  %v1863_v41 = vor.u32 %v1862_v29, %v1859_v38  ;;  %v1885_v45 = vshrl.u32 %v2710_v30, 16  ;;  %v1888_v46 = vshll.u32 %v2710_v30, 16  ;;  %v2747_v38 = vld [vmem:[%s3409_s5 + $0x48] sm:$0xe]  ;;  %v2750_v29 = vrot.slane %v2742_v16, 9 }
  0xaf   : > { %v2086_v30 = vrot.slane %v3691_v17, 5 }
  0xb0   : > { %3052 = vmatpush3.bf16.msra.mxu0 %v3256_v44  ;;  %v1873_v44 = vrot.slane %v1871_v31, 4  ;;  %v1864_v50 = vrot.slane %v1863_v41, 4  ;;  %v1887_v33 = vrot.slane %v1885_v45, 4  ;;  %v2751_v31 = vrot.slane %v2743_v9, 9 }
  0xb1   : > { %3076 = vmatpush3.bf16.msra.mxu1 %v3257_v51  ;;  %3053 = vmatprep.subr.bf16.mxu0 %v3258_v19  ;;  %v1890_v51 = vrot.slane %v1888_v46, 5  ;;  %v2087_v41 = vsel %vm3520_vm5, %v2750_v29, %v2086_v30  ;;  %v263_v30 = vld [vmem:[#allocation2 + $0x18] sm:$0xff] }
  0xb2   : > { %3077 = vmatprep.subr.bf16.mxu1 %v3259_v1  ;;  %v1877_v53 = vor.u32 %v1876_v48, %v1873_v44  ;;  %v1869_v57 = vsel %vm3467_vm2, %v1864_v50, %v1868_v36  ;;  %v2106_v36 = vrot.slane %v3730_v37, 5 }
  0xb3   : > { %v1891_v58 = vor.u32 %v1890_v51, %v1887_v33  ;;  %v2730_v59 = vcombine.low %v1855_v52, %v1869_v57 }
  0xb4   : > { %3054 = vmatpush3.bf16.msra.mxu0 %v3258_v19  ;;  %v1878_v60 = vrot.slane %v1877_v53, 4  ;;  %v2078_v19 = vrot.slane %v3679_v23, 5  ;;  %v3267_v23 = vld [vmem:[%s3414_s8 + $0x220] sm:$0xff]  }
  0xb5   : > { %3078 = vmatpush3.bf16.msra.mxu1 %v3259_v1  ;;  %3087 = vmatprep.subr.bf16.mxu0 %v3262_v15  ;;  %v1892_v62 = vrot.slane %v1891_v58, 4  ;;  %v2082_v1 = vrot.slane %v3683_v25, 5  ;;  %v2753_v25 = vrot.slane %v2745_v7, 9 }
  0xb6   : > { %3111 = vmatprep.subr.bf16.mxu1 %v3262_v15  ;;  %v1883_v2 = vsel %vm3467_vm2, %v1878_v60, %v1882_v54 }
  0xb7   : > { %3056 = vmatmul.mubr.bf16.vlgmr.msra.gmra.mxu0 %v3261_v12  ;;  %v1897_v10 = vsel %vm3467_vm2, %v1892_v62, %v1896_v55  ;;  %v2094_v12 = vrot.slane %v3709_v5, 5  ;;  %v2083_v18 = vsel %vm3520_vm5, %v2749_v4, %v2082_v1  ;;  %v2099_v5 = vsel %vm3520_vm5, %v2753_v25, %v2098_v20 }
  0xb8   : > { %3080 = vmatmul.mubr.bf16.vlgmr.msra.gmra.mxu1 %v2729_v24  ;;  %3088 = vmatpush3.bf16.msra.mxu0 %v3262_v15  ;;  %v2731_v13 = vcombine.low %v1883_v2, %v1897_v10 }
  0xb9   : > { %3119 = vmatpush3.bf16.msra.mxu1 %v3262_v15  ;;  %3089 = vmatprep.subr.bf16.mxu0 %v3263_v40  ;;  %v2079_v15 = vsel %vm3520_vm5, %v2748_v3, %v2078_v19  ;;  %v2095_v21 = vsel %vm3520_vm5, %v2752_v11, %v2094_v12 }
  0xba   : > { %3112 = vmatprep.subr.bf16.mxu1 %v3263_v40  ;;  %3059 = vmatprep.mubr.bf16.mxu0 %v3264_v32  ;;  %v2772_v42 = vcombine.low %v2079_v15, %v2083_v18  ;;  %v2774_v24 = vcombine.low %v2095_v21, %v2099_v5  ;;  %v2090_v32 = vrot.slane %v3695_v43, 5  ;;  %v2103_v43 = vsel %vm3520_vm5, %v2754_v14, %v2102_v34  ;;  %v261_v34 = vld [vmem:[#allocation2 + $0x30] sm:$0xff] }
  0xbb   : > { %3083 = vmatprep.mubr.bf16.mxu1 %v2730_v59 }
  0xbc   : > { %3090 = vmatpush3.bf16.msra.mxu0 %v3263_v40  ;;  %v2091_v17 = vsel %vm3520_vm5, %v2751_v31, %v2090_v32  ;;  %v267_v32 = vld [vmem:[#allocation2 + $0x28] sm:$0xff] }
  0xbd   : > { %3120 = vmatpush3.bf16.msra.mxu1 %v3263_v40  ;;  %3091 = vmatprep.subr.bf16.mxu0 %v3266_v27  ;;  %v2755_v40 = vrot.slane %v2747_v38, 9  ;;  %v2773_v37 = vcombine.low %v2087_v41, %v2091_v17 }
  0xbe   : > { %3113 = vmatprep.subr.bf16.mxu1 %v3266_v27 }
  0xbf   : > { %3060 = vmatmul.mubr.bf16.gmra.mxu0 %v3265_v56  ;;  %v2107_v28 = vsel %vm3520_vm5, %v2755_v40, %v2106_v36  ;;  %v264_v40 = vld [vmem:[#allocation2 + $0x10] sm:$0xff] }
  0xc0   : > { %3092 = vmatpush3.bf16.msra.mxu0 %v3266_v27  ;;  %3084 = vmatmul.mubr.bf16.gmra.mxu1 %v2731_v13  ;;  %v2775_v44 = vcombine.low %v2103_v43, %v2107_v28  ;;  %v268_v28 = vld [vmem:[#allocation2 + $0x38] sm:$0xff] }
  0xc1   : > { %3121 = vmatpush3.bf16.msra.mxu1 %v3266_v27  ;;  %3093 = vmatprep.subr.bf16.mxu0 %v3267_v23 }
  0xc2   : > { %3114 = vmatprep.subr.bf16.mxu1 %v3267_v23  ;;  %3103 = vmatprep.mubr.bf16.mxu0 %v2772_v42 }
  0xc3   : > { %3107 = vmatprep.mubr.bf16.mxu1 %v2774_v24 }
  0xc4   : > { %3094 = vmatpush3.bf16.msra.mxu0 %v3267_v23 }
  0xc5   : > { %3122 = vmatpush3.bf16.msra.mxu1 %v3267_v23  ;;  %3095 = vmatprep.subr.bf16.mxu0 %v3268_v22 }
  0xc6   : > { %3115 = vmatprep.subr.bf16.mxu1 %v3268_v22 }
  0xc8   : > { %3096 = vmatpush3.bf16.msra.mxu0 %v3268_v22 }
  0xc9   : > { %3123 = vmatpush3.bf16.msra.mxu1 %v3268_v22  ;;  %3097 = vmatprep.subr.bf16.mxu0 %v3269_v8 }
  0xca   : > { %3116 = vmatprep.subr.bf16.mxu1 %v3269_v8 }
  0xcc   : > { %3098 = vmatpush3.bf16.msra.mxu0 %v3269_v8 }
  0xcd   : > { %3124 = vmatpush3.bf16.msra.mxu1 %v3269_v8  ;;  %3099 = vmatprep.subr.bf16.mxu0 %v3270_v26 }
  0xce   : > { %3117 = vmatprep.subr.bf16.mxu1 %v3270_v26 }
  0xd0   : > { %3100 = vmatpush3.bf16.msra.mxu0 %v3270_v26 }
  0xd1   : > { %3125 = vmatpush3.bf16.msra.mxu1 %v3270_v26  ;;  %3101 = vmatprep.subr.bf16.mxu0 %v3271_v39 }
  0xd2   : > { %3118 = vmatprep.subr.bf16.mxu1 %v3271_v39 }
  0xd4   : > { %3102 = vmatpush3.bf16.msra.mxu0 %v3271_v39 }
  0xd5   : > { %3126 = vmatpush3.bf16.msra.mxu1 %v3271_v39  ;;  %v265_v39 = vld [vmem:[#allocation2 + $0x8] sm:$0xff] }
  0xd7   : > { %3104 = vmatmul.mubr.bf16.vlgmr.msra.gmra.mxu0 %v2773_v37  ;;  %v262_v37 = vld [vmem:[#allocation2] sm:$0xff] }
  0xd8   : > { %3108 = vmatmul.mubr.bf16.vlgmr.msra.gmra.mxu1 %v2775_v44 }
 0x117   : > { %v2913_v45 = vpop.f32.mrf.mxu0 }
 0x118   : > { %v2937_v47 = vpop.f32.mrf.mxu1  ;;  %v432_v36 = vadd.f32 %v2913_v45, %v263_v30 }
 0x119   : > { %v399_v46 = vpop.f32.mrf.mxu0 }
 0x11a   : > { %v3782_v49 = vpop.f32.mrf.mxu1  ;;  %v430_v43 = vadd.f32 %v399_v46, %v261_v34 }
 0x11b   : > { %v2914_v48 = vpop.f32.mrf.mxu0 }
 0x11c   : > { %v3786_v33 = vpop.f32.mrf.mxu1  ;;  %v715_v45 = vadd.f32 %v3782_v49, %v430_v43 }
 0x11d   : > { %v3784_v27 = vpop.f32.mrf.mxu0 }
 0x11e   : > { %v3788_v51 = vpop.f32.mrf.mxu1  ;;  %v431_v30 = vadd.f32 %v3784_v27, %v262_v37 }
 0x11f   : > { %v2917_v50 = vpop.f32.mrf.mxu0 }
 0x120   : > { %v436_v41 = vadd.f32 %v2917_v50, %v267_v32 }
 0x121   : > { %v415_v61 = vpop.f32.mrf.mxu0 }
 0x122   : > { %v2941_v52 = vpop.f32.mrf.mxu1  ;;  %v434_v44 = vadd.f32 %v415_v61, %v265_v39 }
 0x123   : > { %v2918_v53 = vpop.f32.mrf.mxu0 }
 0x124   : > { %v700_v54 = vpop.f32.mrf.mxu1 }
 0x125   : > { %v418_v55 = vpop.f32.mrf.mxu0  ;;  %v719_v50 = vadd.f32 %v700_v54, %v434_v44 }
 0x126   : > { %v3790_v57 = vpop.f32.mrf.mxu1 }
 0x128   : > { %v3792_v59 = vpop.f32.mrf.mxu1 }
 0x137   : > { %v2961_v56 = vpop.f32.mrf.mxu0 }
 0x138   : > { %v3794_v60 = vpop.f32.mrf.mxu1 }
 0x139   : > { %v897_v58 = vpop.f32.mrf.mxu0 }
 0x13a   : > { %v3798_v62 = vpop.f32.mrf.mxu1  ;;  %v928_v34 = vadd.f32 %v897_v58, %v715_v45 }
 0x13b   : > { %v3796_v19 = vpop.f32.mrf.mxu0 }
 0x13c   : > { %v3802_v0 = vpop.f32.mrf.mxu1 }
 0x13d   : > { %v3800_v63 = vpop.f32.mrf.mxu0 }
 0x13e   : > { %v3804_v2 = vpop.f32.mrf.mxu1 }
 0x13f   : > { %v2965_v1 = vpop.f32.mrf.mxu0 }
 0x140   : > { %v2989_v4 = vpop.f32.mrf.mxu1 }
 0x141   : > { %v913_v3 = vpop.f32.mrf.mxu0 }
 0x142   : > { %v3806_v7 = vpop.f32.mrf.mxu1 }
 0x143   : > { %v2966_v6 = vpop.f32.mrf.mxu0 }
 0x144   : > { %v3810_v23 = vpop.f32.mrf.mxu1 }
 0x145   : > { %v3808_v10 = vpop.f32.mrf.mxu0 }
 0x146   : > { %v3812_v12 = vpop.f32.mrf.mxu1 }
 0x157   : > { %v3009_v11 = vpop.f32.mrf.mxu0 }
 0x158   : > { %v3816_v13 = vpop.f32.mrf.mxu1 }
 0x159   : > { %v3814_v25 = vpop.f32.mrf.mxu0 }
 0x15a   : > { %v3820_v18 = vpop.f32.mrf.mxu1 }
 0x15b   : > { %v3818_v15 = vpop.f32.mrf.mxu0 }
 0x15c   : > { %v3824_v42 = vpop.f32.mrf.mxu1 }
 0x15d   : > { %v3822_v20 = vpop.f32.mrf.mxu0  ;;  %3942 = vst [vmem:[#allocation5_spill] sm:$0xff] %v3824_v42  ;;  %v437_v42 = vadd.f32 %v2918_v53, %v268_v28 }
 0x15e   : > { %v3826_v5 = vpop.f32.mrf.mxu1 }
 0x15f   : > { %v3013_v21 = vpop.f32.mrf.mxu0  ;;  %3943 = vst [vmem:[#allocation6_spill] sm:$0xff] %v3826_v5  ;;  %v433_v5 = vadd.f32 %v2914_v48, %v264_v40  ;;  %v932_v48 = vadd.f32 %v913_v3, %v719_v50 }
 0x160   : > { %v3828_v22 = vpop.f32.mrf.mxu1 }
 0x161   : > { %v1366_v24 = vpop.f32.mrf.mxu0  ;;  %v718_v46 = vadd.f32 %v3786_v33, %v433_v5  ;;  %v1099_v33 = vadd.f32 %v3798_v62, %v928_v34 }
 0x162   : > { %v3830_v8 = vpop.f32.mrf.mxu1 }
 0x163   : > { %v3832_v26 = vpop.f32.mrf.mxu0  ;;  %v931_v49 = vadd.f32 %v3796_v19, %v718_v46  ;;  %v1381_v19 = vadd.f32 %v3814_v25, %v1099_v33 }
 0x164   : > { %v3834_v16 = vpop.f32.mrf.mxu1 }
 0x165   : > { %3944 = vst [vmem:[#allocation7_spill] sm:$0xff] %v3834_v16  ;;  %v3836_v9 = vpop.f32.mrf.mxu0 }
 0x166   : > { %3945 = vst [vmem:[#allocation8_spill] sm:$0xff] %v3836_v9  ;;  %v3840_v38 = vpop.f32.mrf.mxu1 }
 0x167   : > { %3946 = vst [vmem:[#allocation9_spill] sm:$0xff] %v3840_v38  ;;  %v717_v38 = vadd.f32 %v2937_v47, %v432_v36  ;;  %v722_v47 = vadd.f32 %v3790_v57, %v437_v42  ;;  %v1103_v57 = vadd.f32 %v3806_v7, %v932_v48 }
 0x16e   : > { %v3958_v37 = vld [vmem:[#allocation9_spill] sm:$0xff] }
 0x177   : > { %v3838_v35 = vpop.f32.mrf.mxu0 }
 0x178   : > { %v3842_v29 = vpop.f32.mrf.mxu1 }
 0x179   : > { %3947 = vst [vmem:[#allocation10_spill] sm:$0xff] %v3842_v29  ;;  %v3844_v31 = vpop.f32.mrf.mxu0  ;;  %v266_v29 = vld [vmem:[#allocation2 + $0x20] sm:$0xff] }
 0x17a   : > { %3948 = vst [vmem:[#allocation11_spill] sm:$0xff] %v3844_v31  ;;  %v3846_v14 = vpop.f32.mrf.mxu1  ;;  %v721_v31 = vadd.f32 %v2941_v52, %v436_v41  ;;  %v435_v32 = vadd.f32 %v418_v55, %v266_v29  ;;  %v716_v52 = vadd.f32 %v3788_v51, %v431_v30  ;;  %v3955_v41 = vld [vmem:[#allocation6_spill] sm:$0xff] }
 0x17b   : > { %3949 = vst [vmem:[#allocation12_spill] sm:$0xff] %v3846_v14  ;;  %v3848_v17 = vpop.f32.mrf.mxu0  ;;  %v930_v14 = vadd.f32 %v2961_v56, %v717_v38  ;;  %v935_v56 = vadd.f32 %v2966_v6, %v722_v47  ;;  %v3951_v38 = vld [vmem:[#allocation8_spill] sm:$0xff] }
 0x17c   : > { %3950 = vst [vmem:[#allocation13_spill] sm:$0xff] %v3848_v17  ;;  %v3850_v16 = vpop.f32.mrf.mxu1  ;;  %v934_v17 = vadd.f32 %v2965_v1, %v721_v31  ;;  %v720_v54 = vadd.f32 %v3792_v59, %v435_v32  ;;  %v929_v58 = vadd.f32 %v3800_v63, %v716_v52 }
 0x17d   : > { %v1734_v9 = vpop.f32.mrf.mxu0  ;;  %v1101_v53 = vadd.f32 %v3794_v60, %v930_v14  ;;  %v1102_v60 = vadd.f32 %v3802_v0, %v931_v49  ;;  %v1106_v59 = vadd.f32 %v3810_v23, %v935_v56  ;;  %v1591_v0 = vadd.f32 %v3820_v18, %v1381_v19 }
 0x17e   : > { %v3855_v61 = vpop.f32.mrf.mxu1  ;;  %v1105_v55 = vadd.f32 %v2989_v4, %v934_v17  ;;  %v933_v3 = vadd.f32 %v3808_v10, %v720_v54  ;;  %v1385_v4 = vadd.f32 %v1366_v24, %v1103_v57  ;;  %v1100_v6 = vadd.f32 %v3804_v2, %v929_v58 }
 0x17f   : > { %v3061_v36 = vpop.f32.mrf.mxu0  ;;  %v1383_v1 = vadd.f32 %v3009_v11, %v1101_v53  ;;  %v1384_v63 = vadd.f32 %v3818_v15, %v1102_v60  ;;  %v1388_v11 = vadd.f32 %v3832_v26, %v1106_v59  ;;  %v3952_v15 = vld [vmem:[#allocation5_spill] sm:$0xff] }
 0x180   : > { %v3085_v27 = vpop.f32.mrf.mxu1  ;;  %v1387_v42 = vadd.f32 %v3013_v21, %v1105_v55  ;;  %v1104_v7 = vadd.f32 %v3812_v12, %v933_v3  ;;  %v1382_v25 = vadd.f32 %v3822_v20, %v1100_v6  ;;  %v1595_v2 = vadd.f32 %v3830_v8, %v1385_v4  ;;  %v3956_v17 = vld [vmem:[#allocation10_spill] sm:$0xff] }
 0x181   : > { %v1747_v51 = vpop.f32.mrf.mxu0  ;;  %v1593_v62 = vadd.f32 %v3816_v13, %v1383_v1  ;;  %v1594_v31 = vadd.f32 %v3952_v15, %v1384_v63  ;;  %v3953_v12 = vld [vmem:[#allocation11_spill] sm:$0xff] }
 0x182   : > { %v2029_v5 = vpop.f32.mrf.mxu1  ;;  %v1597_v10 = vadd.f32 %v3828_v22, %v1387_v42  ;;  %v1386_v13 = vadd.f32 %v3951_v38, %v1104_v7  ;;  %v1762_v39 = vadd.f32 %v3953_v12, %v1591_v0  ;;  %v3954_v22 = vld [vmem:[#allocation7_spill] sm:$0xff]  ;;  %v1766_v26 = vadd.f32 %v1747_v51, %v1595_v2  ;;  %v3959_v50 = vld [vmem:[#allocation12_spill] sm:$0xff] }
 0x183   : > { %v3062_v21 = vpop.f32.mrf.mxu0  ;;  %v1764_v23 = vadd.f32 %v3838_v35, %v1593_v62  ;;  %v1598_v14 = vadd.f32 %v3954_v22, %v1388_v11  ;;  %v1592_v18 = vadd.f32 %v3955_v41, %v1382_v25  ;;  %v3957_v43 = vld [vmem:[#allocation13_spill] sm:$0xff] }
 0x184   : > { %v3086_v24 = vpop.f32.mrf.mxu1  ;;  %v1768_v29 = vadd.f32 %v3061_v36, %v1597_v10  ;;  %v1765_v35 = vadd.f32 %v3957_v43, %v1594_v31  ;;  %v1596_v8 = vadd.f32 %v3958_v37, %v1386_v13  ;;  %v2044_v32 = vadd.f32 %v3959_v50, %v1762_v39 }
 0x185   : > { %v1750_v40 = vpop.f32.mrf.mxu0  ;;  %v2046_v20 = vadd.f32 %v3956_v17, %v1764_v23  ;;  %v1769_v45 = vadd.f32 %v3062_v21, %v1598_v14  ;;  %v1763_v46 = vadd.f32 %v1734_v9, %v1592_v18  ;;  %v2048_v48 = vadd.f32 %v2029_v5, %v1766_v26 }
 0x186   : > { %v2032_v28 = vpop.f32.mrf.mxu1  ;;  %v2050_v44 = vadd.f32 %v3085_v27, %v1768_v29  ;;  %v1767_v36 = vadd.f32 %v1750_v40, %v1596_v8  ;;  %v2047_v49 = vadd.f32 %v3850_v16, %v1765_v35 }
 0x187   : > { %v2051_v56 = vadd.f32 %v3086_v24, %v1769_v45  ;;  %v2045_v58 = vadd.f32 %v3855_v61, %v1763_v46 }
 0x188   : > { %v2049_v57 = vadd.f32 %v2032_v28, %v1767_v36 }
 0x197   : > { %v3105_v30 = vpop.f32.mrf.mxu0 }
 0x198   : > { %v2256_v34 = vadd.f32 %v3105_v30, %v2046_v20  ;;  %v3109_v47 = vpop.f32.mrf.mxu1 }
 0x199   : > { %v2260_v52 = vadd.f32 %v3109_v47, %v2050_v44  ;;  %v2223_v53 = vpop.f32.mrf.mxu0 }
 0x19a   : > { %2264 = vst [vmem:[#allocation2 + $0x18] sm:$0xff] %v2256_v34  ;;  %v2254_v54 = vadd.f32 %v2223_v53, %v2044_v32  ;;  %v2239_v55 = vpop.f32.mrf.mxu1 }
 0x19b   : > { %2268 = vst [vmem:[#allocation2 + $0x28] sm:$0xff] %v2260_v52  ;;  %v2258_v33 = vadd.f32 %v2239_v55, %v2048_v48  ;;  %v3106_v27 = vpop.f32.mrf.mxu0 }
 0x19c   : > { %2262 = vst [vmem:[#allocation2 + $0x30] sm:$0xff] %v2254_v54  ;;  %v2257_v1 = vadd.f32 %v3106_v27, %v2047_v49  ;;  %v3110_v9 = vpop.f32.mrf.mxu1 }
 0x19d   : > { %2266 = vst [vmem:[#allocation2 + $0x8] sm:$0xff] %v2258_v33  ;;  %v2261_v3 = vadd.f32 %v3110_v9, %v2051_v56  ;;  %v2226_v42 = vpop.f32.mrf.mxu0  ;;  %2273 = sbr.rel (%p2784_p3) target bundleno = 455 (0x1c7), region = 40 }
 0x19e   : > { %2265 = vst [vmem:[#allocation2 + $0x10] sm:$0xff] %v2257_v1  ;;  %v2255_v51 = vadd.f32 %v2226_v42, %v2045_v58  ;;  %v2242_v60 = vpop.f32.mrf.mxu1 }
 0x19f   : > { %2269 = vst [vmem:[#allocation2 + $0x38] sm:$0xff] %v2261_v3  ;;  %v2259_v16 = vadd.f32 %v2242_v60, %v2049_v57 }
 0x1a0   : > { %2263 = vst [vmem:[#allocation2] sm:$0xff] %v2255_v51 }
 0x1a1   : > { %2267 = vst [vmem:[#allocation2 + $0x20] sm:$0xff] %v2259_v16 }
 0x1a2   : > { %v2276_v5 = vld [vmem:[#allocation2 + $0x18] sm:$0xff]  ;;  %v2280_v11 = vld [vmem:[#allocation2 + $0x28] sm:$0xff]  ;;  %v2290_v30 = vld [vmem:[%s3935_s3] sm:$0x1] }
 0x1a3   : > { %v2274_v19 = vld [vmem:[#allocation2 + $0x30] sm:$0xff]  ;;  %2284 = vst [vmem:[%s3420_s25 + $0x10] sm:$0xff] %v2276_v5  ;;  %v2309_v62 = vmul.f32 %v2276_v5, %v2276_v5  ;;  %2288 = vst [vmem:[%s3420_s25 + $0x30] sm:$0xff] %v2280_v11  ;;  %v2313_v39 = vmul.f32 %v2280_v11, %v2280_v11  ;;  %v2306_v46 = vld [vmem:[%s3935_s3 + $0x1] sm:$0x1] }
 0x1a4   : > { %2282 = vst [vmem:[%s3420_s25] sm:$0xff] %v2274_v19  ;;  %v2307_v59 = vmul.f32 %v2274_v19, %v2274_v19  ;;  %v2278_v7 = vld [vmem:[#allocation2 + $0x8] sm:$0xff] }
 0x1a5   : > { %v2277_v63 = vld [vmem:[#allocation2 + $0x10] sm:$0xff]  ;;  %2286 = vst [vmem:[%s3420_s25 + $0x20] sm:$0xff] %v2278_v7  ;;  %v2311_v38 = vmul.f32 %v2278_v7, %v2278_v7 }
 0x1a6   : > { %2285 = vst [vmem:[%s3420_s25 + $0x18] sm:$0xff] %v2277_v63  ;;  %v2281_v21 = vld [vmem:[#allocation2 + $0x38] sm:$0xff]  ;;  %v2310_v23 = vmul.f32 %v2277_v63, %v2277_v63 }
 0x1a7   : > { %v2275_v61 = vld [vmem:[#allocation2] sm:$0xff]  ;;  %2289 = vst [vmem:[%s3420_s25 + $0x38] sm:$0xff] %v2281_v21  ;;  %v2314_v26 = vmul.f32 %v2281_v21, %v2281_v21 }
 0x1a8   : > { %2283 = vst [vmem:[%s3420_s25 + $0x8] sm:$0xff] %v2275_v61  ;;  %v2291_v4 = vadd.f32 %v2275_v61, %v2274_v19  ;;  %v2308_v6 = vmul.f32 %v2275_v61, %v2275_v61  ;;  %v2279_v10 = vld [vmem:[#allocation2 + $0x20] sm:$0xff] }
 0x1a9   : > { %2287 = vst [vmem:[%s3420_s25 + $0x28] sm:$0xff] %v2279_v10  ;;  %v2312_v15 = vmul.f32 %v2279_v10, %v2279_v10 }
 0x1aa   : > { %v2315_v0 = vadd.f32 %v2308_v6, %v2307_v59  ;;  %v2292_v25 = vadd.f32 %v2291_v4, %v2276_v5 }
 0x1ac   : > { %v2316_v24 = vadd.f32 %v2315_v0, %v2309_v62  ;;  %v2293_v2 = vadd.f32 %v2292_v25, %v2277_v63 }
 0x1ae   : > { %v2317_v13 = vadd.f32 %v2316_v24, %v2310_v23  ;;  %v2294_v29 = vadd.f32 %v2293_v2, %v2278_v7 }
 0x1b0   : > { %v2318_v31 = vadd.f32 %v2317_v13, %v2311_v38  ;;  %v2295_v12 = vadd.f32 %v2294_v29, %v2279_v10 }
 0x1b2   : > { %v2319_v22 = vadd.f32 %v2318_v31, %v2312_v15  ;;  %v2296_v14 = vadd.f32 %v2295_v12, %v2280_v11 }
 0x1b4   : > { %v2320_v40 = vadd.f32 %v2319_v22, %v2313_v39  ;;  %v2297_v41 = vadd.f32 %v2296_v14, %v2281_v21 }
 0x1b6   : > { %v2298_v18 = vrot.slane %v2297_v41, 4  ;;  %v2321_v17 = vadd.f32 %v2320_v40, %v2314_v26 }
 0x1b8   : > { %v2299_v20 = vadd.f32 %v2298_v18, %v2297_v41  ;;  %v2322_v43 = vrot.slane %v2321_v17, 4 }
 0x1ba   : > { %v2300_v35 = vrot.slane %v2299_v20, 2  ;;  %v2323_v28 = vadd.f32 %v2322_v43, %v2321_v17 }
 0x1bc   : > { %v2301_v37 = vadd.f32 %v2300_v35, %v2299_v20  ;;  %v2324_v8 = vrot.slane %v2323_v28, 2 }
 0x1be   : > { %v2302_v44 = vrot.slane %v2301_v37, 1  ;;  %v2325_v45 = vadd.f32 %v2324_v8, %v2323_v28 }
 0x1c0   : > { %v2303_v50 = vadd.f32 %v2302_v44, %v2301_v37  ;;  %v2326_v32 = vrot.slane %v2325_v45, 1 }
 0x1c2   : > { %v2304_v34 = vadd.f32 %v2303_v50, %v2290_v30  ;;  %v2327_v47 = vadd.f32 %v2326_v32, %v2325_v45 }
 0x1c4   : > { %2305 = vst [vmem:[%s3935_s3] sm:$0x1] %v2304_v34  ;;  %v2328_v48 = vadd.f32 %v2327_v47, %v2306_v46 }
 0x1c6   : > { %2329 = vst [vmem:[%s3935_s3 + $0x1] sm:$0x1] %v2328_v48 }
 0x1c7 PF: > { %s14_s18 = sadd.s32 1, %s3326_s18   ;;  %s3960_s30 = sld [smem:[#allocation3_spill]] }
 0x1c8   : > { %p11_p4 = scmp.ge.s32.totalorder %s14_s18, 50   ;;  %s3961_s4 = sld [smem:[#allocation4_spill]] }
 0x1c9   : > { %s3962_s12 = smov %s3314_s15  ;;  %s3963_s13 = smov %s3318_s16 }
 0x1ca   : > { %s3964_s14 = smov %s3322_s17  ;;  %s3965_s15 = smov %s3969_s19 }
 0x1cb   :  { %13 = sbr.rel (!%p11_p4) target bundleno = 4 (0x4), region = 91 }
 0x1cd   : > { %s3966_s16 = smov %s3960_s30 }
 0x1ce   : > { %s3967_s17 = smov %s3961_s4 }

</bundles_post_ra>
